<compile_context>
chip_gen: v7x
topology: tpu7x:2x2x1
jax: 0.10.0
libtpu: 0.0.40
codegen_flags: <defaults>
</compile_context>

<pallas_src>
import functools

import jax
import jax.numpy as jnp
from jax import lax
from jax.experimental import pallas as pl
from jax.experimental.pallas import tpu as pltpu

_VMEM_LIMIT = 48 * 1024 * 1024   # v7x-safe (< 64 MiB physical); tiles budgeted well below.


def _pick_tile(total, target):
    """Largest power-of-two tile <= target that divides `total` (else full extent)."""
    for t in (1024, 512, 256, 128, 64, 32, 16, 8):
        if t <= target and total % t == 0:
            return t
    return total


# --------------------------- 1x1 conv (tiled matmul) ------------------------ #

def _mm_bias_act_kernel(x_ref, w_ref, b_ref, o_ref, *, relu):
    acc = jnp.dot(x_ref[...], w_ref[...], preferred_element_type=jnp.float32)
    acc = acc + b_ref[...]
    if relu:
        acc = jnp.maximum(acc, 0.0)
    o_ref[...] = acc.astype(o_ref.dtype)


def matmul_bias_act(x, w, b, relu):
    """(M,K)@(K,N) + b (+ReLU).  x,w bf16, b f32, output bf16.  M/N tiled, parallel grid."""
    M, K = x.shape
    N = w.shape[1]
    tm = _pick_tile(M, 512)
    tn = 256 if (N > 256 and N % 256 == 0) else N
    flops = 2 * M * K * N
    bytes_accessed = 2 * (M * K + K * N + M * N) + 4 * N
    return pl.pallas_call(
        functools.partial(_mm_bias_act_kernel, relu=relu),
        out_shape=jax.ShapeDtypeStruct((M, N), jnp.bfloat16),
        grid=(M // tm, N // tn),
        in_specs=[pl.BlockSpec((tm, K), lambda i, j: (i, 0)),
                  pl.BlockSpec((K, tn), lambda i, j: (0, j)),
                  pl.BlockSpec((1, tn), lambda i, j: (0, j))],
        out_specs=pl.BlockSpec((tm, tn), lambda i, j: (i, j)),
        compiler_params=pltpu.CompilerParams(
            dimension_semantics=("parallel", "parallel"),
            vmem_limit_bytes=_VMEM_LIMIT),
        cost_estimate=pl.CostEstimate(flops=int(flops), transcendentals=0,
                                      bytes_accessed=int(bytes_accessed)),
    )(x, w, b)


# ------------- 3x3 grouped conv (+BN+ReLU) with fused SE pooling ------------ #

def _conv2_se_kernel(x_ref, w_ref, b_ref, sw1_ref, sb1_ref, sw2_ref, sb2_ref,
                     h_ref, gate_ref, psum_ref, *, stride, dilation, Ho, Wo):
    s, d = stride, dilation
    Cb = h_ref.shape[-1]
    ho = pl.program_id(1)

    # one output row of the 3x3 conv: 9 taps, each a contiguous slice of the
    # stride-phase view, one lane-dense (Wo, Cb)@(Cb, Cb) dot per tap.
    acc = jnp.zeros((Wo, Cb), jnp.float32) + b_ref[...]
    for kh in range(3):
        for kw in range(3):
            ph = ((kh * d) % s) * s + ((kw * d) % s)     # phase index (static)
            a, b = (kh * d) // s, (kw * d) // s          # offsets inside the phase
            tap = x_ref[pl.ds(ph, 1), pl.ds(ho + a, 1), pl.ds(b, Wo), :]
            tap = tap.reshape(Wo, Cb)
            w_tap = w_ref[pl.ds(kh, 1), pl.ds(kw, 1), :, :].reshape(Cb, Cb)
            acc = acc + jnp.dot(tap, w_tap, preferred_element_type=jnp.float32)
    row = jnp.maximum(acc, 0.0).astype(jnp.bfloat16)
    h_ref[...] = row.reshape(h_ref.shape)

    # SE squeeze: accumulate the per-image channel sums across output rows.
    colsum = jnp.sum(row.astype(jnp.float32), axis=0, keepdims=True)   # (1, Cb)

    @pl.when(ho == 0)
    def _():
        psum_ref[...] = colsum

    @pl.when(ho > 0)
    def _():
        psum_ref[...] = psum_ref[...] + colsum

    # SE excite MLP in the epilogue of the last row (tiny; writes only (1, Cb)).
    @pl.when(ho == pl.num_programs(1) - 1)
    def _():
        pooled = psum_ref[...] * (1.0 / float(Ho * Wo))                 # (1, Cb)
        hid = jnp.maximum(
            jnp.dot(pooled, sw1_ref[...], preferred_element_type=jnp.float32)
            + sb1_ref[...], 0.0)
        g = jnp.dot(hid, sw2_ref[...], preferred_element_type=jnp.float32) + sb2_ref[...]
        gate_ref[...] = jax.nn.sigmoid(g).reshape(gate_ref.shape)


def conv2_se(h, w_dense, b2, sw1, sb1, sw2, sb2, stride, dilation):
    """3x3 grouped conv (block-diagonal dense weight) + BN + ReLU, plus the SE gate.

    h: (N, H, W, Cb) bf16 -> (h2 (N, Ho, Wo, Cb) bf16, gate (N, 1, Cb) f32).
    """
    N, H, W, Cb = h.shape
    s, dil = stride, dilation
    pad = ((s - 1) + dil * 2) // 2
    Ho = (H + 2 * pad - dil * 2 - 1) // s + 1
    Wo = (W + 2 * pad - dil * 2 - 1) // s + 1
    Hp, Wp = H + 2 * pad, W + 2 * pad
    Hq, Wq = -(-Hp // s), -(-Wp // s)
    R = sw1.shape[1]

    # pad + space-to-depth phase split (single cheap relayout; replaces the 9x
    # im2col materialization and lets the kernel use contiguous tap slices even
    # for the strided first block of the stage).
    xp = jnp.pad(h, ((0, 0),
                     (pad, pad + (Hq * s - Hp)),
                     (pad, pad + (Wq * s - Wp)),
                     (0, 0)))
    phases = (xp.reshape(N, Hq, s, Wq, s, Cb)
                .transpose(0, 2, 4, 1, 3, 5)
                .reshape(N * s * s, Hq, Wq, Cb))

    kernel = functools.partial(_conv2_se_kernel, stride=s, dilation=dil, Ho=Ho, Wo=Wo)
    flops = 2 * N * Ho * Wo * 9 * Cb * Cb
    bytes_accessed = 2 * (N * s * s * Hq * Wq * Cb + 9 * Cb * Cb + N * Ho * Wo * Cb)

    h2, gate = pl.pallas_call(
        kernel,
        out_shape=(jax.ShapeDtypeStruct((N, Ho, Wo, Cb), jnp.bfloat16),
                   jax.ShapeDtypeStruct((N, 1, Cb), jnp.float32)),
        grid=(N, Ho),
        in_specs=[pl.BlockSpec((s * s, Hq, Wq, Cb), lambda n, r: (n, 0, 0, 0)),
                  pl.BlockSpec((3, 3, Cb, Cb), lambda n, r: (0, 0, 0, 0)),
                  pl.BlockSpec((1, Cb), lambda n, r: (0, 0)),
                  pl.BlockSpec((Cb, R), lambda n, r: (0, 0)),
                  pl.BlockSpec((1, R), lambda n, r: (0, 0)),
                  pl.BlockSpec((R, Cb), lambda n, r: (0, 0)),
                  pl.BlockSpec((1, Cb), lambda n, r: (0, 0))],
        out_specs=(pl.BlockSpec((1, 1, Wo, Cb), lambda n, r: (n, r, 0, 0)),
                   pl.BlockSpec((1, 1, Cb), lambda n, r: (n, 0, 0))),
        scratch_shapes=[pltpu.VMEM((1, Cb), jnp.float32)],
        compiler_params=pltpu.CompilerParams(
            dimension_semantics=("parallel", "arbitrary"),   # SE sum accumulates over rows
            vmem_limit_bytes=_VMEM_LIMIT),
        cost_estimate=pl.CostEstimate(flops=int(flops), transcendentals=int(N * Cb),
                                      bytes_accessed=int(bytes_accessed)),
    )(phases, w_dense, b2, sw1, sb1, sw2, sb2)
    return h2, gate


# ----------- conv3 (1x1) + SE gating + shortcut add + final ReLU ------------ #

def _conv3_fused_kernel(x_ref, g_ref, w_ref, b_ref, sc_ref, o_ref):
    th, Cb = x_ref.shape[-2], x_ref.shape[-1]
    Cout = o_ref.shape[-1]
    gate = g_ref[...].reshape(1, Cb)                       # per-image SE gate (f32)
    x = x_ref[...].reshape(th, Cb)
    xg = (x.astype(jnp.float32) * gate).astype(jnp.bfloat16)
    acc = jnp.dot(xg, w_ref[...], preferred_element_type=jnp.float32)
    acc = acc + b_ref[...] + sc_ref[...].reshape(th, Cout).astype(jnp.float32)
    out = jnp.maximum(acc, 0.0).astype(o_ref.dtype)
    o_ref[...] = out.reshape(o_ref.shape)


def conv3_fused(h, gate, w, b, sc):
    """x: (N, HW, Cb) bf16, gate (N,1,Cb) f32, sc (N, HW, Cout) bf16 -> (N, HW, Cout)."""
    N, HW, Cb = h.shape
    Cout = w.shape[1]
    th = _pick_tile(HW, 512)
    flops = 2 * N * HW * Cb * Cout
    bytes_accessed = 2 * (N * HW * Cb + Cb * Cout + 2 * N * HW * Cout) + 4 * (Cout + N * Cb)
    return pl.pallas_call(
        _conv3_fused_kernel,
        out_shape=jax.ShapeDtypeStruct((N, HW, Cout), jnp.bfloat16),
        grid=(N, HW // th),
        in_specs=[pl.BlockSpec((1, th, Cb), lambda n, t: (n, t, 0)),
                  pl.BlockSpec((1, 1, Cb), lambda n, t: (n, 0, 0)),
                  pl.BlockSpec((Cb, Cout), lambda n, t: (0, 0)),
                  pl.BlockSpec((1, Cout), lambda n, t: (0, 0)),
                  pl.BlockSpec((1, th, Cout), lambda n, t: (n, t, 0))],
        out_specs=pl.BlockSpec((1, th, Cout), lambda n, t: (n, t, 0)),
        compiler_params=pltpu.CompilerParams(
            dimension_semantics=("parallel", "parallel"),
            vmem_limit_bytes=_VMEM_LIMIT),
        cost_estimate=pl.CostEstimate(flops=int(flops), transcendentals=0,
                                      bytes_accessed=int(bytes_accessed)),
    )(h, gate, w, b, sc)


# ------------------------------ parameter init ------------------------------ #

def _init_conv_bn(key, cin_per_group, cout, k):
    kw_, kg, kb, km, kv = jax.random.split(key, 5)
    w = 0.1 * jax.random.normal(kw_, (cout, cin_per_group, k, k), jnp.float32)  # OIHW
    gamma = 1.0 + 0.1 * jax.random.normal(kg, (cout,), jnp.float32)
    beta = 0.05 * jax.random.normal(kb, (cout,), jnp.float32)
    mean = 0.05 * jax.random.normal(km, (cout,), jnp.float32)
    var = 1.0 + 0.5 * jax.random.uniform(kv, (cout,), jnp.float32)
    return w, (gamma, beta, mean, var)


def _fold_bn(w_oihw, bn, eps=1e-5):
    gamma, beta, mean, var = bn
    scale = gamma / jnp.sqrt(var + eps)
    return w_oihw * scale[:, None, None, None], beta - mean * scale


def init_bottleneck_params(key, in_chs, out_chs, stride, dilation,
                           bottle_ratio, group_size, se_ratio):
    """Returns (cfg, params): cfg = static Python ints/bools, params = jnp arrays only."""
    k1, k2, k3, k4, k5 = jax.random.split(key, 5)
    bchs = int(round(out_chs * bottle_ratio))
    groups = bchs // group_size
    cg = bchs // groups

    # conv1 1x1 + BN (folded) + ReLU
    w1, bn1 = _init_conv_bn(k1, in_chs, bchs, 1)
    w1f, b1 = _fold_bn(w1, bn1)
    w1_mm = w1f[:, :, 0, 0].T.astype(jnp.bfloat16)                      # (Cin, Cb)

    # conv2 3x3 grouped strided + BN (folded) + ReLU
    w2, bn2 = _init_conv_bn(k2, cg, bchs, 3)
    w2f, b2 = _fold_bn(w2, bn2)
    w2_hwio = jnp.transpose(w2f, (2, 3, 1, 0)).astype(jnp.bfloat16)     # (3,3,Cg,Cb) (reference)
    wd = jnp.zeros((3, 3, bchs, bchs), jnp.float32)                     # dense block-diagonal
    for g in range(groups):
        blk = jnp.transpose(w2f[g * cg:(g + 1) * cg], (2, 3, 1, 0))     # (3,3,cg,cg)
        wd = wd.at[:, :, g * cg:(g + 1) * cg, g * cg:(g + 1) * cg].set(blk)
    w2_dense = wd.astype(jnp.bfloat16)                                  # (3,3,Cb,Cb)

    # SE (reduction width derived from the block *input* channels, as in timm)
    rd = int(round(in_chs * se_ratio))
    kw1, kb1, kw2, kb2 = jax.random.split(k3, 4)
    se_w1 = (0.1 * jax.random.normal(kw1, (rd, bchs), jnp.float32)).T   # (Cb, rd)
    se_b1 = (0.05 * jax.random.normal(kb1, (rd,), jnp.float32)).reshape(1, rd)
    se_w2 = (0.1 * jax.random.normal(kw2, (bchs, rd), jnp.float32)).T   # (rd, Cb)
    se_b2 = (0.05 * jax.random.normal(kb2, (bchs,), jnp.float32)).reshape(1, bchs)

    # conv3 1x1 + BN (folded), no activation (ReLU applied after residual add)
    w3, bn3 = _init_conv_bn(k4, bchs, out_chs, 1)
    w3f, b3 = _fold_bn(w3, bn3)
    w3_mm = w3f[:, :, 0, 0].T.astype(jnp.bfloat16)                      # (Cb, Cout)

    # downsample = conv1x1(stride) + BN (folded), only when shapes change
    has_down = (in_chs != out_chs or stride != 1 or dilation[0] != dilation[1])
    if has_down:
        wdn, bnd = _init_conv_bn(k5, in_chs, out_chs, 1)
        wdf, db = _fold_bn(wdn, bnd)
        dw = wdf[:, :, 0, 0].T.astype(jnp.bfloat16)                     # (Cin, Cout)
        db = db.reshape(1, out_chs)
    else:
        dw, db = None, None

    # TODO(synk): DropPath (stochastic depth) / drop_block are identity at rate 0.0;
    # downsample_type='avg' variant not implemented (default 'conv1x1' is).
    cfg = dict(stride=stride, dilation=dilation[0], groups=groups, bchs=bchs,
               in_chs=in_chs, out_chs=out_chs, has_down=has_down)
    params = dict(w1=w1_mm, b1=b1.reshape(1, bchs),
                  w2_dense=w2_dense, w2_hwio=w2_hwio, b2=b2.reshape(1, bchs),
                  se_w1=se_w1, se_b1=se_b1, se_w2=se_w2, se_b2=se_b2,
                  w3=w3_mm, b3=b3.reshape(1, out_chs), dw=dw, db=db)
    return cfg, params


def init_regstage_params(key, depth, in_chs, out_chs, stride, dilation,
                         bottle_ratio=1.0, group_size=8, se_ratio=0.25):
    first_dilation = 1 if dilation in (1, 2) else 2
    cfgs, params = [], []
    for i in range(depth):
        key, bk = jax.random.split(key)
        block_stride = stride if i == 0 else 1
        block_in = in_chs if i == 0 else out_chs
        cfg, prm = init_bottleneck_params(
            bk, block_in, out_chs, block_stride, (first_dilation, dilation),
            bottle_ratio, group_size, se_ratio)
        cfgs.append(cfg)
        params.append(prm)
        first_dilation = dilation
    return tuple(cfgs), params


# ------------------------------- forward pass ------------------------------- #

def bottleneck_forward(x, p, cfg):
    """x: (N, H, W, Cin) bf16 -> (N, Ho, Wo, Cout) bf16.  `cfg` holds static ints."""
    N, H, W, Cin = x.shape
    s, d = cfg['stride'], cfg['dilation']
    Cb, Cout = cfg['bchs'], cfg['out_chs']

    # conv1 (1x1) + BN + ReLU
    h = matmul_bias_act(x.reshape(N * H * W, Cin), p['w1'], p['b1'], relu=True)
    h = h.reshape(N, H, W, Cb)

    # conv2 (3x3 grouped, strided) + BN + ReLU, with the SE gate computed in-kernel
    h2, gate = conv2_se(h, p['w2_dense'], p['b2'],
                        p['se_w1'], p['se_b1'], p['se_w2'], p['se_b2'], s, d)
    _, Ho, Wo, _ = h2.shape
    HW = Ho * Wo

    # shortcut (identity or 1x1 strided conv + BN)
    if cfg['has_down']:
        xs = x[:, ::s, ::s, :].reshape(N * Ho * Wo, Cin)
        sc = matmul_bias_act(xs, p['dw'], p['db'], relu=False).reshape(N, HW, Cout)
    else:
        sc = x.reshape(N, HW, Cout)

    # SE gating + conv3 (1x1) + BN + residual add + final ReLU, fused
    out = conv3_fused(h2.reshape(N, HW, Cb), gate, p['w3'], p['b3'], sc)
    return out.reshape(N, Ho, Wo, Cout)


def regstage_forward(x_nchw, stage_params, stage_cfgs):
    x = jnp.transpose(x_nchw, (0, 2, 3, 1)).astype(jnp.bfloat16)   # NCHW -> NHWC, bf16
    for p, cfg in zip(stage_params, stage_cfgs):
        x = bottleneck_forward(x, p, cfg)
    return jnp.transpose(x.astype(jnp.float32), (0, 3, 1, 2))      # NHWC -> NCHW


# -------------------------- pure-JAX reference check ------------------------ #

def bottleneck_ref(x, p, cfg):
    """Mirrors the kernel path's bf16-input / f32-accumulate rounding points."""
    f32 = jnp.float32
    s, d, G = cfg['stride'], cfg['dilation'], cfg['groups']
    pad = ((s - 1) + d * 2) // 2

    h = jnp.einsum('nhwc,cd->nhwd', x, p['w1'], preferred_element_type=f32) + p['b1']
    h = jnp.maximum(h, 0.0).astype(jnp.bfloat16)

    h2 = lax.conv_general_dilated(h, p['w2_hwio'], (s, s), [(pad, pad), (pad, pad)],
                                  rhs_dilation=(d, d),
                                  dimension_numbers=('NHWC', 'HWIO', 'NHWC'),
                                  feature_group_count=G,
                                  preferred_element_type=f32)
    h2 = jnp.maximum(h2 + p['b2'], 0.0).astype(jnp.bfloat16)

    Ho, Wo = h2.shape[1], h2.shape[2]
    pooled = h2.astype(f32).sum(axis=(1, 2), keepdims=True) * (1.0 / float(Ho * Wo))
    hid = jnp.maximum(
        jnp.einsum('nxyc,cr->nxyr', pooled, p['se_w1'], preferred_element_type=f32)
        + p['se_b1'], 0.0)
    gate = jax.nn.sigmoid(
        jnp.einsum('nxyr,rc->nxyc', hid, p['se_w2'], preferred_element_type=f32)
        + p['se_b2'])
    hg = (h2.astype(f32) * gate).astype(jnp.bfloat16)

    y = jnp.einsum('nhwc,cd->nhwd', hg, p['w3'], preferred_element_type=f32) + p['b3']

    if cfg['has_down']:
        xs = x[:, ::s, ::s, :]
        sc = (jnp.einsum('nhwc,cd->nhwd', xs, p['dw'], preferred_element_type=f32)
              + p['db']).astype(jnp.bfloat16)
    else:
        sc = x
    return jnp.maximum(y + sc.astype(f32), 0.0).astype(jnp.bfloat16)


# ----------------------------------- main ------------------------------------ #

if __name__ == "__main__":
    key = jax.random.PRNGKey(0)
    kx, kp = jax.random.split(key)

    # RegStage(depth=2, in_chs=8, out_chs=16, stride=2, dilation=1,
    #          bottle_ratio=1.0, group_size=8, se_ratio=0.25, downsample='conv1x1')
    x_nchw = jax.random.normal(kx, (2, 8, 16, 16), jnp.float32)     # PyTorch NCHW
    stage_cfgs, stage_params = init_regstage_params(
        kp, depth=2, in_chs=8, out_chs=16, stride=2, dilation=1,
        bottle_ratio=1.0, group_size=8, se_ratio=0.25)

    # Static block config is closed over (not part of the traced pytree).
    fwd = jax.jit(functools.partial(regstage_forward, stage_cfgs=stage_cfgs))
    out = jax.block_until_ready(fwd(x_nchw, stage_params))
    assert out.shape == (2, 16, 8, 8), out.shape

    ref = jnp.transpose(x_nchw, (0, 2, 3, 1)).astype(jnp.bfloat16)
    for p, cfg in zip(stage_params, stage_cfgs):
        ref = bottleneck_ref(ref, p, cfg)
    ref = jnp.transpose(ref.astype(jnp.float32), (0, 3, 1, 2))

    max_err = float(jnp.max(jnp.abs(out - ref)))
    assert jnp.allclose(out, ref, rtol=2e-2, atol=2e-2), max_err

    print("KERNEL_OK")
</pallas_src>

<mosaic_0001>
module attributes {stable_mosaic.version = 11 : i64} {
  func.func @_mm_bias_act_kernel(%arg0: i32, %arg1: i32, %arg2: memref<512x8xbf16, #tpu.memory_space<vmem>>, %arg3: memref<8x16xbf16, #tpu.memory_space<vmem>>, %arg4: memref<1x16xf32, #tpu.memory_space<vmem>>, %arg5: memref<512x16xbf16, #tpu.memory_space<vmem>>) attributes {dimension_semantics = [#tpu.dimension_semantics<parallel>, #tpu.dimension_semantics<parallel>], iteration_bounds = array<i64: 1, 1>, scalar_prefetch = 0 : i64, scratch_operands = 0 : i64, tpu.core_type = #tpu.core_type<tc>, window_params = [{transform_indices = @transform_0, window_bounds = array<i64: 512, 8>}, {transform_indices = @transform_1, window_bounds = array<i64: 8, 16>}, {transform_indices = @transform_2, window_bounds = array<i64: 1, 16>}, {transform_indices = @transform_3, window_bounds = array<i64: 512, 16>}]} {
    %c0 = arith.constant 0 : index
    %c0_0 = arith.constant 0 : index
    %0 = vector.load %arg2[%c0, %c0_0] : memref<512x8xbf16, #tpu.memory_space<vmem>>, vector<512x8xbf16>
    %c0_1 = arith.constant 0 : index
    %c0_2 = arith.constant 0 : index
    %1 = vector.load %arg3[%c0_1, %c0_2] : memref<8x16xbf16, #tpu.memory_space<vmem>>, vector<8x16xbf16>
    %cst = arith.constant dense<0.000000e+00> : vector<512x16xf32>
    %2 = tpu.matmul %0, %1, %cst {dimension_numbers = #tpu.dot_dimension_numbers<[1], [0], [0], [1], [0, 0, 1, 1], [], []>} : vector<512x8xbf16>, vector<8x16xbf16>, vector<512x16xf32> -> vector<512x16xf32>
    %c0_3 = arith.constant 0 : index
    %c0_4 = arith.constant 0 : index
    %3 = vector.load %arg4[%c0_3, %c0_4] : memref<1x16xf32, #tpu.memory_space<vmem>>, vector<1x16xf32>
    %4 = vector.broadcast %3 : vector<1x16xf32> to vector<512x16xf32>
    %5 = arith.addf %2, %4 : vector<512x16xf32>
    %cst_5 = arith.constant 0.000000e+00 : f32
    %6 = vector.broadcast %cst_5 : f32 to vector<512x16xf32>
    %7 = arith.maximumf %5, %6 : vector<512x16xf32>
    %8 = arith.truncf %7 : vector<512x16xf32> to vector<512x16xbf16>
    %c0_6 = arith.constant 0 : index
    %c0_7 = arith.constant 0 : index
    %9 = vector.load %arg5[%c0_6, %c0_7] : memref<512x16xbf16, #tpu.memory_space<vmem>>, vector<512x16xbf16>
    tpu.vector_store %arg5[%c0_6, %c0_7], %8 {strides = array<i32>} : memref<512x16xbf16, #tpu.memory_space<vmem>>, vector<512x16xbf16>,
    return
  }
  func.func @transform_0(%arg0: i32, %arg1: i32) -> (i32, i32) {
    %c0_i32 = arith.constant 0 : i32
    %c0_i32_0 = arith.constant 0 : i32
    return %arg0, %c0_i32 : i32, i32
  }
  func.func @transform_1(%arg0: i32, %arg1: i32) -> (i32, i32) {
    %c0_i32 = arith.constant 0 : i32
    %c0_i32_0 = arith.constant 0 : i32
    return %c0_i32, %arg1 : i32, i32
  }
  func.func @transform_2(%arg0: i32, %arg1: i32) -> (i32, i32) {
    %c0_i32 = arith.constant 0 : i32
    %c0_i32_0 = arith.constant 0 : i32
    return %c0_i32, %arg1 : i32, i32
  }
  func.func @transform_3(%arg0: i32, %arg1: i32) -> (i32, i32) {
    %c0_i32 = arith.constant 0 : i32
    return %arg0, %arg1 : i32, i32
  }
}

module attributes {stable_mosaic.version = 11 : i64} {
  func.func @_mm_bias_act_kernel(%arg0: i32, %arg1: i32, %arg2: memref<128x8xbf16, #tpu.memory_space<vmem>>, %arg3: memref<8x16xbf16, #tpu.memory_space<vmem>>, %arg4: memref<1x16xf32, #tpu.memory_space<vmem>>, %arg5: memref<128x16xbf16, #tpu.memory_space<vmem>>) attributes {dimension_semantics = [#tpu.dimension_semantics<parallel>, #tpu.dimension_semantics<parallel>], iteration_bounds = array<i64: 1, 1>, scalar_prefetch = 0 : i64, scratch_operands = 0 : i64, tpu.core_type = #tpu.core_type<tc>, window_params = [{transform_indices = @transform_0, window_bounds = array<i64: 128, 8>}, {transform_indices = @transform_1, window_bounds = array<i64: 8, 16>}, {transform_indices = @transform_2, window_bounds = array<i64: 1, 16>}, {transform_indices = @transform_3, window_bounds = array<i64: 128, 16>}]} {
    %c0 = arith.constant 0 : index
    %c0_0 = arith.constant 0 : index
    %0 = vector.load %arg2[%c0, %c0_0] : memref<128x8xbf16, #tpu.memory_space<vmem>>, vector<128x8xbf16>
    %c0_1 = arith.constant 0 : index
    %c0_2 = arith.constant 0 : index
    %1 = vector.load %arg3[%c0_1, %c0_2] : memref<8x16xbf16, #tpu.memory_space<vmem>>, vector<8x16xbf16>
    %cst = arith.constant dense<0.000000e+00> : vector<128x16xf32>
    %2 = tpu.matmul %0, %1, %cst {dimension_numbers = #tpu.dot_dimension_numbers<[1], [0], [0], [1], [0, 0, 1, 1], [], []>} : vector<128x8xbf16>, vector<8x16xbf16>, vector<128x16xf32> -> vector<128x16xf32>
    %c0_3 = arith.constant 0 : index
    %c0_4 = arith.constant 0 : index
    %3 = vector.load %arg4[%c0_3, %c0_4] : memref<1x16xf32, #tpu.memory_space<vmem>>, vector<1x16xf32>
    %4 = vector.broadcast %3 : vector<1x16xf32> to vector<128x16xf32>
    %5 = arith.addf %2, %4 : vector<128x16xf32>
    %6 = arith.truncf %5 : vector<128x16xf32> to vector<128x16xbf16>
    %c0_5 = arith.constant 0 : index
    %c0_6 = arith.constant 0 : index
    %7 = vector.load %arg5[%c0_5, %c0_6] : memref<128x16xbf16, #tpu.memory_space<vmem>>, vector<128x16xbf16>
    tpu.vector_store %arg5[%c0_5, %c0_6], %6 {strides = array<i32>} : memref<128x16xbf16, #tpu.memory_space<vmem>>, vector<128x16xbf16>,
    return
  }
  func.func @transform_0(%arg0: i32, %arg1: i32) -> (i32, i32) {
    %c0_i32 = arith.constant 0 : i32
    %c0_i32_0 = arith.constant 0 : i32
    return %arg0, %c0_i32 : i32, i32
  }
  func.func @transform_1(%arg0: i32, %arg1: i32) -> (i32, i32) {
    %c0_i32 = arith.constant 0 : i32
    %c0_i32_0 = arith.constant 0 : i32
    return %c0_i32, %arg1 : i32, i32
  }
  func.func @transform_2(%arg0: i32, %arg1: i32) -> (i32, i32) {
    %c0_i32 = arith.constant 0 : i32
    %c0_i32_0 = arith.constant 0 : i32
    return %c0_i32, %arg1 : i32, i32
  }
  func.func @transform_3(%arg0: i32, %arg1: i32) -> (i32, i32) {
    %c0_i32 = arith.constant 0 : i32
    return %arg0, %arg1 : i32, i32
  }
}

module attributes {stable_mosaic.version = 11 : i64} {
  func.func @_conv2_se_kernel(%arg0: i32, %arg1: i32, %arg2: memref<4x9x9x16xbf16, #tpu.memory_space<vmem>>, %arg3: memref<3x3x16x16xbf16, #tpu.memory_space<vmem>>, %arg4: memref<1x16xf32, #tpu.memory_space<vmem>>, %arg5: memref<16x2xf32, #tpu.memory_space<vmem>>, %arg6: memref<1x2xf32, #tpu.memory_space<vmem>>, %arg7: memref<2x16xf32, #tpu.memory_space<vmem>>, %arg8: memref<1x16xf32, #tpu.memory_space<vmem>>, %arg9: memref<1x1x8x16xbf16, #tpu.memory_space<vmem>>, %arg10: memref<1x1x16xf32, #tpu.memory_space<vmem>>, %arg11: memref<1x16xf32, #tpu.memory_space<vmem>>) attributes {dimension_semantics = [#tpu.dimension_semantics<parallel>, #tpu.dimension_semantics<arbitrary>], iteration_bounds = array<i64: 2, 8>, scalar_prefetch = 0 : i64, scratch_operands = 1 : i64, tpu.core_type = #tpu.core_type<tc>, window_params = [{transform_indices = @transform_0, window_bounds = array<i64: 4, 9, 9, 16>}, {pipeline_mode = #tpu.pipeline_mode<synchronous>, transform_indices = @transform_1, window_bounds = array<i64: 3, 3, 16, 16>}, {pipeline_mode = #tpu.pipeline_mode<synchronous>, transform_indices = @transform_2, window_bounds = array<i64: 1, 16>}, {pipeline_mode = #tpu.pipeline_mode<synchronous>, transform_indices = @transform_3, window_bounds = array<i64: 16, 2>}, {pipeline_mode = #tpu.pipeline_mode<synchronous>, transform_indices = @transform_4, window_bounds = array<i64: 1, 2>}, {pipeline_mode = #tpu.pipeline_mode<synchronous>, transform_indices = @transform_5, window_bounds = array<i64: 2, 16>}, {pipeline_mode = #tpu.pipeline_mode<synchronous>, transform_indices = @transform_6, window_bounds = array<i64: 1, 16>}, {transform_indices = @transform_7, window_bounds = array<i64: 1, 1, 8, 16>}, {transform_indices = @transform_8, window_bounds = array<i64: 1, 1, 16>}]} {
    %cst = arith.constant 0.000000e+00 : f32
    %0 = vector.broadcast %cst : f32 to vector<8x16xf32>
    %c0 = arith.constant 0 : index
    %c0_0 = arith.constant 0 : index
    %1 = vector.load %arg4[%c0, %c0_0] : memref<1x16xf32, #tpu.memory_space<vmem>>, vector<1x16xf32>
    %2 = vector.broadcast %1 : vector<1x16xf32> to vector<8x16xf32>
    %3 = arith.addf %0, %2 : vector<8x16xf32>
    %c0_i32 = arith.constant 0 : i32
    %4 = arith.addi %arg1, %c0_i32 : i32
    %c0_1 = arith.constant 0 : index
    %5 = arith.index_cast %4 : i32 to index
    %c0_2 = arith.constant 0 : index
    %c0_3 = arith.constant 0 : index
    %6 = vector.load %arg2[%c0_1, %5, %c0_2, %c0_3] : memref<4x9x9x16xbf16, #tpu.memory_space<vmem>>, vector<1x1x8x16xbf16>
    %7 = vector.shape_cast %6 : vector<1x1x8x16xbf16> to vector<8x16xbf16>
    %c0_4 = arith.constant 0 : index
    %c0_5 = arith.constant 0 : index
    %c0_6 = arith.constant 0 : index
    %c0_7 = arith.constant 0 : index
    %8 = vector.load %arg3[%c0_4, %c0_5, %c0_6, %c0_7] : memref<3x3x16x16xbf16, #tpu.memory_space<vmem>>, vector<1x1x16x16xbf16>
    %9 = vector.shape_cast %8 : vector<1x1x16x16xbf16> to vector<16x16xbf16>
    %cst_8 = arith.constant dense<0.000000e+00> : vector<8x16xf32>
    %10 = tpu.matmul %7, %9, %cst_8 {dimension_numbers = #tpu.dot_dimension_numbers<[1], [0], [0], [1], [0, 0, 1, 1], [], []>} : vector<8x16xbf16>, vector<16x16xbf16>, vector<8x16xf32> -> vector<8x16xf32>
    %11 = arith.addf %3, %10 : vector<8x16xf32>
    %c0_i32_9 = arith.constant 0 : i32
    %12 = arith.addi %arg1, %c0_i32_9 : i32
    %c1 = arith.constant 1 : index
    %13 = arith.index_cast %12 : i32 to index
    %c0_10 = arith.constant 0 : index
    %c0_11 = arith.constant 0 : index
    %14 = vector.load %arg2[%c1, %13, %c0_10, %c0_11] : memref<4x9x9x16xbf16, #tpu.memory_space<vmem>>, vector<1x1x8x16xbf16>
    %15 = vector.shape_cast %14 : vector<1x1x8x16xbf16> to vector<8x16xbf16>
    %c0_12 = arith.constant 0 : index
    %c1_13 = arith.constant 1 : index
    %c0_14 = arith.constant 0 : index
    %c0_15 = arith.constant 0 : index
    %16 = vector.load %arg3[%c0_12, %c1_13, %c0_14, %c0_15] : memref<3x3x16x16xbf16, #tpu.memory_space<vmem>>, vector<1x1x16x16xbf16>
    %17 = vector.shape_cast %16 : vector<1x1x16x16xbf16> to vector<16x16xbf16>
    %cst_16 = arith.constant dense<0.000000e+00> : vector<8x16xf32>
    %18 = tpu.matmul %15, %17, %cst_16 {dimension_numbers = #tpu.dot_dimension_numbers<[1], [0], [0], [1], [0, 0, 1, 1], [], []>} : vector<8x16xbf16>, vector<16x16xbf16>, vector<8x16xf32> -> vector<8x16xf32>
    %19 = arith.addf %11, %18 : vector<8x16xf32>
    %c0_i32_17 = arith.constant 0 : i32
    %20 = arith.addi %arg1, %c0_i32_17 : i32
    %c0_18 = arith.constant 0 : index
    %21 = arith.index_cast %20 : i32 to index
    %c1_19 = arith.constant 1 : index
    %c0_20 = arith.constant 0 : index
    %22 = vector.load %arg2[%c0_18, %21, %c1_19, %c0_20] : memref<4x9x9x16xbf16, #tpu.memory_space<vmem>>, vector<1x1x8x16xbf16>
    %23 = vector.shape_cast %22 : vector<1x1x8x16xbf16> to vector<8x16xbf16>
    %c0_21 = arith.constant 0 : index
    %c2 = arith.constant 2 : index
    %c0_22 = arith.constant 0 : index
    %c0_23 = arith.constant 0 : index
    %24 = vector.load %arg3[%c0_21, %c2, %c0_22, %c0_23] : memref<3x3x16x16xbf16, #tpu.memory_space<vmem>>, vector<1x1x16x16xbf16>
    %25 = vector.shape_cast %24 : vector<1x1x16x16xbf16> to vector<16x16xbf16>
    %cst_24 = arith.constant dense<0.000000e+00> : vector<8x16xf32>
    %26 = tpu.matmul %23, %25, %cst_24 {dimension_numbers = #tpu.dot_dimension_numbers<[1], [0], [0], [1], [0, 0, 1, 1], [], []>} : vector<8x16xbf16>, vector<16x16xbf16>, vector<8x16xf32> -> vector<8x16xf32>
    %27 = arith.addf %19, %26 : vector<8x16xf32>
    %c0_i32_25 = arith.constant 0 : i32
    %28 = arith.addi %arg1, %c0_i32_25 : i32
    %c2_26 = arith.constant 2 : index
    %29 = arith.index_cast %28 : i32 to index
    %c0_27 = arith.constant 0 : index
    %c0_28 = arith.constant 0 : index
    %30 = vector.load %arg2[%c2_26, %29, %c0_27, %c0_28] : memref<4x9x9x16xbf16, #tpu.memory_space<vmem>>, vector<1x1x8x16xbf16>
    %31 = vector.shape_cast %30 : vector<1x1x8x16xbf16> to vector<8x16xbf16>
    %c1_29 = arith.constant 1 : index
    %c0_30 = arith.constant 0 : index
    %c0_31 = arith.constant 0 : index
    %c0_32 = arith.constant 0 : index
    %32 = vector.load %arg3[%c1_29, %c0_30, %c0_31, %c0_32] : memref<3x3x16x16xbf16, #tpu.memory_space<vmem>>, vector<1x1x16x16xbf16>
    %33 = vector.shape_cast %32 : vector<1x1x16x16xbf16> to vector<16x16xbf16>
    %cst_33 = arith.constant dense<0.000000e+00> : vector<8x16xf32>
    %34 = tpu.matmul %31, %33, %cst_33 {dimension_numbers = #tpu.dot_dimension_numbers<[1], [0], [0], [1], [0, 0, 1, 1], [], []>} : vector<8x16xbf16>, vector<16x16xbf16>, vector<8x16xf32> -> vector<8x16xf32>
    %35 = arith.addf %27, %34 : vector<8x16xf32>
    %c0_i32_34 = arith.constant 0 : i32
    %36 = arith.addi %arg1, %c0_i32_34 : i32
    %c3 = arith.constant 3 : index
    %37 = arith.index_cast %36 : i32 to index
    %c0_35 = arith.constant 0 : index
    %c0_36 = arith.constant 0 : index
    %38 = vector.load %arg2[%c3, %37, %c0_35, %c0_36] : memref<4x9x9x16xbf16, #tpu.memory_space<vmem>>, vector<1x1x8x16xbf16>
    %39 = vector.shape_cast %38 : vector<1x1x8x16xbf16> to vector<8x16xbf16>
    %c1_37 = arith.constant 1 : index
    %c1_38 = arith.constant 1 : index
    %c0_39 = arith.constant 0 : index
    %c0_40 = arith.constant 0 : index
    %40 = vector.load %arg3[%c1_37, %c1_38, %c0_39, %c0_40] : memref<3x3x16x16xbf16, #tpu.memory_space<vmem>>, vector<1x1x16x16xbf16>
    %41 = vector.shape_cast %40 : vector<1x1x16x16xbf16> to vector<16x16xbf16>
    %cst_41 = arith.constant dense<0.000000e+00> : vector<8x16xf32>
    %42 = tpu.matmul %39, %41, %cst_41 {dimension_numbers = #tpu.dot_dimension_numbers<[1], [0], [0], [1], [0, 0, 1, 1], [], []>} : vector<8x16xbf16>, vector<16x16xbf16>, vector<8x16xf32> -> vector<8x16xf32>
    %43 = arith.addf %35, %42 : vector<8x16xf32>
    %c0_i32_42 = arith.constant 0 : i32
    %44 = arith.addi %arg1, %c0_i32_42 : i32
    %c2_43 = arith.constant 2 : index
    %45 = arith.index_cast %44 : i32 to index
    %c1_44 = arith.constant 1 : index
    %c0_45 = arith.constant 0 : index
    %46 = vector.load %arg2[%c2_43, %45, %c1_44, %c0_45] : memref<4x9x9x16xbf16, #tpu.memory_space<vmem>>, vector<1x1x8x16xbf16>
    %47 = vector.shape_cast %46 : vector<1x1x8x16xbf16> to vector<8x16xbf16>
    %c1_46 = arith.constant 1 : index
    %c2_47 = arith.constant 2 : index
    %c0_48 = arith.constant 0 : index
    %c0_49 = arith.constant 0 : index
    %48 = vector.load %arg3[%c1_46, %c2_47, %c0_48, %c0_49] : memref<3x3x16x16xbf16, #tpu.memory_space<vmem>>, vector<1x1x16x16xbf16>
    %49 = vector.shape_cast %48 : vector<1x1x16x16xbf16> to vector<16x16xbf16>
    %cst_50 = arith.constant dense<0.000000e+00> : vector<8x16xf32>
    %50 = tpu.matmul %47, %49, %cst_50 {dimension_numbers = #tpu.dot_dimension_numbers<[1], [0], [0], [1], [0, 0, 1, 1], [], []>} : vector<8x16xbf16>, vector<16x16xbf16>, vector<8x16xf32> -> vector<8x16xf32>
    %51 = arith.addf %43, %50 : vector<8x16xf32>
    %c1_i32 = arith.constant 1 : i32
    %52 = arith.addi %arg1, %c1_i32 : i32
    %c0_51 = arith.constant 0 : index
    %53 = arith.index_cast %52 : i32 to index
    %c0_52 = arith.constant 0 : index
    %c0_53 = arith.constant 0 : index
    %54 = vector.load %arg2[%c0_51, %53, %c0_52, %c0_53] : memref<4x9x9x16xbf16, #tpu.memory_space<vmem>>, vector<1x1x8x16xbf16>
    %55 = vector.shape_cast %54 : vector<1x1x8x16xbf16> to vector<8x16xbf16>
    %c2_54 = arith.constant 2 : index
    %c0_55 = arith.constant 0 : index
    %c0_56 = arith.constant 0 : index
    %c0_57 = arith.constant 0 : index
    %56 = vector.load %arg3[%c2_54, %c0_55, %c0_56, %c0_57] : memref<3x3x16x16xbf16, #tpu.memory_space<vmem>>, vector<1x1x16x16xbf16>
    %57 = vector.shape_cast %56 : vector<1x1x16x16xbf16> to vector<16x16xbf16>
    %cst_58 = arith.constant dense<0.000000e+00> : vector<8x16xf32>
    %58 = tpu.matmul %55, %57, %cst_58 {dimension_numbers = #tpu.dot_dimension_numbers<[1], [0], [0], [1], [0, 0, 1, 1], [], []>} : vector<8x16xbf16>, vector<16x16xbf16>, vector<8x16xf32> -> vector<8x16xf32>
    %59 = arith.addf %51, %58 : vector<8x16xf32>
    %c1_i32_59 = arith.constant 1 : i32
    %60 = arith.addi %arg1, %c1_i32_59 : i32
    %c1_60 = arith.constant 1 : index
    %61 = arith.index_cast %60 : i32 to index
    %c0_61 = arith.constant 0 : index
    %c0_62 = arith.constant 0 : index
    %62 = vector.load %arg2[%c1_60, %61, %c0_61, %c0_62] : memref<4x9x9x16xbf16, #tpu.memory_space<vmem>>, vector<1x1x8x16xbf16>
    %63 = vector.shape_cast %62 : vector<1x1x8x16xbf16> to vector<8x16xbf16>
    %c2_63 = arith.constant 2 : index
    %c1_64 = arith.constant 1 : index
    %c0_65 = arith.constant 0 : index
    %c0_66 = arith.constant 0 : index
    %64 = vector.load %arg3[%c2_63, %c1_64, %c0_65, %c0_66] : memref<3x3x16x16xbf16, #tpu.memory_space<vmem>>, vector<1x1x16x16xbf16>
    %65 = vector.shape_cast %64 : vector<1x1x16x16xbf16> to vector<16x16xbf16>
    %cst_67 = arith.constant dense<0.000000e+00> : vector<8x16xf32>
    %66 = tpu.matmul %63, %65, %cst_67 {dimension_numbers = #tpu.dot_dimension_numbers<[1], [0], [0], [1], [0, 0, 1, 1], [], []>} : vector<8x16xbf16>, vector<16x16xbf16>, vector<8x16xf32> -> vector<8x16xf32>
    %67 = arith.addf %59, %66 : vector<8x16xf32>
    %c1_i32_68 = arith.constant 1 : i32
    %68 = arith.addi %arg1, %c1_i32_68 : i32
    %c0_69 = arith.constant 0 : index
    %69 = arith.index_cast %68 : i32 to index
    %c1_70 = arith.constant 1 : index
    %c0_71 = arith.constant 0 : index
    %70 = vector.load %arg2[%c0_69, %69, %c1_70, %c0_71] : memref<4x9x9x16xbf16, #tpu.memory_space<vmem>>, vector<1x1x8x16xbf16>
    %71 = vector.shape_cast %70 : vector<1x1x8x16xbf16> to vector<8x16xbf16>
    %c2_72 = arith.constant 2 : index
    %c2_73 = arith.constant 2 : index
    %c0_74 = arith.constant 0 : index
    %c0_75 = arith.constant 0 : index
    %72 = vector.load %arg3[%c2_72, %c2_73, %c0_74, %c0_75] : memref<3x3x16x16xbf16, #tpu.memory_space<vmem>>, vector<1x1x16x16xbf16>
    %73 = vector.shape_cast %72 : vector<1x1x16x16xbf16> to vector<16x16xbf16>
    %cst_76 = arith.constant dense<0.000000e+00> : vector<8x16xf32>
    %74 = tpu.matmul %71, %73, %cst_76 {dimension_numbers = #tpu.dot_dimension_numbers<[1], [0], [0], [1], [0, 0, 1, 1], [], []>} : vector<8x16xbf16>, vector<16x16xbf16>, vector<8x16xf32> -> vector<8x16xf32>
    %75 = arith.addf %67, %74 : vector<8x16xf32>
    %cst_77 = arith.constant 0.000000e+00 : f32
    %76 = vector.broadcast %cst_77 : f32 to vector<8x16xf32>
    %77 = arith.maximumf %75, %76 : vector<8x16xf32>
    %78 = arith.truncf %77 : vector<8x16xf32> to vector<8x16xbf16>
    %79 = vector.shape_cast %78 : vector<8x16xbf16> to vector<1x1x8x16xbf16>
    %c0_78 = arith.constant 0 : index
    %c0_79 = arith.constant 0 : index
    %c0_80 = arith.constant 0 : index
    %c0_81 = arith.constant 0 : index
    %80 = vector.load %arg9[%c0_78, %c0_79, %c0_80, %c0_81] : memref<1x1x8x16xbf16, #tpu.memory_space<vmem>>, vector<1x1x8x16xbf16>
    tpu.vector_store %arg9[%c0_78, %c0_79, %c0_80, %c0_81], %79 {strides = array<i32>} : memref<1x1x8x16xbf16, #tpu.memory_space<vmem>>, vector<1x1x8x16xbf16>,
    %81 = arith.extf %78 : vector<8x16xbf16> to vector<8x16xf32>
    %cst_82 = arith.constant dense<0.000000e+00> : vector<16xf32>
    %82 = vector.multi_reduction <add>, %81, %cst_82 [0] : vector<8x16xf32> to vector<16xf32>
    %83 = vector.shape_cast %82 : vector<16xf32> to vector<1x16xf32>
    %c0_i32_83 = arith.constant 0 : i32
    %84 = arith.cmpi eq, %arg1, %c0_i32_83 : i32
    %85 = arith.extui %84 : i1 to i32
    %c0_i32_84 = arith.constant 0 : i32
    %86 = arith.cmpi ne, %85, %c0_i32_84 : i32
    scf.if %86 {
      %c0_88 = arith.constant 0 : index
      %c0_89 = arith.constant 0 : index
      %93 = vector.load %arg11[%c0_88, %c0_89] : memref<1x16xf32, #tpu.memory_space<vmem>>, vector<1x16xf32>
      tpu.vector_store %arg11[%c0_88, %c0_89], %83 {strides = array<i32>} : memref<1x16xf32, #tpu.memory_space<vmem>>, vector<1x16xf32>,
    } else {
    }
    %c0_i32_85 = arith.constant 0 : i32
    %87 = arith.cmpi sgt, %arg1, %c0_i32_85 : i32
    %88 = arith.extui %87 : i1 to i32
    %c0_i32_86 = arith.constant 0 : i32
    %89 = arith.cmpi ne, %88, %c0_i32_86 : i32
    scf.if %89 {
      %c0_88 = arith.constant 0 : index
      %c0_89 = arith.constant 0 : index
      %93 = vector.load %arg11[%c0_88, %c0_89] : memref<1x16xf32, #tpu.memory_space<vmem>>, vector<1x16xf32>
      %94 = arith.addf %93, %83 : vector<1x16xf32>
      %c0_90 = arith.constant 0 : index
      %c0_91 = arith.constant 0 : index
      %95 = vector.load %arg11[%c0_90, %c0_91] : memref<1x16xf32, #tpu.memory_space<vmem>>, vector<1x16xf32>
      tpu.vector_store %arg11[%c0_90, %c0_91], %94 {strides = array<i32>} : memref<1x16xf32, #tpu.memory_space<vmem>>, vector<1x16xf32>,
    } else {
    }
    %c7_i32 = arith.constant 7 : i32
    %90 = arith.cmpi eq, %arg1, %c7_i32 : i32
    %91 = arith.extui %90 : i1 to i32
    %c0_i32_87 = arith.constant 0 : i32
    %92 = arith.cmpi ne, %91, %c0_i32_87 : i32
    scf.if %92 {
      %c0_88 = arith.constant 0 : index
      %c0_89 = arith.constant 0 : index
      %93 = vector.load %arg11[%c0_88, %c0_89] : memref<1x16xf32, #tpu.memory_space<vmem>>, vector<1x16xf32>
      %cst_90 = arith.constant 1.562500e-02 : f32
      %94 = vector.broadcast %cst_90 : f32 to vector<1x16xf32>
      %95 = arith.mulf %93, %94 : vector<1x16xf32>
      %c0_91 = arith.constant 0 : index
      %c0_92 = arith.constant 0 : index
      %96 = vector.load %arg5[%c0_91, %c0_92] : memref<16x2xf32, #tpu.memory_space<vmem>>, vector<16x2xf32>
      %cst_93 = arith.constant dense<0.000000e+00> : vector<1x2xf32>
      %97 = tpu.matmul %95, %96, %cst_93 {dimension_numbers = #tpu.dot_dimension_numbers<[1], [0], [0], [1], [0, 0, 1, 1], [], []>} : vector<1x16xf32>, vector<16x2xf32>, vector<1x2xf32> -> vector<1x2xf32>
      %c0_94 = arith.constant 0 : index
      %c0_95 = arith.constant 0 : index
      %98 = vector.load %arg6[%c0_94, %c0_95] : memref<1x2xf32, #tpu.memory_space<vmem>>, vector<1x2xf32>
      %99 = arith.addf %97, %98 : vector<1x2xf32>
      %cst_96 = arith.constant 0.000000e+00 : f32
      %100 = vector.broadcast %cst_96 : f32 to vector<1x2xf32>
      %101 = arith.maximumf %99, %100 : vector<1x2xf32>
      %c0_97 = arith.constant 0 : index
      %c0_98 = arith.constant 0 : index
      %102 = vector.load %arg7[%c0_97, %c0_98] : memref<2x16xf32, #tpu.memory_space<vmem>>, vector<2x16xf32>
      %cst_99 = arith.constant dense<0.000000e+00> : vector<1x16xf32>
      %103 = tpu.matmul %101, %102, %cst_99 {dimension_numbers = #tpu.dot_dimension_numbers<[1], [0], [0], [1], [0, 0, 1, 1], [], []>} : vector<1x2xf32>, vector<2x16xf32>, vector<1x16xf32> -> vector<1x16xf32>
      %c0_100 = arith.constant 0 : index
      %c0_101 = arith.constant 0 : index
      %104 = vector.load %arg8[%c0_100, %c0_101] : memref<1x16xf32, #tpu.memory_space<vmem>>, vector<1x16xf32>
      %105 = arith.addf %103, %104 : vector<1x16xf32>
      %106 = arith.negf %105 : vector<1x16xf32>
      %107 = math.exp %106 : vector<1x16xf32>
      %cst_102 = arith.constant 1.000000e+00 : f32
      %108 = vector.broadcast %cst_102 : f32 to vector<1x16xf32>
      %109 = arith.addf %108, %107 : vector<1x16xf32>
      %110 = arith.divf %108, %109 : vector<1x16xf32>
      %111 = vector.shape_cast %110 : vector<1x16xf32> to vector<1x1x16xf32>
      %c0_103 = arith.constant 0 : index
      %c0_104 = arith.constant 0 : index
      %c0_105 = arith.constant 0 : index
      %112 = vector.load %arg10[%c0_103, %c0_104, %c0_105] : memref<1x1x16xf32, #tpu.memory_space<vmem>>, vector<1x1x16xf32>
      tpu.vector_store %arg10[%c0_103, %c0_104, %c0_105], %111 {strides = array<i32>} : memref<1x1x16xf32, #tpu.memory_space<vmem>>, vector<1x1x16xf32>,
    } else {
    }
    return
  }
  func.func @transform_0(%arg0: i32, %arg1: i32) -> (i32, i32, i32, i32) {
    %c0_i32 = arith.constant 0 : i32
    %c0_i32_0 = arith.constant 0 : i32
    %c0_i32_1 = arith.constant 0 : i32
    %c0_i32_2 = arith.constant 0 : i32
    return %arg0, %c0_i32, %c0_i32_0, %c0_i32_1 : i32, i32, i32, i32
  }
  func.func @transform_1(%arg0: i32, %arg1: i32) -> (i32, i32, i32, i32) {
    %c0_i32 = arith.constant 0 : i32
    %c0_i32_0 = arith.constant 0 : i32
    %c0_i32_1 = arith.constant 0 : i32
    %c0_i32_2 = arith.constant 0 : i32
    %c0_i32_3 = arith.constant 0 : i32
    return %c0_i32, %c0_i32_0, %c0_i32_1, %c0_i32_2 : i32, i32, i32, i32
  }
  func.func @transform_2(%arg0: i32, %arg1: i32) -> (i32, i32) {
    %c0_i32 = arith.constant 0 : i32
    %c0_i32_0 = arith.constant 0 : i32
    %c0_i32_1 = arith.constant 0 : i32
    return %c0_i32, %c0_i32_0 : i32, i32
  }
  func.func @transform_3(%arg0: i32, %arg1: i32) -> (i32, i32) {
    %c0_i32 = arith.constant 0 : i32
    %c0_i32_0 = arith.constant 0 : i32
    %c0_i32_1 = arith.constant 0 : i32
    return %c0_i32, %c0_i32_0 : i32, i32
  }
  func.func @transform_4(%arg0: i32, %arg1: i32) -> (i32, i32) {
    %c0_i32 = arith.constant 0 : i32
    %c0_i32_0 = arith.constant 0 : i32
    %c0_i32_1 = arith.constant 0 : i32
    return %c0_i32, %c0_i32_0 : i32, i32
  }
  func.func @transform_5(%arg0: i32, %arg1: i32) -> (i32, i32) {
    %c0_i32 = arith.constant 0 : i32
    %c0_i32_0 = arith.constant 0 : i32
    %c0_i32_1 = arith.constant 0 : i32
    return %c0_i32, %c0_i32_0 : i32, i32
  }
  func.func @transform_6(%arg0: i32, %arg1: i32) -> (i32, i32) {
    %c0_i32 = arith.constant 0 : i32
    %c0_i32_0 = arith.constant 0 : i32
    %c0_i32_1 = arith.constant 0 : i32
    return %c0_i32, %c0_i32_0 : i32, i32
  }
  func.func @transform_7(%arg0: i32, %arg1: i32) -> (i32, i32, i32, i32) {
    %c0_i32 = arith.constant 0 : i32
    %c0_i32_0 = arith.constant 0 : i32
    %c0_i32_1 = arith.constant 0 : i32
    return %arg0, %arg1, %c0_i32, %c0_i32_0 : i32, i32, i32, i32
  }
  func.func @transform_8(%arg0: i32, %arg1: i32) -> (i32, i32, i32) {
    %c0_i32 = arith.constant 0 : i32
    %c0_i32_0 = arith.constant 0 : i32
    %c0_i32_1 = arith.constant 0 : i32
    return %arg0, %c0_i32, %c0_i32_0 : i32, i32, i32
  }
}

module attributes {stable_mosaic.version = 11 : i64} {
  func.func @_mm_bias_act_kernel(%arg0: i32, %arg1: i32, %arg2: memref<128x16xbf16, #tpu.memory_space<vmem>>, %arg3: memref<16x16xbf16, #tpu.memory_space<vmem>>, %arg4: memref<1x16xf32, #tpu.memory_space<vmem>>, %arg5: memref<128x16xbf16, #tpu.memory_space<vmem>>) attributes {dimension_semantics = [#tpu.dimension_semantics<parallel>, #tpu.dimension_semantics<parallel>], iteration_bounds = array<i64: 1, 1>, scalar_prefetch = 0 : i64, scratch_operands = 0 : i64, tpu.core_type = #tpu.core_type<tc>, window_params = [{transform_indices = @transform_0, window_bounds = array<i64: 128, 16>}, {transform_indices = @transform_1, window_bounds = array<i64: 16, 16>}, {transform_indices = @transform_2, window_bounds = array<i64: 1, 16>}, {transform_indices = @transform_3, window_bounds = array<i64: 128, 16>}]} {
    %c0 = arith.constant 0 : index
    %c0_0 = arith.constant 0 : index
    %0 = vector.load %arg2[%c0, %c0_0] : memref<128x16xbf16, #tpu.memory_space<vmem>>, vector<128x16xbf16>
    %c0_1 = arith.constant 0 : index
    %c0_2 = arith.constant 0 : index
    %1 = vector.load %arg3[%c0_1, %c0_2] : memref<16x16xbf16, #tpu.memory_space<vmem>>, vector<16x16xbf16>
    %cst = arith.constant dense<0.000000e+00> : vector<128x16xf32>
    %2 = tpu.matmul %0, %1, %cst {dimension_numbers = #tpu.dot_dimension_numbers<[1], [0], [0], [1], [0, 0, 1, 1], [], []>} : vector<128x16xbf16>, vector<16x16xbf16>, vector<128x16xf32> -> vector<128x16xf32>
    %c0_3 = arith.constant 0 : index
    %c0_4 = arith.constant 0 : index
    %3 = vector.load %arg4[%c0_3, %c0_4] : memref<1x16xf32, #tpu.memory_space<vmem>>, vector<1x16xf32>
    %4 = vector.broadcast %3 : vector<1x16xf32> to vector<128x16xf32>
    %5 = arith.addf %2, %4 : vector<128x16xf32>
    %cst_5 = arith.constant 0.000000e+00 : f32
    %6 = vector.broadcast %cst_5 : f32 to vector<128x16xf32>
    %7 = arith.maximumf %5, %6 : vector<128x16xf32>
    %8 = arith.truncf %7 : vector<128x16xf32> to vector<128x16xbf16>
    %c0_6 = arith.constant 0 : index
    %c0_7 = arith.constant 0 : index
    %9 = vector.load %arg5[%c0_6, %c0_7] : memref<128x16xbf16, #tpu.memory_space<vmem>>, vector<128x16xbf16>
    tpu.vector_store %arg5[%c0_6, %c0_7], %8 {strides = array<i32>} : memref<128x16xbf16, #tpu.memory_space<vmem>>, vector<128x16xbf16>,
    return
  }
  func.func @transform_0(%arg0: i32, %arg1: i32) -> (i32, i32) {
    %c0_i32 = arith.constant 0 : i32
    %c0_i32_0 = arith.constant 0 : i32
    return %arg0, %c0_i32 : i32, i32
  }
  func.func @transform_1(%arg0: i32, %arg1: i32) -> (i32, i32) {
    %c0_i32 = arith.constant 0 : i32
    %c0_i32_0 = arith.constant 0 : i32
    return %c0_i32, %arg1 : i32, i32
  }
  func.func @transform_2(%arg0: i32, %arg1: i32) -> (i32, i32) {
    %c0_i32 = arith.constant 0 : i32
    %c0_i32_0 = arith.constant 0 : i32
    return %c0_i32, %arg1 : i32, i32
  }
  func.func @transform_3(%arg0: i32, %arg1: i32) -> (i32, i32) {
    %c0_i32 = arith.constant 0 : i32
    return %arg0, %arg1 : i32, i32
  }
}

module attributes {stable_mosaic.version = 11 : i64} {
  func.func @_conv3_fused_kernel(%arg0: i32, %arg1: i32, %arg2: memref<1x64x16xbf16, #tpu.memory_space<vmem>>, %arg3: memref<1x1x16xf32, #tpu.memory_space<vmem>>, %arg4: memref<16x16xbf16, #tpu.memory_space<vmem>>, %arg5: memref<1x16xf32, #tpu.memory_space<vmem>>, %arg6: memref<1x64x16xbf16, #tpu.memory_space<vmem>>, %arg7: memref<1x64x16xbf16, #tpu.memory_space<vmem>>) attributes {dimension_semantics = [#tpu.dimension_semantics<parallel>, #tpu.dimension_semantics<parallel>], iteration_bounds = array<i64: 2, 1>, scalar_prefetch = 0 : i64, scratch_operands = 0 : i64, tpu.core_type = #tpu.core_type<tc>, window_params = [{transform_indices = @transform_0, window_bounds = array<i64: 1, 64, 16>}, {transform_indices = @transform_1, window_bounds = array<i64: 1, 1, 16>}, {pipeline_mode = #tpu.pipeline_mode<synchronous>, transform_indices = @transform_2, window_bounds = array<i64: 16, 16>}, {pipeline_mode = #tpu.pipeline_mode<synchronous>, transform_indices = @transform_3, window_bounds = array<i64: 1, 16>}, {transform_indices = @transform_4, window_bounds = array<i64: 1, 64, 16>}, {transform_indices = @transform_5, window_bounds = array<i64: 1, 64, 16>}]} {
    %c0 = arith.constant 0 : index
    %c0_0 = arith.constant 0 : index
    %c0_1 = arith.constant 0 : index
    %0 = vector.load %arg3[%c0, %c0_0, %c0_1] : memref<1x1x16xf32, #tpu.memory_space<vmem>>, vector<1x1x16xf32>
    %1 = vector.shape_cast %0 : vector<1x1x16xf32> to vector<1x16xf32>
    %c0_2 = arith.constant 0 : index
    %c0_3 = arith.constant 0 : index
    %c0_4 = arith.constant 0 : index
    %2 = vector.load %arg2[%c0_2, %c0_3, %c0_4] : memref<1x64x16xbf16, #tpu.memory_space<vmem>>, vector<1x64x16xbf16>
    %3 = vector.shape_cast %2 : vector<1x64x16xbf16> to vector<64x16xbf16>
    %4 = arith.extf %3 : vector<64x16xbf16> to vector<64x16xf32>
    %5 = vector.broadcast %1 : vector<1x16xf32> to vector<64x16xf32>
    %6 = arith.mulf %4, %5 : vector<64x16xf32>
    %7 = arith.truncf %6 : vector<64x16xf32> to vector<64x16xbf16>
    %c0_5 = arith.constant 0 : index
    %c0_6 = arith.constant 0 : index
    %8 = vector.load %arg4[%c0_5, %c0_6] : memref<16x16xbf16, #tpu.memory_space<vmem>>, vector<16x16xbf16>
    %cst = arith.constant dense<0.000000e+00> : vector<64x16xf32>
    %9 = tpu.matmul %7, %8, %cst {dimension_numbers = #tpu.dot_dimension_numbers<[1], [0], [0], [1], [0, 0, 1, 1], [], []>} : vector<64x16xbf16>, vector<16x16xbf16>, vector<64x16xf32> -> vector<64x16xf32>
    %c0_7 = arith.constant 0 : index
    %c0_8 = arith.constant 0 : index
    %10 = vector.load %arg5[%c0_7, %c0_8] : memref<1x16xf32, #tpu.memory_space<vmem>>, vector<1x16xf32>
    %11 = vector.broadcast %10 : vector<1x16xf32> to vector<64x16xf32>
    %12 = arith.addf %9, %11 : vector<64x16xf32>
    %c0_9 = arith.constant 0 : index
    %c0_10 = arith.constant 0 : index
    %c0_11 = arith.constant 0 : index
    %13 = vector.load %arg6[%c0_9, %c0_10, %c0_11] : memref<1x64x16xbf16, #tpu.memory_space<vmem>>, vector<1x64x16xbf16>
    %14 = vector.shape_cast %13 : vector<1x64x16xbf16> to vector<64x16xbf16>
    %15 = arith.extf %14 : vector<64x16xbf16> to vector<64x16xf32>
    %16 = arith.addf %12, %15 : vector<64x16xf32>
    %cst_12 = arith.constant 0.000000e+00 : f32
    %17 = vector.broadcast %cst_12 : f32 to vector<64x16xf32>
    %18 = arith.maximumf %16, %17 : vector<64x16xf32>
    %19 = arith.truncf %18 : vector<64x16xf32> to vector<64x16xbf16>
    %20 = vector.shape_cast %19 : vector<64x16xbf16> to vector<1x64x16xbf16>
    %c0_13 = arith.constant 0 : index
    %c0_14 = arith.constant 0 : index
    %c0_15 = arith.constant 0 : index
    %21 = vector.load %arg7[%c0_13, %c0_14, %c0_15] : memref<1x64x16xbf16, #tpu.memory_space<vmem>>, vector<1x64x16xbf16>
    tpu.vector_store %arg7[%c0_13, %c0_14, %c0_15], %20 {strides = array<i32>} : memref<1x64x16xbf16, #tpu.memory_space<vmem>>, vector<1x64x16xbf16>,
    return
  }
  func.func @transform_0(%arg0: i32, %arg1: i32) -> (i32, i32, i32) {
    %c0_i32 = arith.constant 0 : i32
    %c0_i32_0 = arith.constant 0 : i32
    return %arg0, %arg1, %c0_i32 : i32, i32, i32
  }
  func.func @transform_1(%arg0: i32, %arg1: i32) -> (i32, i32, i32) {
    %c0_i32 = arith.constant 0 : i32
    %c0_i32_0 = arith.constant 0 : i32
    %c0_i32_1 = arith.constant 0 : i32
    return %arg0, %c0_i32, %c0_i32_0 : i32, i32, i32
  }
  func.func @transform_2(%arg0: i32, %arg1: i32) -> (i32, i32) {
    %c0_i32 = arith.constant 0 : i32
    %c0_i32_0 = arith.constant 0 : i32
    %c0_i32_1 = arith.constant 0 : i32
    return %c0_i32, %c0_i32_0 : i32, i32
  }
  func.func @transform_3(%arg0: i32, %arg1: i32) -> (i32, i32) {
    %c0_i32 = arith.constant 0 : i32
    %c0_i32_0 = arith.constant 0 : i32
    %c0_i32_1 = arith.constant 0 : i32
    return %c0_i32, %c0_i32_0 : i32, i32
  }
  func.func @transform_4(%arg0: i32, %arg1: i32) -> (i32, i32, i32) {
    %c0_i32 = arith.constant 0 : i32
    %c0_i32_0 = arith.constant 0 : i32
    return %arg0, %arg1, %c0_i32 : i32, i32, i32
  }
  func.func @transform_5(%arg0: i32, %arg1: i32) -> (i32, i32, i32) {
    %c0_i32 = arith.constant 0 : i32
    %c0_i32_0 = arith.constant 0 : i32
    return %arg0, %arg1, %c0_i32 : i32, i32, i32
  }
}

module attributes {stable_mosaic.version = 11 : i64} {
  func.func @_conv2_se_kernel(%arg0: i32, %arg1: i32, %arg2: memref<1x10x10x16xbf16, #tpu.memory_space<vmem>>, %arg3: memref<3x3x16x16xbf16, #tpu.memory_space<vmem>>, %arg4: memref<1x16xf32, #tpu.memory_space<vmem>>, %arg5: memref<16x4xf32, #tpu.memory_space<vmem>>, %arg6: memref<1x4xf32, #tpu.memory_space<vmem>>, %arg7: memref<4x16xf32, #tpu.memory_space<vmem>>, %arg8: memref<1x16xf32, #tpu.memory_space<vmem>>, %arg9: memref<1x1x8x16xbf16, #tpu.memory_space<vmem>>, %arg10: memref<1x1x16xf32, #tpu.memory_space<vmem>>, %arg11: memref<1x16xf32, #tpu.memory_space<vmem>>) attributes {dimension_semantics = [#tpu.dimension_semantics<parallel>, #tpu.dimension_semantics<arbitrary>], iteration_bounds = array<i64: 2, 8>, scalar_prefetch = 0 : i64, scratch_operands = 1 : i64, tpu.core_type = #tpu.core_type<tc>, window_params = [{transform_indices = @transform_0, window_bounds = array<i64: 1, 10, 10, 16>}, {pipeline_mode = #tpu.pipeline_mode<synchronous>, transform_indices = @transform_1, window_bounds = array<i64: 3, 3, 16, 16>}, {pipeline_mode = #tpu.pipeline_mode<synchronous>, transform_indices = @transform_2, window_bounds = array<i64: 1, 16>}, {pipeline_mode = #tpu.pipeline_mode<synchronous>, transform_indices = @transform_3, window_bounds = array<i64: 16, 4>}, {pipeline_mode = #tpu.pipeline_mode<synchronous>, transform_indices = @transform_4, window_bounds = array<i64: 1, 4>}, {pipeline_mode = #tpu.pipeline_mode<synchronous>, transform_indices = @transform_5, window_bounds = array<i64: 4, 16>}, {pipeline_mode = #tpu.pipeline_mode<synchronous>, transform_indices = @transform_6, window_bounds = array<i64: 1, 16>}, {transform_indices = @transform_7, window_bounds = array<i64: 1, 1, 8, 16>}, {transform_indices = @transform_8, window_bounds = array<i64: 1, 1, 16>}]} {
    %cst = arith.constant 0.000000e+00 : f32
    %0 = vector.broadcast %cst : f32 to vector<8x16xf32>
    %c0 = arith.constant 0 : index
    %c0_0 = arith.constant 0 : index
    %1 = vector.load %arg4[%c0, %c0_0] : memref<1x16xf32, #tpu.memory_space<vmem>>, vector<1x16xf32>
    %2 = vector.broadcast %1 : vector<1x16xf32> to vector<8x16xf32>
    %3 = arith.addf %0, %2 : vector<8x16xf32>
    %c0_i32 = arith.constant 0 : i32
    %4 = arith.addi %arg1, %c0_i32 : i32
    %c0_1 = arith.constant 0 : index
    %5 = arith.index_cast %4 : i32 to index
    %c0_2 = arith.constant 0 : index
    %c0_3 = arith.constant 0 : index
    %6 = vector.load %arg2[%c0_1, %5, %c0_2, %c0_3] : memref<1x10x10x16xbf16, #tpu.memory_space<vmem>>, vector<1x1x8x16xbf16>
    %7 = vector.shape_cast %6 : vector<1x1x8x16xbf16> to vector<8x16xbf16>
    %c0_4 = arith.constant 0 : index
    %c0_5 = arith.constant 0 : index
    %c0_6 = arith.constant 0 : index
    %c0_7 = arith.constant 0 : index
    %8 = vector.load %arg3[%c0_4, %c0_5, %c0_6, %c0_7] : memref<3x3x16x16xbf16, #tpu.memory_space<vmem>>, vector<1x1x16x16xbf16>
    %9 = vector.shape_cast %8 : vector<1x1x16x16xbf16> to vector<16x16xbf16>
    %cst_8 = arith.constant dense<0.000000e+00> : vector<8x16xf32>
    %10 = tpu.matmul %7, %9, %cst_8 {dimension_numbers = #tpu.dot_dimension_numbers<[1], [0], [0], [1], [0, 0, 1, 1], [], []>} : vector<8x16xbf16>, vector<16x16xbf16>, vector<8x16xf32> -> vector<8x16xf32>
    %11 = arith.addf %3, %10 : vector<8x16xf32>
    %c0_i32_9 = arith.constant 0 : i32
    %12 = arith.addi %arg1, %c0_i32_9 : i32
    %c0_10 = arith.constant 0 : index
    %13 = arith.index_cast %12 : i32 to index
    %c1 = arith.constant 1 : index
    %c0_11 = arith.constant 0 : index
    %14 = vector.load %arg2[%c0_10, %13, %c1, %c0_11] : memref<1x10x10x16xbf16, #tpu.memory_space<vmem>>, vector<1x1x8x16xbf16>
    %15 = vector.shape_cast %14 : vector<1x1x8x16xbf16> to vector<8x16xbf16>
    %c0_12 = arith.constant 0 : index
    %c1_13 = arith.constant 1 : index
    %c0_14 = arith.constant 0 : index
    %c0_15 = arith.constant 0 : index
    %16 = vector.load %arg3[%c0_12, %c1_13, %c0_14, %c0_15] : memref<3x3x16x16xbf16, #tpu.memory_space<vmem>>, vector<1x1x16x16xbf16>
    %17 = vector.shape_cast %16 : vector<1x1x16x16xbf16> to vector<16x16xbf16>
    %cst_16 = arith.constant dense<0.000000e+00> : vector<8x16xf32>
    %18 = tpu.matmul %15, %17, %cst_16 {dimension_numbers = #tpu.dot_dimension_numbers<[1], [0], [0], [1], [0, 0, 1, 1], [], []>} : vector<8x16xbf16>, vector<16x16xbf16>, vector<8x16xf32> -> vector<8x16xf32>
    %19 = arith.addf %11, %18 : vector<8x16xf32>
    %c0_i32_17 = arith.constant 0 : i32
    %20 = arith.addi %arg1, %c0_i32_17 : i32
    %c0_18 = arith.constant 0 : index
    %21 = arith.index_cast %20 : i32 to index
    %c2 = arith.constant 2 : index
    %c0_19 = arith.constant 0 : index
    %22 = vector.load %arg2[%c0_18, %21, %c2, %c0_19] : memref<1x10x10x16xbf16, #tpu.memory_space<vmem>>, vector<1x1x8x16xbf16>
    %23 = vector.shape_cast %22 : vector<1x1x8x16xbf16> to vector<8x16xbf16>
    %c0_20 = arith.constant 0 : index
    %c2_21 = arith.constant 2 : index
    %c0_22 = arith.constant 0 : index
    %c0_23 = arith.constant 0 : index
    %24 = vector.load %arg3[%c0_20, %c2_21, %c0_22, %c0_23] : memref<3x3x16x16xbf16, #tpu.memory_space<vmem>>, vector<1x1x16x16xbf16>
    %25 = vector.shape_cast %24 : vector<1x1x16x16xbf16> to vector<16x16xbf16>
    %cst_24 = arith.constant dense<0.000000e+00> : vector<8x16xf32>
    %26 = tpu.matmul %23, %25, %cst_24 {dimension_numbers = #tpu.dot_dimension_numbers<[1], [0], [0], [1], [0, 0, 1, 1], [], []>} : vector<8x16xbf16>, vector<16x16xbf16>, vector<8x16xf32> -> vector<8x16xf32>
    %27 = arith.addf %19, %26 : vector<8x16xf32>
    %c1_i32 = arith.constant 1 : i32
    %28 = arith.addi %arg1, %c1_i32 : i32
    %c0_25 = arith.constant 0 : index
    %29 = arith.index_cast %28 : i32 to index
    %c0_26 = arith.constant 0 : index
    %c0_27 = arith.constant 0 : index
    %30 = vector.load %arg2[%c0_25, %29, %c0_26, %c0_27] : memref<1x10x10x16xbf16, #tpu.memory_space<vmem>>, vector<1x1x8x16xbf16>
    %31 = vector.shape_cast %30 : vector<1x1x8x16xbf16> to vector<8x16xbf16>
    %c1_28 = arith.constant 1 : index
    %c0_29 = arith.constant 0 : index
    %c0_30 = arith.constant 0 : index
    %c0_31 = arith.constant 0 : index
    %32 = vector.load %arg3[%c1_28, %c0_29, %c0_30, %c0_31] : memref<3x3x16x16xbf16, #tpu.memory_space<vmem>>, vector<1x1x16x16xbf16>
    %33 = vector.shape_cast %32 : vector<1x1x16x16xbf16> to vector<16x16xbf16>
    %cst_32 = arith.constant dense<0.000000e+00> : vector<8x16xf32>
    %34 = tpu.matmul %31, %33, %cst_32 {dimension_numbers = #tpu.dot_dimension_numbers<[1], [0], [0], [1], [0, 0, 1, 1], [], []>} : vector<8x16xbf16>, vector<16x16xbf16>, vector<8x16xf32> -> vector<8x16xf32>
    %35 = arith.addf %27, %34 : vector<8x16xf32>
    %c1_i32_33 = arith.constant 1 : i32
    %36 = arith.addi %arg1, %c1_i32_33 : i32
    %c0_34 = arith.constant 0 : index
    %37 = arith.index_cast %36 : i32 to index
    %c1_35 = arith.constant 1 : index
    %c0_36 = arith.constant 0 : index
    %38 = vector.load %arg2[%c0_34, %37, %c1_35, %c0_36] : memref<1x10x10x16xbf16, #tpu.memory_space<vmem>>, vector<1x1x8x16xbf16>
    %39 = vector.shape_cast %38 : vector<1x1x8x16xbf16> to vector<8x16xbf16>
    %c1_37 = arith.constant 1 : index
    %c1_38 = arith.constant 1 : index
    %c0_39 = arith.constant 0 : index
    %c0_40 = arith.constant 0 : index
    %40 = vector.load %arg3[%c1_37, %c1_38, %c0_39, %c0_40] : memref<3x3x16x16xbf16, #tpu.memory_space<vmem>>, vector<1x1x16x16xbf16>
    %41 = vector.shape_cast %40 : vector<1x1x16x16xbf16> to vector<16x16xbf16>
    %cst_41 = arith.constant dense<0.000000e+00> : vector<8x16xf32>
    %42 = tpu.matmul %39, %41, %cst_41 {dimension_numbers = #tpu.dot_dimension_numbers<[1], [0], [0], [1], [0, 0, 1, 1], [], []>} : vector<8x16xbf16>, vector<16x16xbf16>, vector<8x16xf32> -> vector<8x16xf32>
    %43 = arith.addf %35, %42 : vector<8x16xf32>
    %c1_i32_42 = arith.constant 1 : i32
    %44 = arith.addi %arg1, %c1_i32_42 : i32
    %c0_43 = arith.constant 0 : index
    %45 = arith.index_cast %44 : i32 to index
    %c2_44 = arith.constant 2 : index
    %c0_45 = arith.constant 0 : index
    %46 = vector.load %arg2[%c0_43, %45, %c2_44, %c0_45] : memref<1x10x10x16xbf16, #tpu.memory_space<vmem>>, vector<1x1x8x16xbf16>
    %47 = vector.shape_cast %46 : vector<1x1x8x16xbf16> to vector<8x16xbf16>
    %c1_46 = arith.constant 1 : index
    %c2_47 = arith.constant 2 : index
    %c0_48 = arith.constant 0 : index
    %c0_49 = arith.constant 0 : index
    %48 = vector.load %arg3[%c1_46, %c2_47, %c0_48, %c0_49] : memref<3x3x16x16xbf16, #tpu.memory_space<vmem>>, vector<1x1x16x16xbf16>
    %49 = vector.shape_cast %48 : vector<1x1x16x16xbf16> to vector<16x16xbf16>
    %cst_50 = arith.constant dense<0.000000e+00> : vector<8x16xf32>
    %50 = tpu.matmul %47, %49, %cst_50 {dimension_numbers = #tpu.dot_dimension_numbers<[1], [0], [0], [1], [0, 0, 1, 1], [], []>} : vector<8x16xbf16>, vector<16x16xbf16>, vector<8x16xf32> -> vector<8x16xf32>
    %51 = arith.addf %43, %50 : vector<8x16xf32>
    %c2_i32 = arith.constant 2 : i32
    %52 = arith.addi %arg1, %c2_i32 : i32
    %c0_51 = arith.constant 0 : index
    %53 = arith.index_cast %52 : i32 to index
    %c0_52 = arith.constant 0 : index
    %c0_53 = arith.constant 0 : index
    %54 = vector.load %arg2[%c0_51, %53, %c0_52, %c0_53] : memref<1x10x10x16xbf16, #tpu.memory_space<vmem>>, vector<1x1x8x16xbf16>
    %55 = vector.shape_cast %54 : vector<1x1x8x16xbf16> to vector<8x16xbf16>
    %c2_54 = arith.constant 2 : index
    %c0_55 = arith.constant 0 : index
    %c0_56 = arith.constant 0 : index
    %c0_57 = arith.constant 0 : index
    %56 = vector.load %arg3[%c2_54, %c0_55, %c0_56, %c0_57] : memref<3x3x16x16xbf16, #tpu.memory_space<vmem>>, vector<1x1x16x16xbf16>
    %57 = vector.shape_cast %56 : vector<1x1x16x16xbf16> to vector<16x16xbf16>
    %cst_58 = arith.constant dense<0.000000e+00> : vector<8x16xf32>
    %58 = tpu.matmul %55, %57, %cst_58 {dimension_numbers = #tpu.dot_dimension_numbers<[1], [0], [0], [1], [0, 0, 1, 1], [], []>} : vector<8x16xbf16>, vector<16x16xbf16>, vector<8x16xf32> -> vector<8x16xf32>
    %59 = arith.addf %51, %58 : vector<8x16xf32>
    %c2_i32_59 = arith.constant 2 : i32
    %60 = arith.addi %arg1, %c2_i32_59 : i32
    %c0_60 = arith.constant 0 : index
    %61 = arith.index_cast %60 : i32 to index
    %c1_61 = arith.constant 1 : index
    %c0_62 = arith.constant 0 : index
    %62 = vector.load %arg2[%c0_60, %61, %c1_61, %c0_62] : memref<1x10x10x16xbf16, #tpu.memory_space<vmem>>, vector<1x1x8x16xbf16>
    %63 = vector.shape_cast %62 : vector<1x1x8x16xbf16> to vector<8x16xbf16>
    %c2_63 = arith.constant 2 : index
    %c1_64 = arith.constant 1 : index
    %c0_65 = arith.constant 0 : index
    %c0_66 = arith.constant 0 : index
    %64 = vector.load %arg3[%c2_63, %c1_64, %c0_65, %c0_66] : memref<3x3x16x16xbf16, #tpu.memory_space<vmem>>, vector<1x1x16x16xbf16>
    %65 = vector.shape_cast %64 : vector<1x1x16x16xbf16> to vector<16x16xbf16>
    %cst_67 = arith.constant dense<0.000000e+00> : vector<8x16xf32>
    %66 = tpu.matmul %63, %65, %cst_67 {dimension_numbers = #tpu.dot_dimension_numbers<[1], [0], [0], [1], [0, 0, 1, 1], [], []>} : vector<8x16xbf16>, vector<16x16xbf16>, vector<8x16xf32> -> vector<8x16xf32>
    %67 = arith.addf %59, %66 : vector<8x16xf32>
    %c2_i32_68 = arith.constant 2 : i32
    %68 = arith.addi %arg1, %c2_i32_68 : i32
    %c0_69 = arith.constant 0 : index
    %69 = arith.index_cast %68 : i32 to index
    %c2_70 = arith.constant 2 : index
    %c0_71 = arith.constant 0 : index
    %70 = vector.load %arg2[%c0_69, %69, %c2_70, %c0_71] : memref<1x10x10x16xbf16, #tpu.memory_space<vmem>>, vector<1x1x8x16xbf16>
    %71 = vector.shape_cast %70 : vector<1x1x8x16xbf16> to vector<8x16xbf16>
    %c2_72 = arith.constant 2 : index
    %c2_73 = arith.constant 2 : index
    %c0_74 = arith.constant 0 : index
    %c0_75 = arith.constant 0 : index
    %72 = vector.load %arg3[%c2_72, %c2_73, %c0_74, %c0_75] : memref<3x3x16x16xbf16, #tpu.memory_space<vmem>>, vector<1x1x16x16xbf16>
    %73 = vector.shape_cast %72 : vector<1x1x16x16xbf16> to vector<16x16xbf16>
    %cst_76 = arith.constant dense<0.000000e+00> : vector<8x16xf32>
    %74 = tpu.matmul %71, %73, %cst_76 {dimension_numbers = #tpu.dot_dimension_numbers<[1], [0], [0], [1], [0, 0, 1, 1], [], []>} : vector<8x16xbf16>, vector<16x16xbf16>, vector<8x16xf32> -> vector<8x16xf32>
    %75 = arith.addf %67, %74 : vector<8x16xf32>
    %cst_77 = arith.constant 0.000000e+00 : f32
    %76 = vector.broadcast %cst_77 : f32 to vector<8x16xf32>
    %77 = arith.maximumf %75, %76 : vector<8x16xf32>
    %78 = arith.truncf %77 : vector<8x16xf32> to vector<8x16xbf16>
    %79 = vector.shape_cast %78 : vector<8x16xbf16> to vector<1x1x8x16xbf16>
    %c0_78 = arith.constant 0 : index
    %c0_79 = arith.constant 0 : index
    %c0_80 = arith.constant 0 : index
    %c0_81 = arith.constant 0 : index
    %80 = vector.load %arg9[%c0_78, %c0_79, %c0_80, %c0_81] : memref<1x1x8x16xbf16, #tpu.memory_space<vmem>>, vector<1x1x8x16xbf16>
    tpu.vector_store %arg9[%c0_78, %c0_79, %c0_80, %c0_81], %79 {strides = array<i32>} : memref<1x1x8x16xbf16, #tpu.memory_space<vmem>>, vector<1x1x8x16xbf16>,
    %81 = arith.extf %78 : vector<8x16xbf16> to vector<8x16xf32>
    %cst_82 = arith.constant dense<0.000000e+00> : vector<16xf32>
    %82 = vector.multi_reduction <add>, %81, %cst_82 [0] : vector<8x16xf32> to vector<16xf32>
    %83 = vector.shape_cast %82 : vector<16xf32> to vector<1x16xf32>
    %c0_i32_83 = arith.constant 0 : i32
    %84 = arith.cmpi eq, %arg1, %c0_i32_83 : i32
    %85 = arith.extui %84 : i1 to i32
    %c0_i32_84 = arith.constant 0 : i32
    %86 = arith.cmpi ne, %85, %c0_i32_84 : i32
    scf.if %86 {
      %c0_88 = arith.constant 0 : index
      %c0_89 = arith.constant 0 : index
      %93 = vector.load %arg11[%c0_88, %c0_89] : memref<1x16xf32, #tpu.memory_space<vmem>>, vector<1x16xf32>
      tpu.vector_store %arg11[%c0_88, %c0_89], %83 {strides = array<i32>} : memref<1x16xf32, #tpu.memory_space<vmem>>, vector<1x16xf32>,
    } else {
    }
    %c0_i32_85 = arith.constant 0 : i32
    %87 = arith.cmpi sgt, %arg1, %c0_i32_85 : i32
    %88 = arith.extui %87 : i1 to i32
    %c0_i32_86 = arith.constant 0 : i32
    %89 = arith.cmpi ne, %88, %c0_i32_86 : i32
    scf.if %89 {
      %c0_88 = arith.constant 0 : index
      %c0_89 = arith.constant 0 : index
      %93 = vector.load %arg11[%c0_88, %c0_89] : memref<1x16xf32, #tpu.memory_space<vmem>>, vector<1x16xf32>
      %94 = arith.addf %93, %83 : vector<1x16xf32>
      %c0_90 = arith.constant 0 : index
      %c0_91 = arith.constant 0 : index
      %95 = vector.load %arg11[%c0_90, %c0_91] : memref<1x16xf32, #tpu.memory_space<vmem>>, vector<1x16xf32>
      tpu.vector_store %arg11[%c0_90, %c0_91], %94 {strides = array<i32>} : memref<1x16xf32, #tpu.memory_space<vmem>>, vector<1x16xf32>,
    } else {
    }
    %c7_i32 = arith.constant 7 : i32
    %90 = arith.cmpi eq, %arg1, %c7_i32 : i32
    %91 = arith.extui %90 : i1 to i32
    %c0_i32_87 = arith.constant 0 : i32
    %92 = arith.cmpi ne, %91, %c0_i32_87 : i32
    scf.if %92 {
      %c0_88 = arith.constant 0 : index
      %c0_89 = arith.constant 0 : index
      %93 = vector.load %arg11[%c0_88, %c0_89] : memref<1x16xf32, #tpu.memory_space<vmem>>, vector<1x16xf32>
      %cst_90 = arith.constant 1.562500e-02 : f32
      %94 = vector.broadcast %cst_90 : f32 to vector<1x16xf32>
      %95 = arith.mulf %93, %94 : vector<1x16xf32>
      %c0_91 = arith.constant 0 : index
      %c0_92 = arith.constant 0 : index
      %96 = vector.load %arg5[%c0_91, %c0_92] : memref<16x4xf32, #tpu.memory_space<vmem>>, vector<16x4xf32>
      %cst_93 = arith.constant dense<0.000000e+00> : vector<1x4xf32>
      %97 = tpu.matmul %95, %96, %cst_93 {dimension_numbers = #tpu.dot_dimension_numbers<[1], [0], [0], [1], [0, 0, 1, 1], [], []>} : vector<1x16xf32>, vector<16x4xf32>, vector<1x4xf32> -> vector<1x4xf32>
      %c0_94 = arith.constant 0 : index
      %c0_95 = arith.constant 0 : index
      %98 = vector.load %arg6[%c0_94, %c0_95] : memref<1x4xf32, #tpu.memory_space<vmem>>, vector<1x4xf32>
      %99 = arith.addf %97, %98 : vector<1x4xf32>
      %cst_96 = arith.constant 0.000000e+00 : f32
      %100 = vector.broadcast %cst_96 : f32 to vector<1x4xf32>
      %101 = arith.maximumf %99, %100 : vector<1x4xf32>
      %c0_97 = arith.constant 0 : index
      %c0_98 = arith.constant 0 : index
      %102 = vector.load %arg7[%c0_97, %c0_98] : memref<4x16xf32, #tpu.memory_space<vmem>>, vector<4x16xf32>
      %cst_99 = arith.constant dense<0.000000e+00> : vector<1x16xf32>
      %103 = tpu.matmul %101, %102, %cst_99 {dimension_numbers = #tpu.dot_dimension_numbers<[1], [0], [0], [1], [0, 0, 1, 1], [], []>} : vector<1x4xf32>, vector<4x16xf32>, vector<1x16xf32> -> vector<1x16xf32>
      %c0_100 = arith.constant 0 : index
      %c0_101 = arith.constant 0 : index
      %104 = vector.load %arg8[%c0_100, %c0_101] : memref<1x16xf32, #tpu.memory_space<vmem>>, vector<1x16xf32>
      %105 = arith.addf %103, %104 : vector<1x16xf32>
      %106 = arith.negf %105 : vector<1x16xf32>
      %107 = math.exp %106 : vector<1x16xf32>
      %cst_102 = arith.constant 1.000000e+00 : f32
      %108 = vector.broadcast %cst_102 : f32 to vector<1x16xf32>
      %109 = arith.addf %108, %107 : vector<1x16xf32>
      %110 = arith.divf %108, %109 : vector<1x16xf32>
      %111 = vector.shape_cast %110 : vector<1x16xf32> to vector<1x1x16xf32>
      %c0_103 = arith.constant 0 : index
      %c0_104 = arith.constant 0 : index
      %c0_105 = arith.constant 0 : index
      %112 = vector.load %arg10[%c0_103, %c0_104, %c0_105] : memref<1x1x16xf32, #tpu.memory_space<vmem>>, vector<1x1x16xf32>
      tpu.vector_store %arg10[%c0_103, %c0_104, %c0_105], %111 {strides = array<i32>} : memref<1x1x16xf32, #tpu.memory_space<vmem>>, vector<1x1x16xf32>,
    } else {
    }
    return
  }
  func.func @transform_0(%arg0: i32, %arg1: i32) -> (i32, i32, i32, i32) {
    %c0_i32 = arith.constant 0 : i32
    %c0_i32_0 = arith.constant 0 : i32
    %c0_i32_1 = arith.constant 0 : i32
    %c0_i32_2 = arith.constant 0 : i32
    return %arg0, %c0_i32, %c0_i32_0, %c0_i32_1 : i32, i32, i32, i32
  }
  func.func @transform_1(%arg0: i32, %arg1: i32) -> (i32, i32, i32, i32) {
    %c0_i32 = arith.constant 0 : i32
    %c0_i32_0 = arith.constant 0 : i32
    %c0_i32_1 = arith.constant 0 : i32
    %c0_i32_2 = arith.constant 0 : i32
    %c0_i32_3 = arith.constant 0 : i32
    return %c0_i32, %c0_i32_0, %c0_i32_1, %c0_i32_2 : i32, i32, i32, i32
  }
  func.func @transform_2(%arg0: i32, %arg1: i32) -> (i32, i32) {
    %c0_i32 = arith.constant 0 : i32
    %c0_i32_0 = arith.constant 0 : i32
    %c0_i32_1 = arith.constant 0 : i32
    return %c0_i32, %c0_i32_0 : i32, i32
  }
  func.func @transform_3(%arg0: i32, %arg1: i32) -> (i32, i32) {
    %c0_i32 = arith.constant 0 : i32
    %c0_i32_0 = arith.constant 0 : i32
    %c0_i32_1 = arith.constant 0 : i32
    return %c0_i32, %c0_i32_0 : i32, i32
  }
  func.func @transform_4(%arg0: i32, %arg1: i32) -> (i32, i32) {
    %c0_i32 = arith.constant 0 : i32
    %c0_i32_0 = arith.constant 0 : i32
    %c0_i32_1 = arith.constant 0 : i32
    return %c0_i32, %c0_i32_0 : i32, i32
  }
  func.func @transform_5(%arg0: i32, %arg1: i32) -> (i32, i32) {
    %c0_i32 = arith.constant 0 : i32
    %c0_i32_0 = arith.constant 0 : i32
    %c0_i32_1 = arith.constant 0 : i32
    return %c0_i32, %c0_i32_0 : i32, i32
  }
  func.func @transform_6(%arg0: i32, %arg1: i32) -> (i32, i32) {
    %c0_i32 = arith.constant 0 : i32
    %c0_i32_0 = arith.constant 0 : i32
    %c0_i32_1 = arith.constant 0 : i32
    return %c0_i32, %c0_i32_0 : i32, i32
  }
  func.func @transform_7(%arg0: i32, %arg1: i32) -> (i32, i32, i32, i32) {
    %c0_i32 = arith.constant 0 : i32
    %c0_i32_0 = arith.constant 0 : i32
    %c0_i32_1 = arith.constant 0 : i32
    return %arg0, %arg1, %c0_i32, %c0_i32_0 : i32, i32, i32, i32
  }
  func.func @transform_8(%arg0: i32, %arg1: i32) -> (i32, i32, i32) {
    %c0_i32 = arith.constant 0 : i32
    %c0_i32_0 = arith.constant 0 : i32
    %c0_i32_1 = arith.constant 0 : i32
    return %arg0, %c0_i32, %c0_i32_0 : i32, i32, i32
  }
}

</mosaic_0001>

<bundles_post_ra>
// kernel: regstage_forward.9
= control target key start
LH: loop header
LB: loop body
LE: loop exit
PB: predicated region body
PF: predicated region fallthrough
CT: control target
= control target key end

     0   :  { %vm104_vm0 = vcmask 1043456   ;;  %vm79_vm1 = vcmask 64512   ;;  %vm269_vm2 = vcmask 125952   ;;  %s500_s1 = inlined_call_operand.vmem [shape: bf16[8,16], index: 1, kind: input, shape index: {}]   ;;  %s501_s0 = inlined_call_operand.vmem [shape: bf16[128,8], index: 0, kind: input, shape index: {}]   ;;  %s502_s2 = inlined_call_operand.vmem [shape: f32[1,16], index: 2, kind: input, shape index: {}]   ;;  %s503_s3 = inlined_call_operand.vmem [shape: bf16[128,16], index: 3, kind: output, shape index: {}]  }
   0x1   :  { %v31_v0 = vld [vmem:[%s500_s1] sm:$0xf]  ;;  %v372_v4 = vld [vmem:[%s501_s0 + $0x8] sm:$0xff]   ;;  %v374_v6 = vld [vmem:[%s501_s0 + $0x10] sm:$0xff]  }
   0x2   :  { %368 = vmatprep.subr.msk.bf16.mxu0 %vm104_vm0, %v31_v0  ;;  %369 = vmatprep.subr.msk.bf16.mxu1 %vm104_vm0, %v31_v0  ;;  %v106_v1 = vsel %vm104_vm0, %v31_v0, 0  ;;  %v370_v2 = vld [vmem:[%s501_s0] sm:$0xff]   ;;  %v373_v5 = vld [vmem:[%s501_s0 + $0x28] sm:$0xff]   ;;  %v375_v7 = vld [vmem:[%s501_s0 + $0x30] sm:$0xff]  }
   0x3   :  { %349 = vmatpush3.bf16.msra.mxu0 %v106_v1  ;;  %367 = vmatpush3.bf16.msra.mxu1 %v106_v1  ;;  %v371_v3 = vld [vmem:[%s501_s0 + $0x20] sm:$0xff]   ;;  %v376_v8 = vld [vmem:[%s501_s0 + $0x18] sm:$0xff]  }
   0x4   :  { %350 = vmatprep.mubr.msk.bf16.mxu0 %vm79_vm1, %v370_v2  ;;  %358 = vmatprep.mubr.msk.bf16.mxu1 %vm79_vm1, %v371_v3  ;;  %v377_v9 = vld [vmem:[%s501_s0 + $0x38] sm:$0xff]   ;;  %v290_v10 = vld [vmem:[%s502_s2] ss:$0 sm:$0xff] }
   0x6   :  { %351 = vmatmul.mubr.msk.bf16.vlgmr.msra.gmra.mrb[0].mxu0 %vm79_vm1, %v372_v4  ;;  %359 = vmatmul.mubr.msk.bf16.vlgmr.msra.gmra.mrb[0].mxu1 %vm79_vm1, %v373_v5 }
   0x7   :  { %354 = vmatprep.mubr.msk.bf16.mxu0 %vm79_vm1, %v374_v6  ;;  %362 = vmatprep.mubr.msk.bf16.mxu1 %vm79_vm1, %v375_v7 }
   0xe   :  { %355 = vmatmul.mubr.msk.bf16.gmra.mrb[4].mxu0 %vm79_vm1, %v376_v8  ;;  %363 = vmatmul.mubr.msk.bf16.gmra.mrb[4].mxu1 %vm79_vm1, %v377_v9 }
  0xd9   :  { %v352_v11 = vpop.f32.mrb[0].mxu0  ;;  %v360_v13 = vpop.f32.mrb[0].mxu1 }
  0xda   :  { %v151_v12 = vadd.f32 %v352_v11, %v290_v10  ;;  %v142_v14 = vpop.f32.mrb[1].mxu0  ;;  %v183_v15 = vadd.f32 %v360_v13, %v290_v10  ;;  %v174_v17 = vpop.f32.mrb[1].mxu1 }
  0xdb   :  { %v143_v16 = vadd.f32 %v290_v10, %v142_v14  ;;  %v353_v18 = vpop.f32.mrb[2].mxu0  ;;  %v175_v20 = vadd.f32 %v290_v10, %v174_v17  ;;  %v361_v22 = vpop.f32.mrb[2].mxu1 }
  0xdc   :  { %v325_v19 = vpack.c.bf16 %v151_v12, %v151_v12  ;;  %v154_v21 = vadd.f32 %v353_v18, %v290_v10  ;;  %v145_v23 = vpop.f32.mrb[3].mxu0  ;;  %v333_v24 = vpack.c.bf16 %v183_v15, %v183_v15  ;;  %v186_v26 = vadd.f32 %v361_v22, %v290_v10  ;;  %v177_v28 = vpop.f32.mrb[3].mxu1 }
  0xdd   :  { %v323_v25 = vpack.c.bf16 %v143_v16, %v143_v16  ;;  %v146_v27 = vadd.f32 %v290_v10, %v145_v23  ;;  %v331_v29 = vpack.c.bf16 %v175_v20, %v175_v20  ;;  %v178_v31 = vadd.f32 %v290_v10, %v177_v28 }
  0xde   :  { %272 = vst.msk [vmem:[%s503_s3 + $0x8] sm:$0xf] %vm269_vm2, %v325_v19  ;;  %v326_v30 = vpack.c.bf16 %v154_v21, %v154_v21  ;;  %280 = vst.msk [vmem:[%s503_s3 + $0x28] sm:$0xf] %vm269_vm2, %v333_v24  ;;  %v334_v32 = vpack.c.bf16 %v186_v26, %v186_v26 }
  0xdf   :  { %270 = vst.msk [vmem:[%s503_s3] sm:$0xf] %vm269_vm2, %v323_v25  ;;  %v324_v33 = vpack.c.bf16 %v146_v27, %v146_v27  ;;  %278 = vst.msk [vmem:[%s503_s3 + $0x20] sm:$0xf] %vm269_vm2, %v331_v29  ;;  %v332_v34 = vpack.c.bf16 %v178_v31, %v178_v31 }
  0xe0   :  { %273 = vst.msk [vmem:[%s503_s3 + $0xc] sm:$0xf] %vm269_vm2, %v326_v30  ;;  %281 = vst.msk [vmem:[%s503_s3 + $0x2c] sm:$0xf] %vm269_vm2, %v334_v32 }
  0xe1   :  { %271 = vst.msk [vmem:[%s503_s3 + $0x4] sm:$0xf] %vm269_vm2, %v324_v33  ;;  %v356_v35 = vpop.f32.mrb[4].mxu0  ;;  %279 = vst.msk [vmem:[%s503_s3 + $0x24] sm:$0xf] %vm269_vm2, %v332_v34  ;;  %v364_v37 = vpop.f32.mrb[4].mxu1 }
  0xe2   :  { %v167_v36 = vadd.f32 %v356_v35, %v290_v10  ;;  %v158_v38 = vpop.f32.mrb[5].mxu0  ;;  %v199_v39 = vadd.f32 %v364_v37, %v290_v10  ;;  %v190_v41 = vpop.f32.mrb[5].mxu1 }
  0xe3   :  { %v159_v40 = vadd.f32 %v290_v10, %v158_v38  ;;  %v357_v42 = vpop.f32.mrb[6].mxu0  ;;  %v191_v44 = vadd.f32 %v290_v10, %v190_v41  ;;  %v365_v46 = vpop.f32.mrb[6].mxu1 }
  0xe4   :  { %v329_v43 = vpack.c.bf16 %v167_v36, %v167_v36  ;;  %v170_v45 = vadd.f32 %v357_v42, %v290_v10  ;;  %v161_v47 = vpop.f32.mrb[7].mxu0  ;;  %v337_v48 = vpack.c.bf16 %v199_v39, %v199_v39  ;;  %v202_v50 = vadd.f32 %v365_v46, %v290_v10  ;;  %v193_v52 = vpop.f32.mrb[7].mxu1 }
  0xe5   :  { %v327_v49 = vpack.c.bf16 %v159_v40, %v159_v40  ;;  %v162_v51 = vadd.f32 %v290_v10, %v161_v47  ;;  %v335_v53 = vpack.c.bf16 %v191_v44, %v191_v44  ;;  %v194_v55 = vadd.f32 %v290_v10, %v193_v52 }
  0xe6   :  { %276 = vst.msk [vmem:[%s503_s3 + $0x18] sm:$0xf] %vm269_vm2, %v329_v43  ;;  %v330_v54 = vpack.c.bf16 %v170_v45, %v170_v45  ;;  %284 = vst.msk [vmem:[%s503_s3 + $0x38] sm:$0xf] %vm269_vm2, %v337_v48  ;;  %v338_v56 = vpack.c.bf16 %v202_v50, %v202_v50 }
  0xe7   :  { %274 = vst.msk [vmem:[%s503_s3 + $0x10] sm:$0xf] %vm269_vm2, %v327_v49  ;;  %v328_v57 = vpack.c.bf16 %v162_v51, %v162_v51  ;;  %282 = vst.msk [vmem:[%s503_s3 + $0x30] sm:$0xf] %vm269_vm2, %v335_v53  ;;  %v336_v58 = vpack.c.bf16 %v194_v55, %v194_v55 }
  0xe8   :  { %277 = vst.msk [vmem:[%s503_s3 + $0x1c] sm:$0xf] %vm269_vm2, %v330_v54  ;;  %285 = vst.msk [vmem:[%s503_s3 + $0x3c] sm:$0xf] %vm269_vm2, %v338_v56 }
  0xe9   :  { %275 = vst.msk [vmem:[%s503_s3 + $0x14] sm:$0xf] %vm269_vm2, %v328_v57  ;;  %283 = vst.msk [vmem:[%s503_s3 + $0x34] sm:$0xf] %vm269_vm2, %v336_v58 }

// kernel: regstage_forward.7
= control target key start
LH: loop header
LB: loop body
LE: loop exit
PB: predicated region body
PF: predicated region fallthrough
CT: control target
= control target key end

     0   :  { %vm344_vm0 = vcmask 1043456   ;;  %vm247_vm1 = vcmask 64512   ;;  %vm957_vm2 = vcmask 125952   ;;  %s1830_s1 = inlined_call_operand.vmem [shape: bf16[8,16], index: 1, kind: input, shape index: {}]   ;;  %s1831_s0 = inlined_call_operand.vmem [shape: bf16[512,8], index: 0, kind: input, shape index: {}]   ;;  %s1832_s2 = inlined_call_operand.vmem [shape: f32[1,16], index: 2, kind: input, shape index: {}]   ;;  %s1833_s3 = inlined_call_operand.vmem [shape: bf16[512,16], index: 3, kind: output, shape index: {}]  }
   0x1   :  { %v79_v0 = vld [vmem:[%s1830_s1] sm:$0xf]  ;;  %v1324_v4 = vld [vmem:[%s1831_s0 + $0x8] sm:$0xff]   ;;  %v1326_v6 = vld [vmem:[%s1831_s0 + $0x10] sm:$0xff]  }
   0x2   :  { %1320 = vmatprep.subr.msk.bf16.mxu0 %vm344_vm0, %v79_v0  ;;  %1321 = vmatprep.subr.msk.bf16.mxu1 %vm344_vm0, %v79_v0  ;;  %v346_v1 = vsel %vm344_vm0, %v79_v0, 0  ;;  %v1322_v2 = vld [vmem:[%s1831_s0] sm:$0xff]   ;;  %v1325_v5 = vld [vmem:[%s1831_s0 + $0x88] sm:$0xff]   ;;  %v1327_v7 = vld [vmem:[%s1831_s0 + $0x90] sm:$0xff]  }
   0x3   :  { %1253 = vmatpush3.bf16.msra.mxu0 %v346_v1  ;;  %1319 = vmatpush3.bf16.msra.mxu1 %v346_v1  ;;  %v1323_v3 = vld [vmem:[%s1831_s0 + $0x80] sm:$0xff]   ;;  %v1328_v8 = vld [vmem:[%s1831_s0 + $0x18] sm:$0xff]   ;;  %v1332_v12 = vld [vmem:[%s1831_s0 + $0x28] sm:$0xff]  }
   0x4   :  { %1254 = vmatprep.mubr.msk.bf16.mxu0 %vm247_vm1, %v1322_v2  ;;  %1286 = vmatprep.mubr.msk.bf16.mxu1 %vm247_vm1, %v1323_v3  ;;  %v1329_v9 = vld [vmem:[%s1831_s0 + $0x98] sm:$0xff]   ;;  %v1330_v10 = vld [vmem:[%s1831_s0 + $0x20] sm:$0xff]   ;;  %v1333_v13 = vld [vmem:[%s1831_s0 + $0xa8] sm:$0xff]  }
   0x5   :  { %v1331_v11 = vld [vmem:[%s1831_s0 + $0xa0] sm:$0xff]   ;;  %v1334_v14 = vld [vmem:[%s1831_s0 + $0x30] sm:$0xff]   ;;  %v1336_v16 = vld [vmem:[%s1831_s0 + $0x38] sm:$0xff]  }
   0x6   :  { %1255 = vmatmul.mubr.msk.bf16.vlgmr.msra.gmra.mrb[0].mxu0 %vm247_vm1, %v1324_v4  ;;  %1287 = vmatmul.mubr.msk.bf16.vlgmr.msra.gmra.mrb[0].mxu1 %vm247_vm1, %v1325_v5  ;;  %v1335_v15 = vld [vmem:[%s1831_s0 + $0xb0] sm:$0xff]   ;;  %v1337_v17 = vld [vmem:[%s1831_s0 + $0xb8] sm:$0xff]   ;;  %v1338_v18 = vld [vmem:[%s1831_s0 + $0x40] sm:$0xff]  }
   0x7   :  { %1258 = vmatprep.mubr.msk.bf16.mxu0 %vm247_vm1, %v1326_v6  ;;  %1290 = vmatprep.mubr.msk.bf16.mxu1 %vm247_vm1, %v1327_v7  ;;  %v1339_v19 = vld [vmem:[%s1831_s0 + $0xc0] sm:$0xff]   ;;  %v1340_v20 = vld [vmem:[%s1831_s0 + $0x48] sm:$0xff]   ;;  %v1342_v22 = vld [vmem:[%s1831_s0 + $0x50] sm:$0xff]  }
   0x8   :  { %v1341_v21 = vld [vmem:[%s1831_s0 + $0xc8] sm:$0xff]   ;;  %v1343_v23 = vld [vmem:[%s1831_s0 + $0xd0] sm:$0xff]   ;;  %v1344_v24 = vld [vmem:[%s1831_s0 + $0x58] sm:$0xff]  }
   0x9   :  { %v1345_v25 = vld [vmem:[%s1831_s0 + $0xd8] sm:$0xff]   ;;  %v1346_v26 = vld [vmem:[%s1831_s0 + $0x60] sm:$0xff]   ;;  %v1348_v28 = vld [vmem:[%s1831_s0 + $0x68] sm:$0xff]  }
   0xa   :  { %v1347_v27 = vld [vmem:[%s1831_s0 + $0xe0] sm:$0xff]   ;;  %v1349_v29 = vld [vmem:[%s1831_s0 + $0xe8] sm:$0xff]   ;;  %v1350_v30 = vld [vmem:[%s1831_s0 + $0x70] sm:$0xff]  }
   0xb   :  { %v1351_v31 = vld [vmem:[%s1831_s0 + $0xf0] sm:$0xff]   ;;  %v1352_v32 = vld [vmem:[%s1831_s0 + $0x78] sm:$0xff]   ;;  %v1508_v34 = vld [vmem:[%s1832_s2] ss:$0 sm:$0xff] }
   0xc   :  { %v1353_v33 = vld [vmem:[%s1831_s0 + $0xf8] sm:$0xff]  }
   0xe   :  { %1259 = vmatmul.mubr.msk.bf16.gmra.mrb[4].mxu0 %vm247_vm1, %v1328_v8  ;;  %1291 = vmatmul.mubr.msk.bf16.gmra.mrb[4].mxu1 %vm247_vm1, %v1329_v9 }
   0xf   :  { %1262 = vmatprep.mubr.msk.bf16.mxu0 %vm247_vm1, %v1330_v10  ;;  %1294 = vmatprep.mubr.msk.bf16.mxu1 %vm247_vm1, %v1331_v11 }
  0x16   :  { %1263 = vmatmul.mubr.msk.bf16.gmra.mrb[8].mxu0 %vm247_vm1, %v1332_v12  ;;  %1295 = vmatmul.mubr.msk.bf16.gmra.mrb[8].mxu1 %vm247_vm1, %v1333_v13 }
  0x17   :  { %1266 = vmatprep.mubr.msk.bf16.mxu0 %vm247_vm1, %v1334_v14  ;;  %1298 = vmatprep.mubr.msk.bf16.mxu1 %vm247_vm1, %v1335_v15 }
  0x1e   :  { %1267 = vmatmul.mubr.msk.bf16.gmra.mrb[12].mxu0 %vm247_vm1, %v1336_v16  ;;  %1299 = vmatmul.mubr.msk.bf16.gmra.mrb[12].mxu1 %vm247_vm1, %v1337_v17 }
  0x1f   :  { %1270 = vmatprep.mubr.msk.bf16.mxu0 %vm247_vm1, %v1338_v18  ;;  %1302 = vmatprep.mubr.msk.bf16.mxu1 %vm247_vm1, %v1339_v19 }
  0x26   :  { %1271 = vmatmul.mubr.msk.bf16.gmra.mrb[16].mxu0 %vm247_vm1, %v1340_v20  ;;  %1303 = vmatmul.mubr.msk.bf16.gmra.mrb[16].mxu1 %vm247_vm1, %v1341_v21 }
  0x27   :  { %1274 = vmatprep.mubr.msk.bf16.mxu0 %vm247_vm1, %v1342_v22  ;;  %1306 = vmatprep.mubr.msk.bf16.mxu1 %vm247_vm1, %v1343_v23 }
  0x2e   :  { %1275 = vmatmul.mubr.msk.bf16.gmra.mrb[20].mxu0 %vm247_vm1, %v1344_v24  ;;  %1307 = vmatmul.mubr.msk.bf16.gmra.mrb[20].mxu1 %vm247_vm1, %v1345_v25 }
  0x2f   :  { %1278 = vmatprep.mubr.msk.bf16.mxu0 %vm247_vm1, %v1346_v26  ;;  %1310 = vmatprep.mubr.msk.bf16.mxu1 %vm247_vm1, %v1347_v27 }
  0x36   :  { %1279 = vmatmul.mubr.msk.bf16.gmra.mrb[24].mxu0 %vm247_vm1, %v1348_v28  ;;  %1311 = vmatmul.mubr.msk.bf16.gmra.mrb[24].mxu1 %vm247_vm1, %v1349_v29 }
  0x37   :  { %1282 = vmatprep.mubr.msk.bf16.mxu0 %vm247_vm1, %v1350_v30  ;;  %1314 = vmatprep.mubr.msk.bf16.mxu1 %vm247_vm1, %v1351_v31 }
  0x3e   :  { %1283 = vmatmul.mubr.msk.bf16.gmra.mrb[28].mxu0 %vm247_vm1, %v1352_v32  ;;  %1315 = vmatmul.mubr.msk.bf16.gmra.mrb[28].mxu1 %vm247_vm1, %v1353_v33 }
  0xd9   :  { %v1256_v35 = vpop.f32.mrb[0].mxu0  ;;  %v1288_v37 = vpop.f32.mrb[0].mxu1 }
  0xda   :  { %v391_v36 = vadd.f32 %v1256_v35, %v1508_v34  ;;  %v382_v38 = vpop.f32.mrb[1].mxu0  ;;  %v519_v39 = vadd.f32 %v1288_v37, %v1508_v34  ;;  %v510_v41 = vpop.f32.mrb[1].mxu1 }
  0xdb   :  { %v383_v40 = vadd.f32 %v1508_v34, %v382_v38  ;;  %v1257_v42 = vpop.f32.mrb[2].mxu0  ;;  %v511_v44 = vadd.f32 %v1508_v34, %v510_v41  ;;  %v1289_v46 = vpop.f32.mrb[2].mxu1 }
  0xdc   :  { %v639_v43 = vmax.f32 %v391_v36, 0.0  ;;  %v394_v45 = vadd.f32 %v1257_v42, %v1508_v34  ;;  %v385_v47 = vpop.f32.mrb[3].mxu0  ;;  %v671_v48 = vmax.f32 %v519_v39, 0.0  ;;  %v522_v50 = vadd.f32 %v1289_v46, %v1508_v34  ;;  %v513_v52 = vpop.f32.mrb[3].mxu1 }
  0xdd   :  { %v637_v49 = vmax.f32 %v383_v40, 0.0  ;;  %v386_v51 = vadd.f32 %v1508_v34, %v385_v47  ;;  %v669_v54 = vmax.f32 %v511_v44, 0.0  ;;  %v514_v56 = vadd.f32 %v1508_v34, %v513_v52 }
  0xde   :  { %v1157_v53 = vpack.c.bf16 %v639_v43, %v639_v43  ;;  %v640_v55 = vmax.f32 %v394_v45, 0.0  ;;  %v1189_v57 = vpack.c.bf16 %v671_v48, %v671_v48  ;;  %v672_v59 = vmax.f32 %v522_v50, 0.0 }
  0xdf   :  { %v1155_v58 = vpack.c.bf16 %v637_v49, %v637_v49  ;;  %v638_v60 = vmax.f32 %v386_v51, 0.0  ;;  %v1187_v61 = vpack.c.bf16 %v669_v54, %v669_v54  ;;  %v670_v63 = vmax.f32 %v514_v56, 0.0 }
  0xe0   :  { %960 = vst.msk [vmem:[%s1833_s3 + $0x8] sm:$0xf] %vm957_vm2, %v1157_v53  ;;  %v1158_v62 = vpack.c.bf16 %v640_v55, %v640_v55  ;;  %992 = vst.msk [vmem:[%s1833_s3 + $0x88] sm:$0xf] %vm957_vm2, %v1189_v57  ;;  %v1190_v0 = vpack.c.bf16 %v672_v59, %v672_v59 }
  0xe1   :  { %958 = vst.msk [vmem:[%s1833_s3] sm:$0xf] %vm957_vm2, %v1155_v58  ;;  %v1156_v1 = vpack.c.bf16 %v638_v60, %v638_v60  ;;  %v1260_v2 = vpop.f32.mrb[4].mxu0  ;;  %990 = vst.msk [vmem:[%s1833_s3 + $0x80] sm:$0xf] %vm957_vm2, %v1187_v61  ;;  %v1188_v3 = vpack.c.bf16 %v670_v63, %v670_v63  ;;  %v1292_v5 = vpop.f32.mrb[4].mxu1 }
  0xe2   :  { %961 = vst.msk [vmem:[%s1833_s3 + $0xc] sm:$0xf] %vm957_vm2, %v1158_v62  ;;  %v407_v4 = vadd.f32 %v1260_v2, %v1508_v34  ;;  %v398_v6 = vpop.f32.mrb[5].mxu0  ;;  %993 = vst.msk [vmem:[%s1833_s3 + $0x8c] sm:$0xf] %vm957_vm2, %v1190_v0  ;;  %v535_v7 = vadd.f32 %v1292_v5, %v1508_v34  ;;  %v526_v9 = vpop.f32.mrb[5].mxu1 }
  0xe3   :  { %959 = vst.msk [vmem:[%s1833_s3 + $0x4] sm:$0xf] %vm957_vm2, %v1156_v1  ;;  %v399_v8 = vadd.f32 %v1508_v34, %v398_v6  ;;  %v1261_v10 = vpop.f32.mrb[6].mxu0  ;;  %991 = vst.msk [vmem:[%s1833_s3 + $0x84] sm:$0xf] %vm957_vm2, %v1188_v3  ;;  %v527_v12 = vadd.f32 %v1508_v34, %v526_v9  ;;  %v1293_v14 = vpop.f32.mrb[6].mxu1 }
  0xe4   :  { %v643_v11 = vmax.f32 %v407_v4, 0.0  ;;  %v410_v13 = vadd.f32 %v1261_v10, %v1508_v34  ;;  %v401_v15 = vpop.f32.mrb[7].mxu0  ;;  %v675_v16 = vmax.f32 %v535_v7, 0.0  ;;  %v538_v18 = vadd.f32 %v1293_v14, %v1508_v34  ;;  %v529_v20 = vpop.f32.mrb[7].mxu1 }
  0xe5   :  { %v641_v17 = vmax.f32 %v399_v8, 0.0  ;;  %v402_v19 = vadd.f32 %v1508_v34, %v401_v15  ;;  %v673_v22 = vmax.f32 %v527_v12, 0.0  ;;  %v530_v24 = vadd.f32 %v1508_v34, %v529_v20 }
  0xe6   :  { %v1161_v21 = vpack.c.bf16 %v643_v11, %v643_v11  ;;  %v644_v23 = vmax.f32 %v410_v13, 0.0  ;;  %v1193_v25 = vpack.c.bf16 %v675_v16, %v675_v16  ;;  %v676_v27 = vmax.f32 %v538_v18, 0.0 }
  0xe7   :  { %v1159_v26 = vpack.c.bf16 %v641_v17, %v641_v17  ;;  %v642_v28 = vmax.f32 %v402_v19, 0.0  ;;  %v1191_v29 = vpack.c.bf16 %v673_v22, %v673_v22  ;;  %v674_v31 = vmax.f32 %v530_v24, 0.0 }
  0xe8   :  { %964 = vst.msk [vmem:[%s1833_s3 + $0x18] sm:$0xf] %vm957_vm2, %v1161_v21  ;;  %v1162_v30 = vpack.c.bf16 %v644_v23, %v644_v23  ;;  %996 = vst.msk [vmem:[%s1833_s3 + $0x98] sm:$0xf] %vm957_vm2, %v1193_v25  ;;  %v1194_v32 = vpack.c.bf16 %v676_v27, %v676_v27 }
  0xe9   :  { %962 = vst.msk [vmem:[%s1833_s3 + $0x10] sm:$0xf] %vm957_vm2, %v1159_v26  ;;  %v1160_v33 = vpack.c.bf16 %v642_v28, %v642_v28  ;;  %v1264_v35 = vpop.f32.mrb[8].mxu0  ;;  %994 = vst.msk [vmem:[%s1833_s3 + $0x90] sm:$0xf] %vm957_vm2, %v1191_v29  ;;  %v1192_v36 = vpack.c.bf16 %v674_v31, %v674_v31  ;;  %v1296_v38 = vpop.f32.mrb[8].mxu1 }
  0xea   :  { %965 = vst.msk [vmem:[%s1833_s3 + $0x1c] sm:$0xf] %vm957_vm2, %v1162_v30  ;;  %v423_v37 = vadd.f32 %v1264_v35, %v1508_v34  ;;  %v414_v39 = vpop.f32.mrb[9].mxu0  ;;  %997 = vst.msk [vmem:[%s1833_s3 + $0x9c] sm:$0xf] %vm957_vm2, %v1194_v32  ;;  %v551_v40 = vadd.f32 %v1296_v38, %v1508_v34  ;;  %v542_v42 = vpop.f32.mrb[9].mxu1 }
  0xeb   :  { %963 = vst.msk [vmem:[%s1833_s3 + $0x14] sm:$0xf] %vm957_vm2, %v1160_v33  ;;  %v415_v41 = vadd.f32 %v1508_v34, %v414_v39  ;;  %v1265_v43 = vpop.f32.mrb[10].mxu0  ;;  %995 = vst.msk [vmem:[%s1833_s3 + $0x94] sm:$0xf] %vm957_vm2, %v1192_v36  ;;  %v543_v45 = vadd.f32 %v1508_v34, %v542_v42  ;;  %v1297_v47 = vpop.f32.mrb[10].mxu1 }
  0xec   :  { %v647_v44 = vmax.f32 %v423_v37, 0.0  ;;  %v426_v46 = vadd.f32 %v1265_v43, %v1508_v34  ;;  %v417_v48 = vpop.f32.mrb[11].mxu0  ;;  %v679_v49 = vmax.f32 %v551_v40, 0.0  ;;  %v554_v51 = vadd.f32 %v1297_v47, %v1508_v34  ;;  %v545_v53 = vpop.f32.mrb[11].mxu1 }
  0xed   :  { %v645_v50 = vmax.f32 %v415_v41, 0.0  ;;  %v418_v52 = vadd.f32 %v1508_v34, %v417_v48  ;;  %v677_v55 = vmax.f32 %v543_v45, 0.0  ;;  %v546_v57 = vadd.f32 %v1508_v34, %v545_v53 }
  0xee   :  { %v1165_v54 = vpack.c.bf16 %v647_v44, %v647_v44  ;;  %v648_v56 = vmax.f32 %v426_v46, 0.0  ;;  %v1197_v58 = vpack.c.bf16 %v679_v49, %v679_v49  ;;  %v680_v60 = vmax.f32 %v554_v51, 0.0 }
  0xef   :  { %v1163_v59 = vpack.c.bf16 %v645_v50, %v645_v50  ;;  %v646_v61 = vmax.f32 %v418_v52, 0.0  ;;  %v1195_v62 = vpack.c.bf16 %v677_v55, %v677_v55  ;;  %v678_v0 = vmax.f32 %v546_v57, 0.0 }
  0xf0   :  { %968 = vst.msk [vmem:[%s1833_s3 + $0x28] sm:$0xf] %vm957_vm2, %v1165_v54  ;;  %v1166_v63 = vpack.c.bf16 %v648_v56, %v648_v56  ;;  %1000 = vst.msk [vmem:[%s1833_s3 + $0xa8] sm:$0xf] %vm957_vm2, %v1197_v58  ;;  %v1198_v1 = vpack.c.bf16 %v680_v60, %v680_v60 }
  0xf1   :  { %966 = vst.msk [vmem:[%s1833_s3 + $0x20] sm:$0xf] %vm957_vm2, %v1163_v59  ;;  %v1164_v2 = vpack.c.bf16 %v646_v61, %v646_v61  ;;  %v1268_v3 = vpop.f32.mrb[12].mxu0  ;;  %998 = vst.msk [vmem:[%s1833_s3 + $0xa0] sm:$0xf] %vm957_vm2, %v1195_v62  ;;  %v1196_v4 = vpack.c.bf16 %v678_v0, %v678_v0  ;;  %v1300_v6 = vpop.f32.mrb[12].mxu1 }
  0xf2   :  { %969 = vst.msk [vmem:[%s1833_s3 + $0x2c] sm:$0xf] %vm957_vm2, %v1166_v63  ;;  %v439_v5 = vadd.f32 %v1268_v3, %v1508_v34  ;;  %v430_v7 = vpop.f32.mrb[13].mxu0  ;;  %1001 = vst.msk [vmem:[%s1833_s3 + $0xac] sm:$0xf] %vm957_vm2, %v1198_v1  ;;  %v567_v8 = vadd.f32 %v1300_v6, %v1508_v34  ;;  %v558_v10 = vpop.f32.mrb[13].mxu1 }
  0xf3   :  { %967 = vst.msk [vmem:[%s1833_s3 + $0x24] sm:$0xf] %vm957_vm2, %v1164_v2  ;;  %v431_v9 = vadd.f32 %v1508_v34, %v430_v7  ;;  %v1269_v11 = vpop.f32.mrb[14].mxu0  ;;  %999 = vst.msk [vmem:[%s1833_s3 + $0xa4] sm:$0xf] %vm957_vm2, %v1196_v4  ;;  %v559_v13 = vadd.f32 %v1508_v34, %v558_v10  ;;  %v1301_v15 = vpop.f32.mrb[14].mxu1 }
  0xf4   :  { %v651_v12 = vmax.f32 %v439_v5, 0.0  ;;  %v442_v14 = vadd.f32 %v1269_v11, %v1508_v34  ;;  %v433_v16 = vpop.f32.mrb[15].mxu0  ;;  %v683_v17 = vmax.f32 %v567_v8, 0.0  ;;  %v570_v19 = vadd.f32 %v1301_v15, %v1508_v34  ;;  %v561_v21 = vpop.f32.mrb[15].mxu1 }
  0xf5   :  { %v649_v18 = vmax.f32 %v431_v9, 0.0  ;;  %v434_v20 = vadd.f32 %v1508_v34, %v433_v16  ;;  %v681_v23 = vmax.f32 %v559_v13, 0.0  ;;  %v562_v25 = vadd.f32 %v1508_v34, %v561_v21 }
  0xf6   :  { %v1169_v22 = vpack.c.bf16 %v651_v12, %v651_v12  ;;  %v652_v24 = vmax.f32 %v442_v14, 0.0  ;;  %v1201_v26 = vpack.c.bf16 %v683_v17, %v683_v17  ;;  %v684_v28 = vmax.f32 %v570_v19, 0.0 }
  0xf7   :  { %v1167_v27 = vpack.c.bf16 %v649_v18, %v649_v18  ;;  %v650_v29 = vmax.f32 %v434_v20, 0.0  ;;  %v1199_v30 = vpack.c.bf16 %v681_v23, %v681_v23  ;;  %v682_v32 = vmax.f32 %v562_v25, 0.0 }
  0xf8   :  { %972 = vst.msk [vmem:[%s1833_s3 + $0x38] sm:$0xf] %vm957_vm2, %v1169_v22  ;;  %v1170_v31 = vpack.c.bf16 %v652_v24, %v652_v24  ;;  %1004 = vst.msk [vmem:[%s1833_s3 + $0xb8] sm:$0xf] %vm957_vm2, %v1201_v26  ;;  %v1202_v33 = vpack.c.bf16 %v684_v28, %v684_v28 }
  0xf9   :  { %970 = vst.msk [vmem:[%s1833_s3 + $0x30] sm:$0xf] %vm957_vm2, %v1167_v27  ;;  %v1168_v35 = vpack.c.bf16 %v650_v29, %v650_v29  ;;  %v1272_v36 = vpop.f32.mrb[16].mxu0  ;;  %1002 = vst.msk [vmem:[%s1833_s3 + $0xb0] sm:$0xf] %vm957_vm2, %v1199_v30  ;;  %v1200_v37 = vpack.c.bf16 %v682_v32, %v682_v32  ;;  %v1304_v39 = vpop.f32.mrb[16].mxu1 }
  0xfa   :  { %973 = vst.msk [vmem:[%s1833_s3 + $0x3c] sm:$0xf] %vm957_vm2, %v1170_v31  ;;  %v455_v38 = vadd.f32 %v1272_v36, %v1508_v34  ;;  %v446_v40 = vpop.f32.mrb[17].mxu0  ;;  %1005 = vst.msk [vmem:[%s1833_s3 + $0xbc] sm:$0xf] %vm957_vm2, %v1202_v33  ;;  %v583_v41 = vadd.f32 %v1304_v39, %v1508_v34  ;;  %v574_v43 = vpop.f32.mrb[17].mxu1 }
  0xfb   :  { %971 = vst.msk [vmem:[%s1833_s3 + $0x34] sm:$0xf] %vm957_vm2, %v1168_v35  ;;  %v447_v42 = vadd.f32 %v1508_v34, %v446_v40  ;;  %v1273_v44 = vpop.f32.mrb[18].mxu0  ;;  %1003 = vst.msk [vmem:[%s1833_s3 + $0xb4] sm:$0xf] %vm957_vm2, %v1200_v37  ;;  %v575_v46 = vadd.f32 %v1508_v34, %v574_v43  ;;  %v1305_v48 = vpop.f32.mrb[18].mxu1 }
  0xfc   :  { %v655_v45 = vmax.f32 %v455_v38, 0.0  ;;  %v458_v47 = vadd.f32 %v1273_v44, %v1508_v34  ;;  %v449_v49 = vpop.f32.mrb[19].mxu0  ;;  %v687_v50 = vmax.f32 %v583_v41, 0.0  ;;  %v586_v52 = vadd.f32 %v1305_v48, %v1508_v34  ;;  %v577_v54 = vpop.f32.mrb[19].mxu1 }
  0xfd   :  { %v653_v51 = vmax.f32 %v447_v42, 0.0  ;;  %v450_v53 = vadd.f32 %v1508_v34, %v449_v49  ;;  %v685_v56 = vmax.f32 %v575_v46, 0.0  ;;  %v578_v58 = vadd.f32 %v1508_v34, %v577_v54 }
  0xfe   :  { %v1173_v55 = vpack.c.bf16 %v655_v45, %v655_v45  ;;  %v656_v57 = vmax.f32 %v458_v47, 0.0  ;;  %v1205_v59 = vpack.c.bf16 %v687_v50, %v687_v50  ;;  %v688_v61 = vmax.f32 %v586_v52, 0.0 }
  0xff   :  { %v1171_v60 = vpack.c.bf16 %v653_v51, %v653_v51  ;;  %v654_v62 = vmax.f32 %v450_v53, 0.0  ;;  %v1203_v63 = vpack.c.bf16 %v685_v56, %v685_v56  ;;  %v686_v1 = vmax.f32 %v578_v58, 0.0 }
 0x100   :  { %976 = vst.msk [vmem:[%s1833_s3 + $0x48] sm:$0xf] %vm957_vm2, %v1173_v55  ;;  %v1174_v0 = vpack.c.bf16 %v656_v57, %v656_v57  ;;  %1008 = vst.msk [vmem:[%s1833_s3 + $0xc8] sm:$0xf] %vm957_vm2, %v1205_v59  ;;  %v1206_v2 = vpack.c.bf16 %v688_v61, %v688_v61 }
 0x101   :  { %974 = vst.msk [vmem:[%s1833_s3 + $0x40] sm:$0xf] %vm957_vm2, %v1171_v60  ;;  %v1172_v3 = vpack.c.bf16 %v654_v62, %v654_v62  ;;  %v1276_v4 = vpop.f32.mrb[20].mxu0  ;;  %1006 = vst.msk [vmem:[%s1833_s3 + $0xc0] sm:$0xf] %vm957_vm2, %v1203_v63  ;;  %v1204_v5 = vpack.c.bf16 %v686_v1, %v686_v1  ;;  %v1308_v7 = vpop.f32.mrb[20].mxu1 }
 0x102   :  { %977 = vst.msk [vmem:[%s1833_s3 + $0x4c] sm:$0xf] %vm957_vm2, %v1174_v0  ;;  %v471_v6 = vadd.f32 %v1276_v4, %v1508_v34  ;;  %v462_v8 = vpop.f32.mrb[21].mxu0  ;;  %1009 = vst.msk [vmem:[%s1833_s3 + $0xcc] sm:$0xf] %vm957_vm2, %v1206_v2  ;;  %v599_v9 = vadd.f32 %v1308_v7, %v1508_v34  ;;  %v590_v11 = vpop.f32.mrb[21].mxu1 }
 0x103   :  { %975 = vst.msk [vmem:[%s1833_s3 + $0x44] sm:$0xf] %vm957_vm2, %v1172_v3  ;;  %v463_v10 = vadd.f32 %v1508_v34, %v462_v8  ;;  %v1277_v12 = vpop.f32.mrb[22].mxu0  ;;  %1007 = vst.msk [vmem:[%s1833_s3 + $0xc4] sm:$0xf] %vm957_vm2, %v1204_v5  ;;  %v591_v14 = vadd.f32 %v1508_v34, %v590_v11  ;;  %v1309_v16 = vpop.f32.mrb[22].mxu1 }
 0x104   :  { %v659_v13 = vmax.f32 %v471_v6, 0.0  ;;  %v474_v15 = vadd.f32 %v1277_v12, %v1508_v34  ;;  %v465_v17 = vpop.f32.mrb[23].mxu0  ;;  %v691_v18 = vmax.f32 %v599_v9, 0.0  ;;  %v602_v20 = vadd.f32 %v1309_v16, %v1508_v34  ;;  %v593_v22 = vpop.f32.mrb[23].mxu1 }
 0x105   :  { %v657_v19 = vmax.f32 %v463_v10, 0.0  ;;  %v466_v21 = vadd.f32 %v1508_v34, %v465_v17  ;;  %v689_v24 = vmax.f32 %v591_v14, 0.0  ;;  %v594_v26 = vadd.f32 %v1508_v34, %v593_v22 }
 0x106   :  { %v1177_v23 = vpack.c.bf16 %v659_v13, %v659_v13  ;;  %v660_v25 = vmax.f32 %v474_v15, 0.0  ;;  %v1209_v27 = vpack.c.bf16 %v691_v18, %v691_v18  ;;  %v692_v29 = vmax.f32 %v602_v20, 0.0 }
 0x107   :  { %v1175_v28 = vpack.c.bf16 %v657_v19, %v657_v19  ;;  %v658_v30 = vmax.f32 %v466_v21, 0.0  ;;  %v1207_v31 = vpack.c.bf16 %v689_v24, %v689_v24  ;;  %v690_v33 = vmax.f32 %v594_v26, 0.0 }
 0x108   :  { %980 = vst.msk [vmem:[%s1833_s3 + $0x58] sm:$0xf] %vm957_vm2, %v1177_v23  ;;  %v1178_v32 = vpack.c.bf16 %v660_v25, %v660_v25  ;;  %1012 = vst.msk [vmem:[%s1833_s3 + $0xd8] sm:$0xf] %vm957_vm2, %v1209_v27  ;;  %v1210_v35 = vpack.c.bf16 %v692_v29, %v692_v29 }
 0x109   :  { %978 = vst.msk [vmem:[%s1833_s3 + $0x50] sm:$0xf] %vm957_vm2, %v1175_v28  ;;  %v1176_v36 = vpack.c.bf16 %v658_v30, %v658_v30  ;;  %v1280_v37 = vpop.f32.mrb[24].mxu0  ;;  %1010 = vst.msk [vmem:[%s1833_s3 + $0xd0] sm:$0xf] %vm957_vm2, %v1207_v31  ;;  %v1208_v38 = vpack.c.bf16 %v690_v33, %v690_v33  ;;  %v1312_v40 = vpop.f32.mrb[24].mxu1 }
 0x10a   :  { %981 = vst.msk [vmem:[%s1833_s3 + $0x5c] sm:$0xf] %vm957_vm2, %v1178_v32  ;;  %v487_v39 = vadd.f32 %v1280_v37, %v1508_v34  ;;  %v478_v41 = vpop.f32.mrb[25].mxu0  ;;  %1013 = vst.msk [vmem:[%s1833_s3 + $0xdc] sm:$0xf] %vm957_vm2, %v1210_v35  ;;  %v615_v42 = vadd.f32 %v1312_v40, %v1508_v34  ;;  %v606_v44 = vpop.f32.mrb[25].mxu1 }
 0x10b   :  { %979 = vst.msk [vmem:[%s1833_s3 + $0x54] sm:$0xf] %vm957_vm2, %v1176_v36  ;;  %v479_v43 = vadd.f32 %v1508_v34, %v478_v41  ;;  %v1281_v45 = vpop.f32.mrb[26].mxu0  ;;  %1011 = vst.msk [vmem:[%s1833_s3 + $0xd4] sm:$0xf] %vm957_vm2, %v1208_v38  ;;  %v607_v47 = vadd.f32 %v1508_v34, %v606_v44  ;;  %v1313_v49 = vpop.f32.mrb[26].mxu1 }
 0x10c   :  { %v663_v46 = vmax.f32 %v487_v39, 0.0  ;;  %v490_v48 = vadd.f32 %v1281_v45, %v1508_v34  ;;  %v481_v50 = vpop.f32.mrb[27].mxu0  ;;  %v695_v51 = vmax.f32 %v615_v42, 0.0  ;;  %v618_v53 = vadd.f32 %v1313_v49, %v1508_v34  ;;  %v609_v55 = vpop.f32.mrb[27].mxu1 }
 0x10d   :  { %v661_v52 = vmax.f32 %v479_v43, 0.0  ;;  %v482_v54 = vadd.f32 %v1508_v34, %v481_v50  ;;  %v693_v57 = vmax.f32 %v607_v47, 0.0  ;;  %v610_v59 = vadd.f32 %v1508_v34, %v609_v55 }
 0x10e   :  { %v1181_v56 = vpack.c.bf16 %v663_v46, %v663_v46  ;;  %v664_v58 = vmax.f32 %v490_v48, 0.0  ;;  %v1213_v60 = vpack.c.bf16 %v695_v51, %v695_v51  ;;  %v696_v62 = vmax.f32 %v618_v53, 0.0 }
 0x10f   :  { %v1179_v61 = vpack.c.bf16 %v661_v52, %v661_v52  ;;  %v662_v63 = vmax.f32 %v482_v54, 0.0  ;;  %v1211_v0 = vpack.c.bf16 %v693_v57, %v693_v57  ;;  %v694_v2 = vmax.f32 %v610_v59, 0.0 }
 0x110   :  { %984 = vst.msk [vmem:[%s1833_s3 + $0x68] sm:$0xf] %vm957_vm2, %v1181_v56  ;;  %v1182_v1 = vpack.c.bf16 %v664_v58, %v664_v58  ;;  %1016 = vst.msk [vmem:[%s1833_s3 + $0xe8] sm:$0xf] %vm957_vm2, %v1213_v60  ;;  %v1214_v3 = vpack.c.bf16 %v696_v62, %v696_v62 }
 0x111   :  { %982 = vst.msk [vmem:[%s1833_s3 + $0x60] sm:$0xf] %vm957_vm2, %v1179_v61  ;;  %v1180_v4 = vpack.c.bf16 %v662_v63, %v662_v63  ;;  %v1284_v5 = vpop.f32.mrb[28].mxu0  ;;  %1014 = vst.msk [vmem:[%s1833_s3 + $0xe0] sm:$0xf] %vm957_vm2, %v1211_v0  ;;  %v1212_v6 = vpack.c.bf16 %v694_v2, %v694_v2  ;;  %v1316_v8 = vpop.f32.mrb[28].mxu1 }
 0x112   :  { %985 = vst.msk [vmem:[%s1833_s3 + $0x6c] sm:$0xf] %vm957_vm2, %v1182_v1  ;;  %v503_v7 = vadd.f32 %v1284_v5, %v1508_v34  ;;  %v494_v9 = vpop.f32.mrb[29].mxu0  ;;  %1017 = vst.msk [vmem:[%s1833_s3 + $0xec] sm:$0xf] %vm957_vm2, %v1214_v3  ;;  %v631_v10 = vadd.f32 %v1316_v8, %v1508_v34  ;;  %v622_v12 = vpop.f32.mrb[29].mxu1 }
 0x113   :  { %983 = vst.msk [vmem:[%s1833_s3 + $0x64] sm:$0xf] %vm957_vm2, %v1180_v4  ;;  %v495_v11 = vadd.f32 %v1508_v34, %v494_v9  ;;  %v1285_v13 = vpop.f32.mrb[30].mxu0  ;;  %1015 = vst.msk [vmem:[%s1833_s3 + $0xe4] sm:$0xf] %vm957_vm2, %v1212_v6  ;;  %v623_v15 = vadd.f32 %v1508_v34, %v622_v12  ;;  %v1317_v17 = vpop.f32.mrb[30].mxu1 }
 0x114   :  { %v667_v14 = vmax.f32 %v503_v7, 0.0  ;;  %v506_v16 = vadd.f32 %v1285_v13, %v1508_v34  ;;  %v497_v18 = vpop.f32.mrb[31].mxu0  ;;  %v699_v19 = vmax.f32 %v631_v10, 0.0  ;;  %v634_v21 = vadd.f32 %v1317_v17, %v1508_v34  ;;  %v625_v23 = vpop.f32.mrb[31].mxu1 }
 0x115   :  { %v665_v20 = vmax.f32 %v495_v11, 0.0  ;;  %v498_v22 = vadd.f32 %v1508_v34, %v497_v18  ;;  %v697_v25 = vmax.f32 %v623_v15, 0.0  ;;  %v626_v27 = vadd.f32 %v1508_v34, %v625_v23 }
 0x116   :  { %v1185_v24 = vpack.c.bf16 %v667_v14, %v667_v14  ;;  %v668_v26 = vmax.f32 %v506_v16, 0.0  ;;  %v1217_v28 = vpack.c.bf16 %v699_v19, %v699_v19  ;;  %v700_v30 = vmax.f32 %v634_v21, 0.0 }
 0x117   :  { %v1183_v29 = vpack.c.bf16 %v665_v20, %v665_v20  ;;  %v666_v31 = vmax.f32 %v498_v22, 0.0  ;;  %v1215_v32 = vpack.c.bf16 %v697_v25, %v697_v25  ;;  %v698_v35 = vmax.f32 %v626_v27, 0.0 }
 0x118   :  { %988 = vst.msk [vmem:[%s1833_s3 + $0x78] sm:$0xf] %vm957_vm2, %v1185_v24  ;;  %v1186_v33 = vpack.c.bf16 %v668_v26, %v668_v26  ;;  %1020 = vst.msk [vmem:[%s1833_s3 + $0xf8] sm:$0xf] %vm957_vm2, %v1217_v28  ;;  %v1218_v34 = vpack.c.bf16 %v700_v30, %v700_v30 }
 0x119   :  { %986 = vst.msk [vmem:[%s1833_s3 + $0x70] sm:$0xf] %vm957_vm2, %v1183_v29  ;;  %v1184_v36 = vpack.c.bf16 %v666_v31, %v666_v31  ;;  %1018 = vst.msk [vmem:[%s1833_s3 + $0xf0] sm:$0xf] %vm957_vm2, %v1215_v32  ;;  %v1216_v37 = vpack.c.bf16 %v698_v35, %v698_v35 }
 0x11a   :  { %989 = vst.msk [vmem:[%s1833_s3 + $0x7c] sm:$0xf] %vm957_vm2, %v1186_v33  ;;  %1021 = vst.msk [vmem:[%s1833_s3 + $0xfc] sm:$0xf] %vm957_vm2, %v1218_v34 }
 0x11b   :  { %987 = vst.msk [vmem:[%s1833_s3 + $0x74] sm:$0xf] %vm957_vm2, %v1184_v36  ;;  %1019 = vst.msk [vmem:[%s1833_s3 + $0xf4] sm:$0xf] %vm957_vm2, %v1216_v37 }

// kernel: regstage_forward.10
= control target key start
LH: loop header
LB: loop body
LE: loop exit
PB: predicated region body
PF: predicated region fallthrough
CT: control target
= control target key end

     0   :  { %s803_s18 = smov 0   ;;  %s805_s19 = smov 0   ;;  %s865_s0 = inlined_call_operand.vmem [shape: bf16[2,64,16], index: 0, kind: input, shape index: {}]   ;;  %s866_s1 = inlined_call_operand.vmem [shape: f32[2,1,16], index: 1, kind: input, shape index: {}]   ;;  %s867_s2 = inlined_call_operand.vmem [shape: bf16[16,16], index: 2, kind: input, shape index: {}]   ;;  %s868_s3 = inlined_call_operand.vmem [shape: f32[1,16], index: 3, kind: input, shape index: {}]   ;;  %s869_s4 = inlined_call_operand.vmem [shape: bf16[2,64,16], index: 4, kind: input, shape index: {}]   ;;  %s870_s5 = inlined_call_operand.vmem [shape: bf16[2,64,16], index: 5, kind: output, shape index: {}]  }
   0x1   :  { %s807_s20 = smov 0  }
   0x2 LB: > { %s27_s21 = sadd.s32 1, %s767_s19  ;;  %p634_p0 = scmp.ge.s32.totalorder %s771_s20, 1  ;;  %s771_s20 = sphi %s807_s20, %s15_s20   ;;  %s767_s19 = sphi %s805_s19, %s872_s19   ;;  %s763_s18 = sphi %s803_s18, %s871_s18  }
   0x3   : > { %p29_p1 = scmp.ge.s32.totalorder %s27_s21, 2  ;;  %p233_p2 = scmp.lt.s32.totalorder %s771_s20, 3 }
   0x5   : > { %s874_s21 = smov (%p29_p1, %s27_s21), 0  ;;  %p234_p3 = pnand %p634_p0, %p233_p2 }
   0x6   : > { %v748_v0 = vld [vmem:[%s867_s2] sm:$0xff] (!%p234_p3)   ;;  %p282_p4 = scmp.lt.s32.totalorder (!%p234_p3), %s763_s18, 1  ;;  %vm365_vm0 = vcmask (!%p234_p3), 130048   ;;  %vm507_vm1 = vcmask (!%p234_p3), 125952  }
   0x7   : > { %237 = sbr.rel (%p234_p3) target bundleno = 249 (0xf9), region = 40  ;;  %712 = vmatprep.subr.bf16.mxu0 (!%p234_p3), %v748_v0  ;;  %722 = vmatprep.subr.bf16.mxu1 (!%p234_p3), %v748_v0  ;;  %v642_v30 = vld [vmem:[%s868_s3] ss:$0 sm:$0xff] (!%p234_p3) }
   0x8   : > { %713 = vmatpush3.bf16.msra.mxu0 (!%p234_p3), %v748_v0  ;;  %723 = vmatpush3.bf16.msra.mxu1 (!%p234_p3), %v748_v0 }
   0xe   : > { %s876_s18 = smov (!%p282_p4, %s763_s18), 1 }
   0xf   : > { %s824_s24 = sshll.u32 %s876_s18, 5  ;;  %s293_s27 = scalar_lea.vmem %s866_s1, %s876_s18 }
  0x10   : > { %s289_s30 = scalar_lea.vmem %s865_s0, %s824_s24  ;;  %v641_v1 = vld [vmem:[%s293_s27] ss:$0 sm:$0xff]  ;;  %s302_s8 = scalar_lea.vmem %s869_s4, %s824_s24 }
  0x11   : > { %v670_v2 = vld [vmem:[%s289_s30] sm:$0xff]   ;;  %v702_v3 = vld [vmem:[%s289_s30 + $0x10] sm:$0xff]   ;;  %v701_v4 = vld [vmem:[%s289_s30 + $0x8] sm:$0xff]   ;;  %s312_s13 = scalar_lea.vmem %s870_s5, %s824_s24 }
  0x12   : > { %v671_v5 = vunpack.c.l.bf16 %v670_v2  ;;  %v672_v6 = vunpack.c.h.bf16 %v670_v2  ;;  %v679_v7 = vunpack.c.l.bf16 %v702_v3  ;;  %v680_v8 = vunpack.c.h.bf16 %v702_v3  ;;  %v703_v9 = vld [vmem:[%s289_s30 + $0x18] sm:$0xff]   ;;  %v704_v26 = vld [vmem:[%s302_s8 + $0x8] sm:$0xff]   ;;  %v686_v28 = vld [vmem:[%s302_s8] sm:$0xff]  }
  0x13   : > { %v675_v10 = vunpack.c.l.bf16 %v701_v4  ;;  %v676_v11 = vunpack.c.h.bf16 %v701_v4  ;;  %v683_v12 = vunpack.c.l.bf16 %v703_v9  ;;  %v684_v13 = vunpack.c.h.bf16 %v703_v9  ;;  %v706_v27 = vld [vmem:[%s302_s8 + $0x18] sm:$0xff]   ;;  %v705_v29 = vld [vmem:[%s302_s8 + $0x10] sm:$0xff]  }
  0x14   : > { %v338_v14 = vmul.f32 %v671_v5, %v641_v1  ;;  %v339_v15 = vmul.f32 %v672_v6, %v641_v1  ;;  %v342_v16 = vmul.f32 %v679_v7, %v641_v1  ;;  %v343_v17 = vmul.f32 %v680_v8, %v641_v1 }
  0x15   : > { %v340_v18 = vmul.f32 %v675_v10, %v641_v1  ;;  %v341_v19 = vmul.f32 %v676_v11, %v641_v1  ;;  %v344_v20 = vmul.f32 %v683_v12, %v641_v1  ;;  %v345_v21 = vmul.f32 %v684_v13, %v641_v1 }
  0x16   : > { %v346_v22 = vpack.c.bf16 %v339_v15, %v338_v14  ;;  %v348_v23 = vpack.c.bf16 %v343_v17, %v342_v16  ;;  %v691_v31 = vunpack.c.l.bf16 %v704_v26  ;;  %v699_v32 = vunpack.c.l.bf16 %v706_v27 }
  0x17   : > { %v347_v24 = vpack.c.bf16 %v341_v19, %v340_v18  ;;  %v349_v25 = vpack.c.bf16 %v345_v21, %v344_v20  ;;  %v687_v35 = vunpack.c.l.bf16 %v686_v28  ;;  %v695_v36 = vunpack.c.l.bf16 %v705_v29 }
  0x18   : > { %714 = vmatprep.mubr.msk.bf16.mxu0 %vm365_vm0, %v346_v22  ;;  %718 = vmatprep.mubr.msk.bf16.mxu1 %vm365_vm0, %v348_v23  ;;  %v692_v37 = vunpack.c.h.bf16 %v704_v26  ;;  %v700_v42 = vunpack.c.h.bf16 %v706_v27  ;;  %v688_v43 = vunpack.c.h.bf16 %v686_v28  ;;  %v696_v48 = vunpack.c.h.bf16 %v705_v29 }
  0x19   : > { %715 = vmatmul.mubr.msk.bf16.vlgmr.msra.gmra.mrb[0].mxu0 %vm365_vm0, %v347_v24  ;;  %719 = vmatmul.mubr.msk.bf16.vlgmr.msra.gmra.mrb[0].mxu1 %vm365_vm0, %v349_v25 }
  0xec   : > { %v716_v33 = vpop.f32.mrb[0].mxu0  ;;  %v720_v34 = vpop.f32.mrb[0].mxu1 }
  0xed   : > { %v421_v38 = vadd.f32 %v716_v33, %v642_v30  ;;  %v437_v39 = vadd.f32 %v720_v34, %v642_v30  ;;  %v412_v40 = vpop.f32.mrb[1].mxu0  ;;  %v428_v41 = vpop.f32.mrb[1].mxu1 }
  0xee   : > { %v413_v44 = vadd.f32 %v642_v30, %v412_v40  ;;  %v429_v45 = vadd.f32 %v642_v30, %v428_v41  ;;  %v717_v46 = vpop.f32.mrb[2].mxu0  ;;  %v721_v47 = vpop.f32.mrb[2].mxu1 }
  0xef   : > { %v461_v49 = vadd.f32 %v691_v31, %v421_v38  ;;  %v465_v50 = vadd.f32 %v699_v32, %v437_v39  ;;  %v424_v51 = vadd.f32 %v717_v46, %v642_v30  ;;  %v440_v52 = vadd.f32 %v721_v47, %v642_v30  ;;  %v415_v53 = vpop.f32.mrb[3].mxu0  ;;  %v431_v54 = vpop.f32.mrb[3].mxu1 }
  0xf0   : > { %v459_v55 = vadd.f32 %v687_v35, %v413_v44  ;;  %v463_v56 = vadd.f32 %v695_v36, %v429_v45  ;;  %v416_v57 = vadd.f32 %v642_v30, %v415_v53  ;;  %v432_v58 = vadd.f32 %v642_v30, %v431_v54 }
  0xf1   : > { %v469_v59 = vmax.f32 %v461_v49, 0.0  ;;  %v473_v60 = vmax.f32 %v465_v50, 0.0  ;;  %v462_v61 = vadd.f32 %v692_v37, %v424_v51  ;;  %v466_v62 = vadd.f32 %v700_v42, %v440_v52 }
  0xf2   : > { %v467_v63 = vmax.f32 %v459_v55, 0.0  ;;  %v471_v0 = vmax.f32 %v463_v56, 0.0  ;;  %v460_v1 = vadd.f32 %v688_v43, %v416_v57  ;;  %v464_v2 = vadd.f32 %v696_v48, %v432_v58 }
  0xf3   : > { %v663_v3 = vpack.c.bf16 %v469_v59, %v469_v59  ;;  %v667_v4 = vpack.c.bf16 %v473_v60, %v473_v60  ;;  %v470_v5 = vmax.f32 %v462_v61, 0.0  ;;  %v474_v6 = vmax.f32 %v466_v62, 0.0 }
  0xf4   : > { %v661_v7 = vpack.c.bf16 %v467_v63, %v467_v63  ;;  %v665_v8 = vpack.c.bf16 %v471_v0, %v471_v0  ;;  %v468_v9 = vmax.f32 %v460_v1, 0.0  ;;  %v472_v10 = vmax.f32 %v464_v2, 0.0 }
  0xf5   : > { %510 = vst.msk [vmem:[%s312_s13 + $0x8] sm:$0xf] %vm507_vm1, %v663_v3  ;;  %514 = vst.msk [vmem:[%s312_s13 + $0x18] sm:$0xf] %vm507_vm1, %v667_v4  ;;  %v664_v11 = vpack.c.bf16 %v470_v5, %v470_v5  ;;  %v668_v12 = vpack.c.bf16 %v474_v6, %v474_v6 }
  0xf6   : > { %508 = vst.msk [vmem:[%s312_s13] sm:$0xf] %vm507_vm1, %v661_v7  ;;  %512 = vst.msk [vmem:[%s312_s13 + $0x10] sm:$0xf] %vm507_vm1, %v665_v8  ;;  %v662_v13 = vpack.c.bf16 %v468_v9, %v468_v9  ;;  %v666_v14 = vpack.c.bf16 %v472_v10, %v472_v10 }
  0xf7   : > { %511 = vst.msk [vmem:[%s312_s13 + $0xc] sm:$0xf] %vm507_vm1, %v664_v11  ;;  %515 = vst.msk [vmem:[%s312_s13 + $0x1c] sm:$0xf] %vm507_vm1, %v668_v12 }
  0xf8   : > { %509 = vst.msk [vmem:[%s312_s13 + $0x4] sm:$0xf] %vm507_vm1, %v662_v13  ;;  %513 = vst.msk [vmem:[%s312_s13 + $0x14] sm:$0xf] %vm507_vm1, %v666_v14 }
  0xf9 PF: > { %s15_s20 = sadd.s32 1, %s771_s20   ;;  %s871_s18 = smov %s767_s19 }
  0xfa   : > { %p12_p5 = scmp.ge.s32.totalorder %s15_s20, 4   ;;  %s872_s19 = smov %s874_s21 }
  0xfc   :  { %14 = sbr.rel (!%p12_p5) target bundleno = 2 (0x2), region = 76 }

// kernel: regstage_forward.11
= control target key start
LH: loop header
LB: loop body
LE: loop exit
PB: predicated region body
PF: predicated region fallthrough
CT: control target
= control target key end

     0   :  { %vm86_vm0 = vcmask 130048   ;;  %vm288_vm1 = vcmask 125952   ;;  %s519_s1 = inlined_call_operand.vmem [shape: bf16[16,16], index: 1, kind: input, shape index: {}]   ;;  %s520_s0 = inlined_call_operand.vmem [shape: bf16[128,16], index: 0, kind: input, shape index: {}]   ;;  %s521_s2 = inlined_call_operand.vmem [shape: f32[1,16], index: 2, kind: input, shape index: {}]   ;;  %s522_s3 = inlined_call_operand.vmem [shape: bf16[128,16], index: 3, kind: output, shape index: {}]  }
   0x1   :  { %v388_v0 = vld [vmem:[%s519_s1] sm:$0xff]   ;;  %v391_v3 = vld [vmem:[%s520_s0 + $0x8] sm:$0xff]   ;;  %v393_v5 = vld [vmem:[%s520_s0 + $0x10] sm:$0xff]  }
   0x2   :  { %v389_v1 = vld [vmem:[%s520_s0] sm:$0xff]   ;;  %368 = vmatprep.subr.bf16.mxu0 %v388_v0  ;;  %386 = vmatprep.subr.bf16.mxu1 %v388_v0  ;;  %v392_v4 = vld [vmem:[%s520_s0 + $0x28] sm:$0xff]   ;;  %v394_v6 = vld [vmem:[%s520_s0 + $0x30] sm:$0xff]  }
   0x3   :  { %v390_v2 = vld [vmem:[%s520_s0 + $0x20] sm:$0xff]   ;;  %369 = vmatpush3.bf16.msra.mxu0 %v388_v0  ;;  %387 = vmatpush3.bf16.msra.mxu1 %v388_v0  ;;  %v395_v7 = vld [vmem:[%s520_s0 + $0x18] sm:$0xff]  }
   0x4   :  { %370 = vmatprep.mubr.msk.bf16.mxu0 %vm86_vm0, %v389_v1  ;;  %378 = vmatprep.mubr.msk.bf16.mxu1 %vm86_vm0, %v390_v2  ;;  %v396_v8 = vld [vmem:[%s520_s0 + $0x38] sm:$0xff]   ;;  %v309_v9 = vld [vmem:[%s521_s2] ss:$0 sm:$0xff] }
   0x6   :  { %371 = vmatmul.mubr.msk.bf16.vlgmr.msra.gmra.mrb[0].mxu0 %vm86_vm0, %v391_v3  ;;  %379 = vmatmul.mubr.msk.bf16.vlgmr.msra.gmra.mrb[0].mxu1 %vm86_vm0, %v392_v4 }
   0x7   :  { %374 = vmatprep.mubr.msk.bf16.mxu0 %vm86_vm0, %v393_v5  ;;  %382 = vmatprep.mubr.msk.bf16.mxu1 %vm86_vm0, %v394_v6 }
   0xe   :  { %375 = vmatmul.mubr.msk.bf16.gmra.mrb[4].mxu0 %vm86_vm0, %v395_v7  ;;  %383 = vmatmul.mubr.msk.bf16.gmra.mrb[4].mxu1 %vm86_vm0, %v396_v8 }
  0xd9   :  { %v372_v10 = vpop.f32.mrb[0].mxu0  ;;  %v380_v11 = vpop.f32.mrb[0].mxu1 }
  0xda   :  { %v154_v12 = vadd.f32 %v372_v10, %v309_v9  ;;  %v186_v13 = vadd.f32 %v380_v11, %v309_v9  ;;  %v145_v14 = vpop.f32.mrb[1].mxu0  ;;  %v177_v15 = vpop.f32.mrb[1].mxu1 }
  0xdb   :  { %v146_v16 = vadd.f32 %v309_v9, %v145_v14  ;;  %v178_v17 = vadd.f32 %v309_v9, %v177_v15  ;;  %v373_v18 = vpop.f32.mrb[2].mxu0  ;;  %v381_v19 = vpop.f32.mrb[2].mxu1 }
  0xdc   :  { %v210_v20 = vmax.f32 %v154_v12, 0.0  ;;  %v218_v21 = vmax.f32 %v186_v13, 0.0  ;;  %v157_v22 = vadd.f32 %v373_v18, %v309_v9  ;;  %v189_v23 = vadd.f32 %v381_v19, %v309_v9  ;;  %v148_v24 = vpop.f32.mrb[3].mxu0  ;;  %v180_v25 = vpop.f32.mrb[3].mxu1 }
  0xdd   :  { %v208_v26 = vmax.f32 %v146_v16, 0.0  ;;  %v216_v27 = vmax.f32 %v178_v17, 0.0  ;;  %v149_v28 = vadd.f32 %v309_v9, %v148_v24  ;;  %v181_v29 = vadd.f32 %v309_v9, %v180_v25 }
  0xde   :  { %v345_v30 = vpack.c.bf16 %v210_v20, %v210_v20  ;;  %v353_v31 = vpack.c.bf16 %v218_v21, %v218_v21  ;;  %v211_v32 = vmax.f32 %v157_v22, 0.0  ;;  %v219_v33 = vmax.f32 %v189_v23, 0.0 }
  0xdf   :  { %v343_v34 = vpack.c.bf16 %v208_v26, %v208_v26  ;;  %v351_v35 = vpack.c.bf16 %v216_v27, %v216_v27  ;;  %v209_v36 = vmax.f32 %v149_v28, 0.0  ;;  %v217_v37 = vmax.f32 %v181_v29, 0.0 }
  0xe0   :  { %291 = vst.msk [vmem:[%s522_s3 + $0x8] sm:$0xf] %vm288_vm1, %v345_v30  ;;  %299 = vst.msk [vmem:[%s522_s3 + $0x28] sm:$0xf] %vm288_vm1, %v353_v31  ;;  %v346_v38 = vpack.c.bf16 %v211_v32, %v211_v32  ;;  %v354_v39 = vpack.c.bf16 %v219_v33, %v219_v33 }
  0xe1   :  { %289 = vst.msk [vmem:[%s522_s3] sm:$0xf] %vm288_vm1, %v343_v34  ;;  %297 = vst.msk [vmem:[%s522_s3 + $0x20] sm:$0xf] %vm288_vm1, %v351_v35  ;;  %v344_v40 = vpack.c.bf16 %v209_v36, %v209_v36  ;;  %v352_v41 = vpack.c.bf16 %v217_v37, %v217_v37  ;;  %v376_v42 = vpop.f32.mrb[4].mxu0  ;;  %v384_v43 = vpop.f32.mrb[4].mxu1 }
  0xe2   :  { %292 = vst.msk [vmem:[%s522_s3 + $0xc] sm:$0xf] %vm288_vm1, %v346_v38  ;;  %300 = vst.msk [vmem:[%s522_s3 + $0x2c] sm:$0xf] %vm288_vm1, %v354_v39  ;;  %v170_v44 = vadd.f32 %v376_v42, %v309_v9  ;;  %v202_v45 = vadd.f32 %v384_v43, %v309_v9  ;;  %v161_v46 = vpop.f32.mrb[5].mxu0  ;;  %v193_v47 = vpop.f32.mrb[5].mxu1 }
  0xe3   :  { %290 = vst.msk [vmem:[%s522_s3 + $0x4] sm:$0xf] %vm288_vm1, %v344_v40  ;;  %298 = vst.msk [vmem:[%s522_s3 + $0x24] sm:$0xf] %vm288_vm1, %v352_v41  ;;  %v162_v48 = vadd.f32 %v309_v9, %v161_v46  ;;  %v194_v49 = vadd.f32 %v309_v9, %v193_v47  ;;  %v377_v50 = vpop.f32.mrb[6].mxu0  ;;  %v385_v51 = vpop.f32.mrb[6].mxu1 }
  0xe4   :  { %v214_v52 = vmax.f32 %v170_v44, 0.0  ;;  %v222_v53 = vmax.f32 %v202_v45, 0.0  ;;  %v173_v54 = vadd.f32 %v377_v50, %v309_v9  ;;  %v205_v55 = vadd.f32 %v385_v51, %v309_v9  ;;  %v164_v56 = vpop.f32.mrb[7].mxu0  ;;  %v196_v57 = vpop.f32.mrb[7].mxu1 }
  0xe5   :  { %v212_v58 = vmax.f32 %v162_v48, 0.0  ;;  %v220_v59 = vmax.f32 %v194_v49, 0.0  ;;  %v165_v60 = vadd.f32 %v309_v9, %v164_v56  ;;  %v197_v61 = vadd.f32 %v309_v9, %v196_v57 }
  0xe6   :  { %v349_v62 = vpack.c.bf16 %v214_v52, %v214_v52  ;;  %v357_v63 = vpack.c.bf16 %v222_v53, %v222_v53  ;;  %v215_v0 = vmax.f32 %v173_v54, 0.0  ;;  %v223_v1 = vmax.f32 %v205_v55, 0.0 }
  0xe7   :  { %v347_v2 = vpack.c.bf16 %v212_v58, %v212_v58  ;;  %v355_v3 = vpack.c.bf16 %v220_v59, %v220_v59  ;;  %v213_v4 = vmax.f32 %v165_v60, 0.0  ;;  %v221_v5 = vmax.f32 %v197_v61, 0.0 }
  0xe8   :  { %295 = vst.msk [vmem:[%s522_s3 + $0x18] sm:$0xf] %vm288_vm1, %v349_v62  ;;  %303 = vst.msk [vmem:[%s522_s3 + $0x38] sm:$0xf] %vm288_vm1, %v357_v63  ;;  %v350_v6 = vpack.c.bf16 %v215_v0, %v215_v0  ;;  %v358_v7 = vpack.c.bf16 %v223_v1, %v223_v1 }
  0xe9   :  { %293 = vst.msk [vmem:[%s522_s3 + $0x10] sm:$0xf] %vm288_vm1, %v347_v2  ;;  %301 = vst.msk [vmem:[%s522_s3 + $0x30] sm:$0xf] %vm288_vm1, %v355_v3  ;;  %v348_v8 = vpack.c.bf16 %v213_v4, %v213_v4  ;;  %v356_v9 = vpack.c.bf16 %v221_v5, %v221_v5 }
  0xea   :  { %296 = vst.msk [vmem:[%s522_s3 + $0x1c] sm:$0xf] %vm288_vm1, %v350_v6  ;;  %304 = vst.msk [vmem:[%s522_s3 + $0x3c] sm:$0xf] %vm288_vm1, %v358_v7 }
  0xeb   :  { %294 = vst.msk [vmem:[%s522_s3 + $0x14] sm:$0xf] %vm288_vm1, %v348_v8  ;;  %302 = vst.msk [vmem:[%s522_s3 + $0x34] sm:$0xf] %vm288_vm1, %v356_v9 }

// kernel: regstage_forward.8
= control target key start
LH: loop header
LB: loop body
LE: loop exit
PB: predicated region body
PF: predicated region fallthrough
CT: control target
= control target key end

     0   :  { %s1571_s27 = smov 0   ;;  %s1573_s28 = smov 0   ;;  %s1741_s0 = inlined_call_operand.vmem [shape: bf16[8,9,9,16], index: 0, kind: input, shape index: {}]   ;;  %s1742_s1 = inlined_call_operand.vmem [shape: bf16[3,3,16,16], index: 1, kind: input, shape index: {}]   ;;  %s1743_s2 = inlined_call_operand.vmem [shape: f32[1,16], index: 2, kind: input, shape index: {}]   ;;  %s1744_s3 = inlined_call_operand.vmem [shape: f32[16,2], index: 3, kind: input, shape index: {}]   ;;  %s1745_s4 = inlined_call_operand.vmem [shape: f32[1,2], index: 4, kind: input, shape index: {}]   ;;  %s1746_s5 = inlined_call_operand.vmem [shape: f32[2,16], index: 5, kind: input, shape index: {}]   ;;  %s1747_s6 = inlined_call_operand.vmem [shape: f32[1,16], index: 6, kind: input, shape index: {}]   ;;  %s1748_s7 = inlined_call_operand.vmem [shape: bf16[2,8,8,16], index: 7, kind: output, shape index: {0}]   ;;  %s1749_s8 = inlined_call_operand.vmem [shape: f32[2,1,16], index: 8, kind: output, shape index: {1}]  }
   0x1   :  { %s1575_s29 = smov 0   ;;  %s1577_s30 = smov 0  }
   0x2   :  { %s1579_s9 = smov 0  }
   0x3 LB: > { %s28_s10 = sadd.s32 1, %s1511_s29  ;;  %s31_s11 = sadd.s32 1, %s1515_s30  ;;  %s1519_s9 = sphi %s1579_s9, %s19_s9   ;;  %s1515_s30 = sphi %s1577_s30, %s1753_s30   ;;  %s1511_s29 = sphi %s1575_s29, %s1752_s29   ;;  %s1507_s28 = sphi %s1573_s28, %s1751_s28   ;;  %s1503_s27 = sphi %s1571_s27, %s1750_s27  }
   0x4   : > { %p29_p0 = scmp.ge.s32.totalorder %s28_s10, 8  ;;  %p1220_p1 = scmp.ge.s32.totalorder %s1519_s9, 1 }
   0x5   : > { %p281_p2 = scmp.lt.s32.totalorder %s1519_s9, 17 }
   0x6   : > { %s1755_s10 = smov (%p29_p0, %s28_s10), 0  ;;  %s1757_s11 = smov (!%p29_p0, %s31_s11), %s1515_s30 }
   0x7   : > { %p282_p3 = pnand %p1220_p1, %p281_p2  ;;  %p33_p4 = scmp.ge.s32.totalorder %s1757_s11, 2 }
   0x8   : > { %v1465_v0 = vld [vmem:[%s1742_s1 + $0x20] sm:$0xff] (!%p282_p3)   ;;  %v1521_v1 = vmov (!%p282_p3), 0.0   ;;  %vm1522_vm0 = vmmov (!%p282_p3), 0   ;;  %s1221_s16 = sshll.u32 (!%p282_p3), %s1507_s28, 2  ;;  %s1292_s18 = sshll.u32 (!%p282_p3), %s1503_s27, 3  ;;  %vm361_vm1 = vcmask (!%p282_p3), 130048  }
   0x9   : > { %s1759_s11 = smov (%p33_p4, %s1757_s11), 0  ;;  %285 = sbr.rel (%p282_p3) target bundleno = 780 (0x30c), region = 48 }
   0xa   : > { %1344 = vmatprep.subr.bf16.mxu0 (!%p282_p3), %v1521_v1  ;;  %1320 = vmatprep.subr.bf16.mxu1 (!%p282_p3), %v1521_v1  ;;  %v1466_v2 = vld [vmem:[%s1742_s1] sm:$0xff] (!%p282_p3)   ;;  %p323_p5 = scmp.lt.s32.totalorder (!%p282_p3), %s1221_s16, 7  ;;  %v1467_v3 = vld [vmem:[%s1742_s1 + $0x28] sm:$0xff] (!%p282_p3)   ;;  %v1470_v14 = vld [vmem:[%s1742_s1 + $0x30] sm:$0xff] (!%p282_p3)   ;;  %p329_p6 = scmp.lt.s32.totalorder (!%p282_p3), %s1507_s28, 1  ;;  %vm895_vm2 = vcmask (!%p282_p3), 125952  }
   0xb   : > { %1345 = vmatpush3.bf16.msra.mxu0 (!%p282_p3), %v1465_v0  ;;  %1322 = vmatprep.mubr.msk.bf16.mxu1 (!%p282_p3), %vm1522_vm0, %v1521_v1  ;;  %v1468_v4 = vld [vmem:[%s1742_s1 + $0x8] sm:$0xff] (!%p282_p3)   ;;  %v1471_v15 = vld [vmem:[%s1742_s1 + $0x10] sm:$0xff] (!%p282_p3)   ;;  %v1473_v21 = vld [vmem:[%s1742_s1 + $0x38] sm:$0xff] (!%p282_p3)   ;;  %p331_p7 = scmp.lt.s32.totalorder (!%p282_p3), %s1503_s27, 7  ;;  %p1283_p8 = scmp.ne.s32.totalorder (!%p282_p3), %s1503_s27, 0 }
   0xc   : > { %1321 = vmatpush3.bf16.msra.mxu1 (!%p282_p3), %v1466_v2  ;;  %1346 = vmatprep.mubr.msk.bf16.mxu0 (!%p282_p3), %vm1522_vm0, %v1521_v1  ;;  %v1474_v22 = vld [vmem:[%s1742_s1 + $0x18] sm:$0xff] (!%p282_p3)   ;;  %v1475_v26 = vld [vmem:[%s1742_s1 + $0x40] sm:$0xff] (!%p282_p3)  }
   0xd   : > { %1350 = vmatprep.subr.bf16.mxu0 (!%p282_p3), %v1521_v1  ;;  %1326 = vmatprep.subr.bf16.mxu1 (!%p282_p3), %v1521_v1  ;;  %v1225_v35 = vld [vmem:[%s1743_s2] ss:$0 sm:$0xff] (!%p282_p3) }
  0x10   : > { %s1761_s16 = smov (!%p323_p5, %s1221_s16), 7  ;;  %s1763_s28 = smov (!%p329_p6, %s1507_s28), 1 }
  0x11   : > { %s1419_s17 = smul.u32 72, %s1761_s16  ;;  %s339_s24 = scalar_lea.vmem %s1749_s8, %s1763_s28  ;;  %vm909_vm3 = vcmask (!%p1283_p8), 122880  }
  0x12   : > { %s332_s25 = scalar_select %p331_p7, %s1503_s27, 7 }
  0x13   : > { %s327_s21 = scalar_lea.vmem %s1741_s0, %s1419_s17 }
  0x14   : > { %s1630_s26 = scalar_lea.vmem %s327_s21, %s1292_s18 }
  0x15   : > { %v352_v5 = vld [vmem:[%s1630_s26] sm:$0xf]  ;;  %v1251_v6 = vld [vmem:[%s1630_s26 + $0xd8] sm:$0xf]  ;;  %v1469_v7 = vld [vmem:[%s1630_s26 + $0x90] sm:$0x1f]  }
  0x16   : > { %1323 = vmatmul.mubr.msk.bf16.vlgmr.msra.gmra.mrb[0].mxu1 %vm361_vm1, %v352_v5  ;;  %1347 = vmatmul.mubr.msk.bf16.vlgmr.msra.gmra.mrb[0].mxu0 %vm361_vm1, %v1251_v6  ;;  %v657_v8 = vshll.u32 %v1469_v7, 16  ;;  %v655_v9 = vshrl.u32 %v1469_v7, 16  ;;  %v1472_v12 = vld [vmem:[%s1630_s26] sm:$0x1f]   ;;  %v1232_v13 = vld [vmem:[%s1630_s26 + $0x48] sm:$0xf] }
  0x17   : > { %1351 = vmatpush3.bf16.msra.mxu0 %v1467_v3  ;;  %1327 = vmatpush3.bf16.msra.mxu1 %v1468_v4  ;;  %v476_v16 = vshll.u32 %v1472_v12, 16  ;;  %v474_v17 = vshrl.u32 %v1472_v12, 16  ;;  %v1264_v20 = vld [vmem:[%s1630_s26 + $0x8] sm:$0xf]  ;;  %v1244_v24 = vld [vmem:[%s1630_s26 + $0x90] sm:$0xf] }
  0x18   : > { %1328 = vmatprep.mubr.msk.bf16.mxu1 %vm1522_vm0, %v1521_v1  ;;  %1352 = vmatprep.mubr.msk.bf16.mxu0 %vm1522_vm0, %v1521_v1  ;;  %v659_v10 = vrot.slane %v657_v8, 1  ;;  %v1476_v23 = vld [vmem:[%s1630_s26 + $0x8] sm:$0x1f]   ;;  %v1271_v25 = vld [vmem:[%s1630_s26 + $0x50] sm:$0xf]  ;;  %s1223_s26 = sshll.u32 %s1763_s28, 3 }
  0x19   : > { %1356 = vmatprep.subr.bf16.mxu0 %v1521_v1  ;;  %1332 = vmatprep.subr.bf16.mxu1 %v1521_v1  ;;  %v478_v18 = vrot.slane %v476_v16, 1  ;;  %v839_v27 = vshll.u32 %v1476_v23, 16  ;;  %v837_v28 = vshrl.u32 %v1476_v23, 16  ;;  %s334_s14 = sadd.s32 %s1223_s26, %s332_s25 }
  0x1a   : > { %v660_v11 = vor.u32 %v659_v10, %v655_v9  ;;  %s1224_s15 = sshll.u32 %s334_s14, 2 }
  0x1b   : > { %v479_v19 = vor.u32 %v478_v18, %v474_v17  ;;  %v841_v29 = vrot.slane %v839_v27, 1  ;;  %s336_s18 = scalar_lea.vmem %s1748_s7, %s1224_s15 }
  0x1d   : > { %v842_v30 = vor.u32 %v841_v29, %v837_v28 }
  0x22   : > { %1329 = vmatmul.mubr.msk.bf16.vlgmr.msra.gmra.mrb[0].mxu1 %vm361_vm1, %v1232_v13  ;;  %1353 = vmatmul.mubr.msk.bf16.vlgmr.msra.gmra.mrb[0].mxu0 %vm361_vm1, %v660_v11 }
  0x23   : > { %1357 = vmatpush3.bf16.msra.mxu0 %v1470_v14  ;;  %1333 = vmatpush3.bf16.msra.mxu1 %v1471_v15 }
  0x24   : > { %1334 = vmatprep.mubr.msk.bf16.mxu1 %vm1522_vm0, %v1521_v1  ;;  %1358 = vmatprep.mubr.msk.bf16.mxu0 %vm1522_vm0, %v1521_v1 }
  0x25   : > { %1362 = vmatprep.subr.bf16.mxu0 %v1521_v1  ;;  %1338 = vmatprep.subr.bf16.mxu1 %v1521_v1 }
  0x2e   : > { %1335 = vmatmul.mubr.msk.bf16.vlgmr.msra.gmra.mrb[0].mxu1 %vm361_vm1, %v479_v19  ;;  %1359 = vmatmul.mubr.msk.bf16.vlgmr.msra.gmra.mrb[0].mxu0 %vm361_vm1, %v1264_v20 }
  0x2f   : > { %1363 = vmatpush3.bf16.msra.mxu0 %v1473_v21  ;;  %1339 = vmatpush3.bf16.msra.mxu1 %v1474_v22 }
  0x30   : > { %1340 = vmatprep.mubr.msk.bf16.mxu1 %vm1522_vm0, %v1521_v1  ;;  %1364 = vmatprep.mubr.msk.bf16.mxu0 %vm1522_vm0, %v1521_v1 }
  0x31   : > { %1368 = vmatprep.subr.bf16.mxu0 %v1521_v1 }
  0x3a   : > { %1341 = vmatmul.mubr.msk.bf16.vlgmr.msra.gmra.mrb[0].mxu1 %vm361_vm1, %v1244_v24  ;;  %1365 = vmatmul.mubr.msk.bf16.vlgmr.msra.gmra.mrb[0].mxu0 %vm361_vm1, %v1271_v25 }
  0x3b   : > { %1369 = vmatpush3.bf16.msra.mxu0 %v1475_v26  ;;  %1370 = vmatprep.mubr.msk.bf16.mxu0 %vm1522_vm0, %v1521_v1 }
  0x46   : > { %1371 = vmatmul.mubr.msk.bf16.vlgmr.msra.gmra.mrb[0].mxu0 %vm361_vm1, %v842_v30 }
 0x10d   : > { %v580_v31 = vpop.f32.mrb[0].mxu1 }
 0x10e   : > { %v1342_v32 = vpop.f32.mrb[1].mxu1  ;;  %v1389_v36 = vadd.f32 %v1225_v35, %v580_v31 }
 0x10f   : > { %v583_v33 = vpop.f32.mrb[2].mxu1 }
 0x110   : > { %v1343_v34 = vpop.f32.mrb[3].mxu1 }
 0x119   : > { %v886_v37 = vpop.f32.mrb[0].mxu0 }
 0x11a   : > { %v1390_v38 = vadd.f32 %v1389_v36, %v886_v37  ;;  %v1372_v39 = vpop.f32.mrb[1].mxu0 }
 0x11b   : > { %v889_v40 = vpop.f32.mrb[2].mxu0 }
 0x11c   : > { %v893_v41 = vmax.f32 %v1390_v38, 0.0  ;;  %v1373_v42 = vpop.f32.mrb[3].mxu0 }
 0x11e   : > { %v894_v43 = vpack.c.bf16 %v893_v41, %v893_v41 }
 0x120   : > { %896 = vst.msk [vmem:[%s336_s18] sm:$0xf] %vm895_vm2, %v894_v43  ;;  %v897_v44 = vunpack.c.l.bf16 %v894_v43 }
 0x122   : > { %v898_v45 = vsel %vm361_vm1, %v897_v44, 0.0 }
 0x123   : > { %v899_v46 = vrot.slane %v898_v45, 4 }
 0x125   : > { %v900_v47 = vadd.f32 %v899_v46, %v898_v45 }
 0x127   : > { %v901_v48 = vrot.slane %v900_v47, 2  ;;  %908 = sbr.rel (%p1283_p8) target bundleno = 304 (0x130), region = 52 }
 0x129   : > { %v902_v49 = vadd.f32 %v901_v48, %v900_v47 }
 0x12b   : > { %v903_v50 = vrot.slane %v902_v49, 1 }
 0x12d   : > { %v904_v51 = vadd.f32 %v903_v50, %v902_v49 }
 0x12f   : > { %910 = vst.msk [vmem:[#allocation2] sm:$0x1] %vm909_vm3, %v904_v51 }
 0x130 PF: > { %p1284_p9 = scmp.le.s32.totalorder %s1503_s27, 0 }
 0x131   : > { %vm917_vm4 = vcmask (!%p1284_p9), 122880  }
 0x132   : > { %914 = sbr.rel (%p1284_p9) target bundleno = 314 (0x13a), region = 56 }
 0x136   : > { %v915_v52 = vld [vmem:[#allocation2] sm:$0x1] (!%p1284_p9) }
 0x137   : > { %v916_v53 = vadd.f32 (!%p1284_p9), %v915_v52, %v904_v51 }
 0x139   : > { %918 = vst.msk [vmem:[#allocation2] sm:$0x1] %vm917_vm4, %v916_v53 }
 0x13a PF: > { %p1285_p10 = scmp.ne.s32.totalorder %s1503_s27, 7 }
 0x13b   : > { %v925_v54 = vld [vmem:[%s1744_s3] sm:$0xff] (!%p1285_p10)  ;;  %v926_v55 = vld [vmem:[%s1744_s3 + $0x8] sm:$0xff] (!%p1285_p10)  ;;  %v1523_v56 = vmov (!%p1285_p10), 0.0|0.0   ;;  %vm1524_vm5 = vmmov (!%p1285_p10), 0   ;;  %v1525_v58 = vmov (!%p1285_p10), 0.0   ;;  %vm1008_vm6 = vcmask (!%p1285_p10), 1041408  }
 0x13c   : > { %922 = sbr.rel (%p1285_p10) target bundleno = 780 (0x30c), region = 60  ;;  %1386 = vmatprep.subr.bf16.mxu0 (!%p1285_p10), %v1523_v56  ;;  %v1387_v57 = vpack.c.bf16 (!%p1285_p10), %v926_v55, %v925_v54  ;;  %1378 = vmatprep.mubr.msk.f32.mxu0 (!%p1285_p10), %vm1524_vm5, %v1525_v58  ;;  %v1002_v61 = vld [vmem:[%s1746_s5] sm:$0x3] (!%p1285_p10)  ;;  %vm1004_vm7 = vcmask (!%p1285_p10), 15360   ;;  %vm1088_vm8 = vcmask (!%p1285_p10), 122880  }
 0x13d   : > { %1381 = vmatprep.subr.mxu1 (!%p1285_p10), %v1525_v58  ;;  %1383 = vmatprep.mubr.msk.f32.mxu1 (!%p1285_p10), %vm1524_vm5, %v1525_v58  ;;  %v927_v62 = vld [vmem:[%s1745_s4] sm:$0x1] (!%p1285_p10) }
 0x13e   : > { %1388 = vmatpush3.bf16.msra.mxu0 (!%p1285_p10), %v1387_v57  ;;  %1382 = vmatpush3.msk.msra.mxu1 (!%p1285_p10), %vm1008_vm6, %v1002_v61  ;;  %v1003_v3 = vld [vmem:[%s1747_s6] sm:$0x1] (!%p1285_p10) }
 0x140   : > { %v923_v59 = vld [vmem:[#allocation2] sm:$0x1] (!%p1285_p10) }
 0x141   : > { %v924_v60 = vmul.f32 (!%p1285_p10), 0.015625, %v923_v59 }
 0x143   : > { %1379 = vmatmul.mubr.msk.f32.vlgmr.msra.gmra.mrb[0].mxu0 %vm361_vm1, %v924_v60 }
 0x216   : > { %v997_v63 = vpop.f32.mrb[0].mxu0 }
 0x217   : > { %v998_v0 = vadd.f32 %v997_v63, %v927_v62  ;;  %v1380_v1 = vpop.f32.mrb[1].mxu0 }
 0x219   : > { %v1001_v2 = vmax.f32 %v998_v0, 0.0 }
 0x21b   : > { %1384 = vmatmul.mubr.msk.f32.vlgmr.msra.gmra.mrb[0].mxu1 %vm1004_vm7, %v1001_v2 }
 0x2ee   : > { %v1078_v4 = vpop.f32.mrb[0].mxu1 }
 0x2ef   : > { %v1079_v5 = vadd.f32 %v1078_v4, %v1003_v3  ;;  %v1385_v6 = vpop.f32.mrb[1].mxu1 }
 0x2f1   : > { %v1289_v7 = vmul.f32 -1.442695, %v1079_v5 }
 0x2f3   : > { %1477 = vpow2.f32 %v1289_v7 }
 0x2fd   : > { %v1478_v8 = vpop.eup %1477 }
 0x2fe   : > { %v1085_v9 = vadd.f32 1.0, %v1478_v8 }
 0x300   : > { %1479 = vrcp.f32 %v1085_v9 }
 0x30a   : > { %v1480_v10 = vpop.eup %1479 }
 0x30b   : > { %1089 = vst.msk [vmem:[%s339_s24] sm:$0x1] %vm1088_vm8, %v1480_v10 }
 0x30c PF: > { %s19_s9 = sadd.s32 1, %s1519_s9   ;;  %s1750_s27 = smov %s1511_s29 }
 0x30d   : > { %p16_p11 = scmp.ge.s32.totalorder %s19_s9, 18   ;;  %s1751_s28 = smov %s1515_s30 }
 0x30e   : > { %s1752_s29 = smov %s1755_s10  ;;  %s1753_s30 = smov %s1759_s11 }
 0x30f   :  { %18 = sbr.rel (!%p16_p11) target bundleno = 3 (0x3), region = 116 }

// kernel: regstage_forward.12
= control target key start
LH: loop header
LB: loop body
LE: loop exit
PB: predicated region body
PF: predicated region fallthrough
CT: control target
= control target key end

     0   :  { %s1550_s27 = smov 0   ;;  %s1552_s28 = smov 0   ;;  %s1719_s0 = inlined_call_operand.vmem [shape: bf16[2,10,10,16], index: 0, kind: input, shape index: {}]   ;;  %s1720_s1 = inlined_call_operand.vmem [shape: bf16[3,3,16,16], index: 1, kind: input, shape index: {}]   ;;  %s1721_s2 = inlined_call_operand.vmem [shape: f32[1,16], index: 2, kind: input, shape index: {}]   ;;  %s1722_s3 = inlined_call_operand.vmem [shape: f32[16,4], index: 3, kind: input, shape index: {}]   ;;  %s1723_s4 = inlined_call_operand.vmem [shape: f32[1,4], index: 4, kind: input, shape index: {}]   ;;  %s1724_s5 = inlined_call_operand.vmem [shape: f32[4,16], index: 5, kind: input, shape index: {}]   ;;  %s1725_s6 = inlined_call_operand.vmem [shape: f32[1,16], index: 6, kind: input, shape index: {}]   ;;  %s1726_s7 = inlined_call_operand.vmem [shape: bf16[2,8,8,16], index: 7, kind: output, shape index: {0}]   ;;  %s1727_s8 = inlined_call_operand.vmem [shape: f32[2,1,16], index: 8, kind: output, shape index: {1}]  }
   0x1   :  { %s1554_s29 = smov 0   ;;  %s1556_s30 = smov 0  }
   0x2   :  { %s1558_s9 = smov 0  }
   0x3 LB: > { %s28_s10 = sadd.s32 1, %s1490_s29  ;;  %s31_s11 = sadd.s32 1, %s1494_s30  ;;  %s1498_s9 = sphi %s1558_s9, %s19_s9   ;;  %s1494_s30 = sphi %s1556_s30, %s1731_s30   ;;  %s1490_s29 = sphi %s1554_s29, %s1730_s29   ;;  %s1486_s28 = sphi %s1552_s28, %s1729_s28   ;;  %s1482_s27 = sphi %s1550_s27, %s1728_s27  }
   0x4   : > { %p29_p0 = scmp.ge.s32.totalorder %s28_s10, 8  ;;  %p1206_p1 = scmp.ge.s32.totalorder %s1498_s9, 1 }
   0x5   : > { %p279_p2 = scmp.lt.s32.totalorder %s1498_s9, 17 }
   0x6   : > { %s1733_s10 = smov (%p29_p0, %s28_s10), 0  ;;  %s1735_s11 = smov (!%p29_p0, %s31_s11), %s1494_s30 }
   0x7   : > { %p280_p3 = pnand %p1206_p1, %p279_p2  ;;  %p33_p4 = scmp.ge.s32.totalorder %s1735_s11, 2 }
   0x8   : > { %v1441_v0 = vld [vmem:[%s1720_s1] sm:$0xff] (!%p280_p3)   ;;  %v1500_v1 = vmov (!%p280_p3), 0.0   ;;  %p319_p5 = scmp.lt.s32.totalorder (!%p280_p3), %s1486_s28, 1  ;;  %vm1501_vm0 = vmmov (!%p280_p3), 0   ;;  %s1272_s16 = sshll.u32 (!%p280_p3), %s1482_s27, 3  ;;  %vm356_vm1 = vcmask (!%p280_p3), 130048  }
   0x9   : > { %s1737_s11 = smov (%p33_p4, %s1735_s11), 0  ;;  %283 = sbr.rel (%p280_p3) target bundleno = 788 (0x314), region = 48 }
   0xa   : > { %1296 = vmatprep.subr.bf16.mxu1 (!%p280_p3), %v1500_v1  ;;  %1320 = vmatprep.subr.bf16.mxu0 (!%p280_p3), %v1500_v1  ;;  %v1442_v2 = vld [vmem:[%s1720_s1 + $0x20] sm:$0xff] (!%p280_p3)   ;;  %v1445_v3 = vld [vmem:[%s1720_s1 + $0x8] sm:$0xff] (!%p280_p3)   ;;  %v1449_v21 = vld [vmem:[%s1720_s1 + $0x10] sm:$0xff] (!%p280_p3)   ;;  %p326_p6 = scmp.lt.s32.totalorder (!%p280_p3), %s1482_s27, 7  ;;  %vm894_vm2 = vcmask (!%p280_p3), 125952   ;;  %p1263_p7 = scmp.ne.s32.totalorder (!%p280_p3), %s1482_s27, 0 }
   0xb   : > { %1297 = vmatpush3.bf16.msra.mxu1 (!%p280_p3), %v1441_v0  ;;  %1298 = vmatprep.mubr.msk.bf16.mxu1 (!%p280_p3), %vm1501_vm0, %v1500_v1  ;;  %v1444_v16 = vld [vmem:[%s1720_s1 + $0x28] sm:$0xff] (!%p280_p3)   ;;  %v1448_v26 = vld [vmem:[%s1720_s1 + $0x30] sm:$0xff] (!%p280_p3)   ;;  %v1452_v28 = vld [vmem:[%s1720_s1 + $0x18] sm:$0xff] (!%p280_p3)  }
   0xc   : > { %1322 = vmatprep.mubr.msk.bf16.mxu0 (!%p280_p3), %vm1501_vm0, %v1500_v1  ;;  %1302 = vmatprep.subr.bf16.mxu1 (!%p280_p3), %v1500_v1  ;;  %v1451_v33 = vld [vmem:[%s1720_s1 + $0x38] sm:$0xff] (!%p280_p3)   ;;  %v1454_v39 = vld [vmem:[%s1720_s1 + $0x40] sm:$0xff] (!%p280_p3)  }
   0xd   : > { %1321 = vmatpush3.bf16.msra.mxu0 (!%p280_p3), %v1442_v2  ;;  %v1210_v47 = vld [vmem:[%s1721_s2] ss:$0 sm:$0xff] (!%p280_p3) }
   0xe   : > { %1326 = vmatprep.subr.bf16.mxu0 (!%p280_p3), %v1500_v1 }
  0x10   : > { %s1739_s28 = smov (!%p319_p5, %s1486_s28), 1  ;;  %vm908_vm3 = vcmask (!%p1263_p7), 122880  }
  0x11   : > { %s1395_s17 = smul.u32 80, %s1739_s28  ;;  %s334_s20 = scalar_lea.vmem %s1727_s8, %s1739_s28 }
  0x12   : > { %s327_s25 = scalar_select %p326_p6, %s1482_s27, 7 }
  0x13   : > { %s323_s23 = scalar_lea.vmem %s1719_s0, %s1395_s17  ;;  %s1208_s12 = sshll.u32 %s1739_s28, 3 }
  0x14   : > { %s1610_s26 = scalar_lea.vmem %s323_s23, %s1272_s16  ;;  %s329_s15 = sadd.s32 %s1208_s12, %s327_s25 }
  0x15   : > { %v347_v4 = vld [vmem:[%s1610_s26] sm:$0xf]  ;;  %v1231_v5 = vld [vmem:[%s1610_s26 + $0x8] sm:$0xf]  ;;  %v1232_v6 = vld [vmem:[%s1610_s26 + $0xc] sm:$0x1] }
  0x16   : > { %1299 = vmatmul.mubr.msk.bf16.vlgmr.msra.gmra.mrb[0].mxu1 %vm356_vm1, %v347_v4  ;;  %v1235_v7 = vcombine.low %v1231_v5, %v1232_v6  ;;  %v401_v8 = vld [vmem:[%s1610_s26] sm:$0xf]  ;;  %v402_v9 = vld [vmem:[%s1610_s26 + $0x4] sm:$0x1]  ;;  %v1238_v20 = vld [vmem:[%s1610_s26 + $0x8] sm:$0xe] }
  0x17   : > { %1303 = vmatpush3.bf16.msra.mxu1 %v1445_v3  ;;  %1304 = vmatprep.mubr.msk.bf16.mxu1 %vm1501_vm0, %v1500_v1  ;;  %v1217_v10 = vcombine.low %v401_v8, %v402_v9  ;;  %v1241_v22 = vcombine.low %v1238_v20, %v1232_v6  ;;  %v468_v23 = vld [vmem:[%s1610_s26] sm:$0xe]  ;;  %v1250_v29 = vld [vmem:[%s1610_s26 + $0x10] sm:$0xf]  ;;  %v1251_v30 = vld [vmem:[%s1610_s26 + $0x14] sm:$0x1] }
  0x18   : > { %v595_v11 = vshrl.u32 %v1235_v7, 16  ;;  %v597_v12 = vshll.u32 %v1235_v7, 16  ;;  %1308 = vmatprep.subr.bf16.mxu1 %v1500_v1  ;;  %v1222_v25 = vcombine.low %v468_v23, %v402_v9  ;;  %v1254_v31 = vcombine.low %v1250_v29, %v1251_v30  ;;  %v1245_v32 = vld [vmem:[%s1610_s26 + $0x10] sm:$0xf]  ;;  %v1226_v35 = vld [vmem:[%s1610_s26 + $0x8] sm:$0xf] }
  0x19   : > { %v414_v13 = vshll.u32 %v1217_v10, 16  ;;  %v412_v15 = vshrl.u32 %v1217_v10, 16  ;;  %v658_v24 = vrot.slane %v1241_v22, 1  ;;  %v1257_v40 = vld [vmem:[%s1610_s26 + $0x10] sm:$0xe]  ;;  %s1209_s16 = sshll.u32 %s329_s15, 2 }
  0x1a   : > { %v599_v14 = vrot.slane %v597_v12, 1  ;;  %v475_v27 = vrot.slane %v1222_v25, 1  ;;  %v780_v34 = vshll.u32 %v1254_v31, 16  ;;  %v778_v36 = vshrl.u32 %v1254_v31, 16  ;;  %s331_s18 = scalar_lea.vmem %s1726_s7, %s1209_s16 }
  0x1b   : > { %v416_v17 = vrot.slane %v414_v13, 1  ;;  %v1260_v41 = vcombine.low %v1257_v40, %v1251_v30 }
  0x1c   : > { %v600_v18 = vor.u32 %v599_v14, %v595_v11  ;;  %v782_v37 = vrot.slane %v780_v34, 1 }
  0x1d   : > { %v417_v19 = vor.u32 %v416_v17, %v412_v15  ;;  %v841_v42 = vrot.slane %v1260_v41, 1 }
  0x1e   : > { %1323 = vmatmul.mubr.msk.bf16.vlgmr.msra.gmra.mrb[0].mxu0 %vm356_vm1, %v600_v18  ;;  %v783_v38 = vor.u32 %v782_v37, %v778_v36 }
  0x1f   : > { %1327 = vmatpush3.bf16.msra.mxu0 %v1444_v16  ;;  %1328 = vmatprep.mubr.msk.bf16.mxu0 %vm1501_vm0, %v1500_v1 }
  0x20   : > { %1332 = vmatprep.subr.bf16.mxu0 %v1500_v1 }
  0x22   : > { %1305 = vmatmul.mubr.msk.bf16.vlgmr.msra.gmra.mrb[0].mxu1 %vm356_vm1, %v417_v19 }
  0x23   : > { %1309 = vmatpush3.bf16.msra.mxu1 %v1449_v21  ;;  %1310 = vmatprep.mubr.msk.bf16.mxu1 %vm1501_vm0, %v1500_v1 }
  0x24   : > { %1314 = vmatprep.subr.bf16.mxu1 %v1500_v1 }
  0x2a   : > { %1329 = vmatmul.mubr.msk.bf16.vlgmr.msra.gmra.mrb[0].mxu0 %vm356_vm1, %v658_v24 }
  0x2b   : > { %1333 = vmatpush3.bf16.msra.mxu0 %v1448_v26  ;;  %1334 = vmatprep.mubr.msk.bf16.mxu0 %vm1501_vm0, %v1500_v1 }
  0x2c   : > { %1338 = vmatprep.subr.bf16.mxu0 %v1500_v1 }
  0x2e   : > { %1311 = vmatmul.mubr.msk.bf16.vlgmr.msra.gmra.mrb[0].mxu1 %vm356_vm1, %v475_v27 }
  0x2f   : > { %1315 = vmatpush3.bf16.msra.mxu1 %v1452_v28  ;;  %1316 = vmatprep.mubr.msk.bf16.mxu1 %vm1501_vm0, %v1500_v1 }
  0x36   : > { %1335 = vmatmul.mubr.msk.bf16.vlgmr.msra.gmra.mrb[0].mxu0 %vm356_vm1, %v1245_v32 }
  0x37   : > { %1339 = vmatpush3.bf16.msra.mxu0 %v1451_v33  ;;  %1340 = vmatprep.mubr.msk.bf16.mxu0 %vm1501_vm0, %v1500_v1 }
  0x38   : > { %1344 = vmatprep.subr.bf16.mxu0 %v1500_v1 }
  0x3a   : > { %1317 = vmatmul.mubr.msk.bf16.vlgmr.msra.gmra.mrb[0].mxu1 %vm356_vm1, %v1226_v35 }
  0x42   : > { %1341 = vmatmul.mubr.msk.bf16.vlgmr.msra.gmra.mrb[0].mxu0 %vm356_vm1, %v783_v38 }
  0x43   : > { %1345 = vmatpush3.bf16.msra.mxu0 %v1454_v39  ;;  %1346 = vmatprep.mubr.msk.bf16.mxu0 %vm1501_vm0, %v1500_v1 }
  0x4e   : > { %1347 = vmatmul.mubr.msk.bf16.vlgmr.msra.gmra.mrb[0].mxu0 %vm356_vm1, %v841_v42 }
 0x10d   : > { %v577_v43 = vpop.f32.mrb[0].mxu1 }
 0x10e   : > { %v1318_v44 = vpop.f32.mrb[1].mxu1  ;;  %v1365_v48 = vadd.f32 %v1210_v47, %v577_v43 }
 0x10f   : > { %v580_v45 = vpop.f32.mrb[2].mxu1 }
 0x110   : > { %v1319_v46 = vpop.f32.mrb[3].mxu1 }
 0x121   : > { %v885_v49 = vpop.f32.mrb[0].mxu0 }
 0x122   : > { %v1366_v50 = vadd.f32 %v1365_v48, %v885_v49  ;;  %v1348_v51 = vpop.f32.mrb[1].mxu0 }
 0x123   : > { %v888_v52 = vpop.f32.mrb[2].mxu0 }
 0x124   : > { %v892_v53 = vmax.f32 %v1366_v50, 0.0  ;;  %v1349_v54 = vpop.f32.mrb[3].mxu0 }
 0x126   : > { %v893_v55 = vpack.c.bf16 %v892_v53, %v892_v53 }
 0x128   : > { %895 = vst.msk [vmem:[%s331_s18] sm:$0xf] %vm894_vm2, %v893_v55  ;;  %v896_v56 = vunpack.c.l.bf16 %v893_v55 }
 0x12a   : > { %v897_v57 = vsel %vm356_vm1, %v896_v56, 0.0 }
 0x12b   : > { %v898_v58 = vrot.slane %v897_v57, 4 }
 0x12d   : > { %v899_v59 = vadd.f32 %v898_v58, %v897_v57 }
 0x12f   : > { %v900_v60 = vrot.slane %v899_v59, 2  ;;  %907 = sbr.rel (%p1263_p7) target bundleno = 312 (0x138), region = 52 }
 0x131   : > { %v901_v61 = vadd.f32 %v900_v60, %v899_v59 }
 0x133   : > { %v902_v62 = vrot.slane %v901_v61, 1 }
 0x135   : > { %v903_v63 = vadd.f32 %v902_v62, %v901_v61 }
 0x137   : > { %909 = vst.msk [vmem:[#allocation2] sm:$0x1] %vm908_vm3, %v903_v63 }
 0x138 PF: > { %p1264_p8 = scmp.le.s32.totalorder %s1482_s27, 0 }
 0x139   : > { %vm916_vm4 = vcmask (!%p1264_p8), 122880  }
 0x13a   : > { %913 = sbr.rel (%p1264_p8) target bundleno = 322 (0x142), region = 56 }
 0x13e   : > { %v914_v0 = vld [vmem:[#allocation2] sm:$0x1] (!%p1264_p8) }
 0x13f   : > { %v915_v1 = vadd.f32 (!%p1264_p8), %v914_v0, %v903_v63 }
 0x141   : > { %917 = vst.msk [vmem:[#allocation2] sm:$0x1] %vm916_vm4, %v915_v1 }
 0x142 PF: > { %p1265_p9 = scmp.ne.s32.totalorder %s1482_s27, 7 }
 0x143   : > { %v924_v2 = vld [vmem:[%s1722_s3] sm:$0xff] (!%p1265_p9)  ;;  %v925_v3 = vld [vmem:[%s1722_s3 + $0x8] sm:$0xff] (!%p1265_p9)  ;;  %v1502_v4 = vmov (!%p1265_p9), 0.0|0.0   ;;  %vm1503_vm5 = vmmov (!%p1265_p9), 0   ;;  %v1504_v6 = vmov (!%p1265_p9), 0.0   ;;  %vm1007_vm6 = vcmask (!%p1265_p9), 1043456  }
 0x144   : > { %921 = sbr.rel (%p1265_p9) target bundleno = 788 (0x314), region = 60  ;;  %1362 = vmatprep.subr.bf16.mxu0 (!%p1265_p9), %v1502_v4  ;;  %v1363_v5 = vpack.c.bf16 (!%p1265_p9), %v925_v3, %v924_v2  ;;  %1354 = vmatprep.mubr.msk.f32.mxu0 (!%p1265_p9), %vm1503_vm5, %v1504_v6  ;;  %v1001_v9 = vld [vmem:[%s1724_s5] sm:$0xf] (!%p1265_p9)  ;;  %vm1003_vm7 = vcmask (!%p1265_p9), 31744   ;;  %vm1087_vm8 = vcmask (!%p1265_p9), 122880  }
 0x145   : > { %1357 = vmatprep.subr.mxu1 (!%p1265_p9), %v1504_v6  ;;  %1359 = vmatprep.mubr.msk.f32.mxu1 (!%p1265_p9), %vm1503_vm5, %v1504_v6  ;;  %v926_v10 = vld [vmem:[%s1723_s4] sm:$0x1] (!%p1265_p9) }
 0x146   : > { %1364 = vmatpush3.bf16.msra.mxu0 (!%p1265_p9), %v1363_v5  ;;  %1358 = vmatpush3.msk.msra.mxu1 (!%p1265_p9), %vm1007_vm6, %v1001_v9  ;;  %v1002_v15 = vld [vmem:[%s1725_s6] sm:$0x1] (!%p1265_p9) }
 0x148   : > { %v922_v7 = vld [vmem:[#allocation2] sm:$0x1] (!%p1265_p9) }
 0x149   : > { %v923_v8 = vmul.f32 (!%p1265_p9), 0.015625, %v922_v7 }
 0x14b   : > { %1355 = vmatmul.mubr.msk.f32.vlgmr.msra.gmra.mrb[0].mxu0 %vm356_vm1, %v923_v8 }
 0x21e   : > { %v996_v11 = vpop.f32.mrb[0].mxu0 }
 0x21f   : > { %v997_v12 = vadd.f32 %v996_v11, %v926_v10  ;;  %v1356_v13 = vpop.f32.mrb[1].mxu0 }
 0x221   : > { %v1000_v14 = vmax.f32 %v997_v12, 0.0 }
 0x223   : > { %1360 = vmatmul.mubr.msk.f32.vlgmr.msra.gmra.mrb[0].mxu1 %vm1003_vm7, %v1000_v14 }
 0x2f6   : > { %v1077_v16 = vpop.f32.mrb[0].mxu1 }
 0x2f7   : > { %v1078_v17 = vadd.f32 %v1077_v16, %v1002_v15  ;;  %v1361_v18 = vpop.f32.mrb[1].mxu1 }
 0x2f9   : > { %v1269_v19 = vmul.f32 -1.442695, %v1078_v17 }
 0x2fb   : > { %1456 = vpow2.f32 %v1269_v19 }
 0x305   : > { %v1457_v20 = vpop.eup %1456 }
 0x306   : > { %v1084_v21 = vadd.f32 1.0, %v1457_v20 }
 0x308   : > { %1458 = vrcp.f32 %v1084_v21 }
 0x312   : > { %v1459_v22 = vpop.eup %1458 }
 0x313   : > { %1088 = vst.msk [vmem:[%s334_s20] sm:$0x1] %vm1087_vm8, %v1459_v22 }
 0x314 PF: > { %s19_s9 = sadd.s32 1, %s1498_s9   ;;  %s1728_s27 = smov %s1490_s29 }
 0x315   : > { %p16_p10 = scmp.ge.s32.totalorder %s19_s9, 18   ;;  %s1729_s28 = smov %s1494_s30 }
 0x316   : > { %s1730_s29 = smov %s1733_s10  ;;  %s1731_s30 = smov %s1737_s11 }
 0x317   :  { %18 = sbr.rel (!%p16_p10) target bundleno = 3 (0x3), region = 113 }

</bundles_post_ra>
